<compile_context>
chip_gen: v6e
topology: v6e:2x2x1
jax: 0.10.0
libtpu: 0.0.40
codegen_flags: <defaults>
</compile_context>

<pallas_src>
import jax
import jax.numpy as jnp
import numpy as np
from jax.experimental import pallas as pl
from jax.experimental.pallas import tpu as pltpu  # noqa: F401  (TPU backend)

HIDDEN_DIM = 64
INPUT_DIM = 1
LAYER_DIM = 3
OUTPUT_DIM = 1
DROPOUT_PROB = 0.2  # nn.LSTM dropout is train-only; this is the inference path.


# ----------------------------- Pallas kernel --------------------------------

def fused_lstm_kernel(x_ref,
                      w0i_ref, w0h_ref, b0_ref,
                      w1i_ref, w1h_ref, b1_ref,
                      w2i_ref, w2h_ref, b2_ref,
                      wfc_ref, bfc_ref,
                      out_ref):
    """Whole model in one kernel.

    x_ref:   (T, B, F)   time-major input sequence (resident in VMEM)
    w{l}i:   (F_in, 4H)  W_ih^T of layer l, gate cols ordered [i, f, o, g]
    w{l}h:   (H, 4H)     W_hh^T of layer l, same column order
    b{l}:    (1, 4H)     b_ih + b_hh
    wfc:     (H, O)      FC weight^T
    bfc:     (1, O)      FC bias
    out_ref: (B, O)      only HBM write of the whole model
    """
    T, B, F = x_ref.shape
    H = w0h_ref.shape[0]

    # Hoist all weight loads / bias broadcasts out of the (unrolled) time loop —
    # JAX does not CSE broadcast_in_dim across iterations.
    w0i = w0i_ref[...]
    w0h = w0h_ref[...]
    w1i = w1i_ref[...]
    w1h = w1h_ref[...]
    w2i = w2i_ref[...]
    w2h = w2h_ref[...]
    b0 = jnp.broadcast_to(b0_ref[...], (B, 4 * H))
    b1 = jnp.broadcast_to(b1_ref[...], (B, 4 * H))
    b2 = jnp.broadcast_to(b2_ref[...], (B, 4 * H))

    def cell(gates, c_prev):
        # Gate column order is [i, f, o, g]: one sigmoid covers the first 3H cols.
        sig = jax.nn.sigmoid(gates[:, :3 * H])
        i_g = sig[:, 0 * H:1 * H]
        f_g = sig[:, 1 * H:2 * H]
        o_g = sig[:, 2 * H:3 * H]
        g_g = jnp.tanh(gates[:, 3 * H:])
        c_new = f_g * c_prev + i_g * g_g
        h_new = o_g * jnp.tanh(c_new)
        return h_new, c_new

    zeros = jnp.zeros((B, H), jnp.float32)
    h0 = c0 = h1 = c1 = h2 = c2 = zeros

    # T is small and static: a fully unrolled loop lets the scheduler overlap the
    # EUP transcendentals of step t with the MXU dots of step t+1.
    for t in range(T):
        x_t = x_ref[t]                                    # (B, F)

        if F == 1:
            # K=1 matmul == outer product: do it on the VPU, skip the MXU.
            g_in0 = x_t * w0i
        else:
            g_in0 = jnp.dot(x_t, w0i, preferred_element_type=jnp.float32)
        g0 = (g_in0
              + jnp.dot(h0, w0h, preferred_element_type=jnp.float32) + b0)
        h0, c0 = cell(g0, c0)

        g1 = (jnp.dot(h0, w1i, preferred_element_type=jnp.float32)
              + jnp.dot(h1, w1h, preferred_element_type=jnp.float32) + b1)
        h1, c1 = cell(g1, c1)
        # TODO(synk): inter-layer dropout skipped (nn.LSTM dropout is train-only).

        g2 = (jnp.dot(h1, w2i, preferred_element_type=jnp.float32)
              + jnp.dot(h2, w2h, preferred_element_type=jnp.float32) + b2)
        h2, c2 = cell(g2, c2)

    # FC head on the last hidden state only; single (B, O) HBM writeback.
    out_ref[...] = (jnp.dot(h2, wfc_ref[...], preferred_element_type=jnp.float32)
                    + bfc_ref[...])


# ------------------------------ wrappers -------------------------------------

def prep_params(params):
    """One-time weight prep: permute gate rows [i,f,g,o] -> [i,f,o,g],
    transpose to (in, 4H), fuse the two biases."""
    H = HIDDEN_DIM
    perm = np.concatenate([np.arange(0, 2 * H),       # i, f
                           np.arange(3 * H, 4 * H),   # o
                           np.arange(2 * H, 3 * H)])  # g
    prepped = {}
    for l in range(LAYER_DIM):
        wih, whh, bih, bhh = params["lstm"][l]
        prepped[f"w{l}i"] = jnp.transpose(wih[perm])            # (F_in, 4H)
        prepped[f"w{l}h"] = jnp.transpose(whh[perm])            # (H, 4H)
        prepped[f"b{l}"] = (bih + bhh)[perm].reshape(1, 4 * H)  # (1, 4H)
    prepped["wfc"] = jnp.transpose(params["fc_w"])              # (H, O)
    prepped["bfc"] = params["fc_b"].reshape(1, OUTPUT_DIM)      # (1, O)
    return prepped


def lstm_model_forward(x, prepped):
    """Matches LSTMModel.forward: x is (B, T, input_dim), batch_first."""
    x_tm = jnp.transpose(x, (1, 0, 2)).astype(jnp.float32)      # (T, B, F)
    T, B, F = x_tm.shape
    H = HIDDEN_DIM

    def full2d(r, c):
        return pl.BlockSpec((r, c), lambda: (0, 0))

    return pl.pallas_call(
        fused_lstm_kernel,
        out_shape=jax.ShapeDtypeStruct((B, OUTPUT_DIM), jnp.float32),
        grid=(),
        in_specs=[
            pl.BlockSpec((T, B, F), lambda: (0, 0, 0)),
            full2d(F, 4 * H), full2d(H, 4 * H), full2d(1, 4 * H),
            full2d(H, 4 * H), full2d(H, 4 * H), full2d(1, 4 * H),
            full2d(H, 4 * H), full2d(H, 4 * H), full2d(1, 4 * H),
            full2d(H, OUTPUT_DIM), full2d(1, OUTPUT_DIM),
        ],
        out_specs=pl.BlockSpec((B, OUTPUT_DIM), lambda: (0, 0)),
    )(x_tm,
      prepped["w0i"], prepped["w0h"], prepped["b0"],
      prepped["w1i"], prepped["w1h"], prepped["b1"],
      prepped["w2i"], prepped["w2h"], prepped["b2"],
      prepped["wfc"], prepped["bfc"])


# --------------------------- parameter init ----------------------------------

def init_params(key):
    """PyTorch-style uniform(-1/sqrt(H), 1/sqrt(H)) init, deterministic."""
    k = 1.0 / np.sqrt(HIDDEN_DIM)
    params = {"lstm": []}
    for layer in range(LAYER_DIM):
        in_f = INPUT_DIM if layer == 0 else HIDDEN_DIM
        key, k1, k2, k3, k4 = jax.random.split(key, 5)
        wih = jax.random.uniform(k1, (4 * HIDDEN_DIM, in_f), jnp.float32, -k, k)
        whh = jax.random.uniform(k2, (4 * HIDDEN_DIM, HIDDEN_DIM), jnp.float32, -k, k)
        bih = jax.random.uniform(k3, (4 * HIDDEN_DIM,), jnp.float32, -k, k)
        bhh = jax.random.uniform(k4, (4 * HIDDEN_DIM,), jnp.float32, -k, k)
        params["lstm"].append((wih, whh, bih, bhh))
    key, k5, k6 = jax.random.split(key, 3)
    params["fc_w"] = jax.random.uniform(k5, (OUTPUT_DIM, HIDDEN_DIM), jnp.float32, -k, k)
    params["fc_b"] = jax.random.uniform(k6, (OUTPUT_DIM,), jnp.float32, -k, k)
    return params


# --------------------------- pure-JAX reference -------------------------------

def lstm_model_ref(x, params):
    """Reference uses the raw (un-permuted, un-fused) PyTorch-layout weights."""
    B, T, _ = x.shape
    inp = x.astype(jnp.float32)
    H = HIDDEN_DIM
    for layer in range(LAYER_DIM):
        wih, whh, bih, bhh = params["lstm"][layer]
        h = jnp.zeros((B, H), jnp.float32)
        c = jnp.zeros((B, H), jnp.float32)
        outs = []
        for t in range(T):
            gates = inp[:, t, :] @ wih.T + h @ whh.T + bih + bhh
            i_g = jax.nn.sigmoid(gates[:, 0 * H:1 * H])
            f_g = jax.nn.sigmoid(gates[:, 1 * H:2 * H])
            g_g = jnp.tanh(gates[:, 2 * H:3 * H])
            o_g = jax.nn.sigmoid(gates[:, 3 * H:4 * H])
            c = f_g * c + i_g * g_g
            h = o_g * jnp.tanh(c)
            outs.append(h)
        inp = jnp.stack(outs, axis=1)
    return inp[:, -1, :] @ params["fc_w"].T + params["fc_b"]


# ---------------------------------- main --------------------------------------

if __name__ == "__main__":
    key = jax.random.PRNGKey(0)
    pkey, xkey = jax.random.split(key)
    params = init_params(pkey)
    prepped = prep_params(params)

    B, T = 2, 8
    x = jax.random.normal(xkey, (B, T, INPUT_DIM), jnp.float32)  # batch_first

    fwd = jax.jit(lstm_model_forward)
    out = jax.block_until_ready(fwd(x, prepped))
    ref = jax.block_until_ready(lstm_model_ref(x, params))

    assert out.shape == (B, OUTPUT_DIM), out.shape
    np.testing.assert_allclose(np.asarray(out), np.asarray(ref),
                               rtol=1e-5, atol=1e-5)
    print("KERNEL_OK")
</pallas_src>

<mosaic_0001>
module attributes {stable_mosaic.version = 11 : i64} {
  func.func @fused_lstm_kernel(%arg0: memref<8x2x1xf32, #tpu.memory_space<vmem>>, %arg1: memref<1x256xf32, #tpu.memory_space<vmem>>, %arg2: memref<64x256xf32, #tpu.memory_space<vmem>>, %arg3: memref<1x256xf32, #tpu.memory_space<vmem>>, %arg4: memref<64x256xf32, #tpu.memory_space<vmem>>, %arg5: memref<64x256xf32, #tpu.memory_space<vmem>>, %arg6: memref<1x256xf32, #tpu.memory_space<vmem>>, %arg7: memref<64x256xf32, #tpu.memory_space<vmem>>, %arg8: memref<64x256xf32, #tpu.memory_space<vmem>>, %arg9: memref<1x256xf32, #tpu.memory_space<vmem>>, %arg10: memref<64x1xf32, #tpu.memory_space<vmem>>, %arg11: memref<1x1xf32, #tpu.memory_space<vmem>>, %arg12: memref<2x1xf32, #tpu.memory_space<vmem>>) attributes {dimension_semantics = [], scalar_prefetch = 0 : i64, scratch_operands = 0 : i64, tpu.core_type = #tpu.core_type<tc>} {
    %c0 = arith.constant 0 : index
    %c0_0 = arith.constant 0 : index
    %0 = vector.load %arg1[%c0, %c0_0] : memref<1x256xf32, #tpu.memory_space<vmem>>, vector<1x256xf32>
    %c0_1 = arith.constant 0 : index
    %c0_2 = arith.constant 0 : index
    %1 = vector.load %arg2[%c0_1, %c0_2] : memref<64x256xf32, #tpu.memory_space<vmem>>, vector<64x256xf32>
    %c0_3 = arith.constant 0 : index
    %c0_4 = arith.constant 0 : index
    %2 = vector.load %arg4[%c0_3, %c0_4] : memref<64x256xf32, #tpu.memory_space<vmem>>, vector<64x256xf32>
    %c0_5 = arith.constant 0 : index
    %c0_6 = arith.constant 0 : index
    %3 = vector.load %arg5[%c0_5, %c0_6] : memref<64x256xf32, #tpu.memory_space<vmem>>, vector<64x256xf32>
    %c0_7 = arith.constant 0 : index
    %c0_8 = arith.constant 0 : index
    %4 = vector.load %arg7[%c0_7, %c0_8] : memref<64x256xf32, #tpu.memory_space<vmem>>, vector<64x256xf32>
    %c0_9 = arith.constant 0 : index
    %c0_10 = arith.constant 0 : index
    %5 = vector.load %arg8[%c0_9, %c0_10] : memref<64x256xf32, #tpu.memory_space<vmem>>, vector<64x256xf32>
    %c0_11 = arith.constant 0 : index
    %c0_12 = arith.constant 0 : index
    %6 = vector.load %arg3[%c0_11, %c0_12] : memref<1x256xf32, #tpu.memory_space<vmem>>, vector<1x256xf32>
    %7 = vector.shape_cast %6 : vector<1x256xf32> to vector<1x256xf32>
    %8 = vector.broadcast %7 : vector<1x256xf32> to vector<2x256xf32>
    %c0_13 = arith.constant 0 : index
    %c0_14 = arith.constant 0 : index
    %9 = vector.load %arg6[%c0_13, %c0_14] : memref<1x256xf32, #tpu.memory_space<vmem>>, vector<1x256xf32>
    %10 = vector.shape_cast %9 : vector<1x256xf32> to vector<1x256xf32>
    %11 = vector.broadcast %10 : vector<1x256xf32> to vector<2x256xf32>
    %c0_15 = arith.constant 0 : index
    %c0_16 = arith.constant 0 : index
    %12 = vector.load %arg9[%c0_15, %c0_16] : memref<1x256xf32, #tpu.memory_space<vmem>>, vector<1x256xf32>
    %13 = vector.shape_cast %12 : vector<1x256xf32> to vector<1x256xf32>
    %14 = vector.broadcast %13 : vector<1x256xf32> to vector<2x256xf32>
    %cst = arith.constant 0.000000e+00 : f32
    %15 = vector.broadcast %cst : f32 to vector<2x64xf32>
    %c0_17 = arith.constant 0 : index
    %c0_18 = arith.constant 0 : index
    %c0_19 = arith.constant 0 : index
    %16 = vector.load %arg0[%c0_17, %c0_18, %c0_19] : memref<8x2x1xf32, #tpu.memory_space<vmem>>, vector<1x2x1xf32>
    %17 = vector.shape_cast %16 : vector<1x2x1xf32> to vector<2x1xf32>
    %18 = vector.broadcast %17 : vector<2x1xf32> to vector<2x256xf32>
    %19 = vector.broadcast %0 : vector<1x256xf32> to vector<2x256xf32>
    %20 = arith.mulf %18, %19 : vector<2x256xf32>
    %cst_20 = arith.constant dense<0.000000e+00> : vector<2x256xf32>
    %21 = tpu.matmul %15, %1, %cst_20 {dimension_numbers = #tpu.dot_dimension_numbers<[1], [0], [0], [1], [0, 0, 1, 1], [], []>} : vector<2x64xf32>, vector<64x256xf32>, vector<2x256xf32> -> vector<2x256xf32>
    %22 = arith.addf %20, %21 : vector<2x256xf32>
    %23 = arith.addf %22, %8 : vector<2x256xf32>
    %24 = vector.extract_strided_slice %23 {offsets = [0, 0], sizes = [2, 192], strides = [1, 1]} : vector<2x256xf32> to vector<2x192xf32>
    %25 = arith.negf %24 : vector<2x192xf32>
    %26 = math.exp %25 : vector<2x192xf32>
    %cst_21 = arith.constant 1.000000e+00 : f32
    %27 = vector.broadcast %cst_21 : f32 to vector<2x192xf32>
    %28 = arith.addf %27, %26 : vector<2x192xf32>
    %29 = arith.divf %27, %28 : vector<2x192xf32>
    %30 = vector.extract_strided_slice %29 {offsets = [0, 0], sizes = [2, 64], strides = [1, 1]} : vector<2x192xf32> to vector<2x64xf32>
    %31 = vector.extract_strided_slice %29 {offsets = [0, 64], sizes = [2, 64], strides = [1, 1]} : vector<2x192xf32> to vector<2x64xf32>
    %32 = vector.extract_strided_slice %29 {offsets = [0, 128], sizes = [2, 64], strides = [1, 1]} : vector<2x192xf32> to vector<2x64xf32>
    %33 = vector.extract_strided_slice %23 {offsets = [0, 192], sizes = [2, 64], strides = [1, 1]} : vector<2x256xf32> to vector<2x64xf32>
    %34 = math.tanh %33 : vector<2x64xf32>
    %35 = arith.mulf %31, %15 : vector<2x64xf32>
    %36 = arith.mulf %30, %34 : vector<2x64xf32>
    %37 = arith.addf %35, %36 : vector<2x64xf32>
    %38 = math.tanh %37 : vector<2x64xf32>
    %39 = arith.mulf %32, %38 : vector<2x64xf32>
    %cst_22 = arith.constant dense<0.000000e+00> : vector<2x256xf32>
    %40 = tpu.matmul %39, %2, %cst_22 {dimension_numbers = #tpu.dot_dimension_numbers<[1], [0], [0], [1], [0, 0, 1, 1], [], []>} : vector<2x64xf32>, vector<64x256xf32>, vector<2x256xf32> -> vector<2x256xf32>
    %cst_23 = arith.constant dense<0.000000e+00> : vector<2x256xf32>
    %41 = tpu.matmul %15, %3, %cst_23 {dimension_numbers = #tpu.dot_dimension_numbers<[1], [0], [0], [1], [0, 0, 1, 1], [], []>} : vector<2x64xf32>, vector<64x256xf32>, vector<2x256xf32> -> vector<2x256xf32>
    %42 = arith.addf %40, %41 : vector<2x256xf32>
    %43 = arith.addf %42, %11 : vector<2x256xf32>
    %44 = vector.extract_strided_slice %43 {offsets = [0, 0], sizes = [2, 192], strides = [1, 1]} : vector<2x256xf32> to vector<2x192xf32>
    %45 = arith.negf %44 : vector<2x192xf32>
    %46 = math.exp %45 : vector<2x192xf32>
    %cst_24 = arith.constant 1.000000e+00 : f32
    %47 = vector.broadcast %cst_24 : f32 to vector<2x192xf32>
    %48 = arith.addf %47, %46 : vector<2x192xf32>
    %49 = arith.divf %47, %48 : vector<2x192xf32>
    %50 = vector.extract_strided_slice %49 {offsets = [0, 0], sizes = [2, 64], strides = [1, 1]} : vector<2x192xf32> to vector<2x64xf32>
    %51 = vector.extract_strided_slice %49 {offsets = [0, 64], sizes = [2, 64], strides = [1, 1]} : vector<2x192xf32> to vector<2x64xf32>
    %52 = vector.extract_strided_slice %49 {offsets = [0, 128], sizes = [2, 64], strides = [1, 1]} : vector<2x192xf32> to vector<2x64xf32>
    %53 = vector.extract_strided_slice %43 {offsets = [0, 192], sizes = [2, 64], strides = [1, 1]} : vector<2x256xf32> to vector<2x64xf32>
    %54 = math.tanh %53 : vector<2x64xf32>
    %55 = arith.mulf %51, %15 : vector<2x64xf32>
    %56 = arith.mulf %50, %54 : vector<2x64xf32>
    %57 = arith.addf %55, %56 : vector<2x64xf32>
    %58 = math.tanh %57 : vector<2x64xf32>
    %59 = arith.mulf %52, %58 : vector<2x64xf32>
    %cst_25 = arith.constant dense<0.000000e+00> : vector<2x256xf32>
    %60 = tpu.matmul %59, %4, %cst_25 {dimension_numbers = #tpu.dot_dimension_numbers<[1], [0], [0], [1], [0, 0, 1, 1], [], []>} : vector<2x64xf32>, vector<64x256xf32>, vector<2x256xf32> -> vector<2x256xf32>
    %cst_26 = arith.constant dense<0.000000e+00> : vector<2x256xf32>
    %61 = tpu.matmul %15, %5, %cst_26 {dimension_numbers = #tpu.dot_dimension_numbers<[1], [0], [0], [1], [0, 0, 1, 1], [], []>} : vector<2x64xf32>, vector<64x256xf32>, vector<2x256xf32> -> vector<2x256xf32>
    %62 = arith.addf %60, %61 : vector<2x256xf32>
    %63 = arith.addf %62, %14 : vector<2x256xf32>
    %64 = vector.extract_strided_slice %63 {offsets = [0, 0], sizes = [2, 192], strides = [1, 1]} : vector<2x256xf32> to vector<2x192xf32>
    %65 = arith.negf %64 : vector<2x192xf32>
    %66 = math.exp %65 : vector<2x192xf32>
    %cst_27 = arith.constant 1.000000e+00 : f32
    %67 = vector.broadcast %cst_27 : f32 to vector<2x192xf32>
    %68 = arith.addf %67, %66 : vector<2x192xf32>
    %69 = arith.divf %67, %68 : vector<2x192xf32>
    %70 = vector.extract_strided_slice %69 {offsets = [0, 0], sizes = [2, 64], strides = [1, 1]} : vector<2x192xf32> to vector<2x64xf32>
    %71 = vector.extract_strided_slice %69 {offsets = [0, 64], sizes = [2, 64], strides = [1, 1]} : vector<2x192xf32> to vector<2x64xf32>
    %72 = vector.extract_strided_slice %69 {offsets = [0, 128], sizes = [2, 64], strides = [1, 1]} : vector<2x192xf32> to vector<2x64xf32>
    %73 = vector.extract_strided_slice %63 {offsets = [0, 192], sizes = [2, 64], strides = [1, 1]} : vector<2x256xf32> to vector<2x64xf32>
    %74 = math.tanh %73 : vector<2x64xf32>
    %75 = arith.mulf %71, %15 : vector<2x64xf32>
    %76 = arith.mulf %70, %74 : vector<2x64xf32>
    %77 = arith.addf %75, %76 : vector<2x64xf32>
    %78 = math.tanh %77 : vector<2x64xf32>
    %79 = arith.mulf %72, %78 : vector<2x64xf32>
    %c1 = arith.constant 1 : index
    %c0_28 = arith.constant 0 : index
    %c0_29 = arith.constant 0 : index
    %80 = vector.load %arg0[%c1, %c0_28, %c0_29] : memref<8x2x1xf32, #tpu.memory_space<vmem>>, vector<1x2x1xf32>
    %81 = vector.shape_cast %80 : vector<1x2x1xf32> to vector<2x1xf32>
    %82 = vector.broadcast %81 : vector<2x1xf32> to vector<2x256xf32>
    %83 = vector.broadcast %0 : vector<1x256xf32> to vector<2x256xf32>
    %84 = arith.mulf %82, %83 : vector<2x256xf32>
    %cst_30 = arith.constant dense<0.000000e+00> : vector<2x256xf32>
    %85 = tpu.matmul %39, %1, %cst_30 {dimension_numbers = #tpu.dot_dimension_numbers<[1], [0], [0], [1], [0, 0, 1, 1], [], []>} : vector<2x64xf32>, vector<64x256xf32>, vector<2x256xf32> -> vector<2x256xf32>
    %86 = arith.addf %84, %85 : vector<2x256xf32>
    %87 = arith.addf %86, %8 : vector<2x256xf32>
    %88 = vector.extract_strided_slice %87 {offsets = [0, 0], sizes = [2, 192], strides = [1, 1]} : vector<2x256xf32> to vector<2x192xf32>
    %89 = arith.negf %88 : vector<2x192xf32>
    %90 = math.exp %89 : vector<2x192xf32>
    %cst_31 = arith.constant 1.000000e+00 : f32
    %91 = vector.broadcast %cst_31 : f32 to vector<2x192xf32>
    %92 = arith.addf %91, %90 : vector<2x192xf32>
    %93 = arith.divf %91, %92 : vector<2x192xf32>
    %94 = vector.extract_strided_slice %93 {offsets = [0, 0], sizes = [2, 64], strides = [1, 1]} : vector<2x192xf32> to vector<2x64xf32>
    %95 = vector.extract_strided_slice %93 {offsets = [0, 64], sizes = [2, 64], strides = [1, 1]} : vector<2x192xf32> to vector<2x64xf32>
    %96 = vector.extract_strided_slice %93 {offsets = [0, 128], sizes = [2, 64], strides = [1, 1]} : vector<2x192xf32> to vector<2x64xf32>
    %97 = vector.extract_strided_slice %87 {offsets = [0, 192], sizes = [2, 64], strides = [1, 1]} : vector<2x256xf32> to vector<2x64xf32>
    %98 = math.tanh %97 : vector<2x64xf32>
    %99 = arith.mulf %95, %37 : vector<2x64xf32>
    %100 = arith.mulf %94, %98 : vector<2x64xf32>
    %101 = arith.addf %99, %100 : vector<2x64xf32>
    %102 = math.tanh %101 : vector<2x64xf32>
    %103 = arith.mulf %96, %102 : vector<2x64xf32>
    %cst_32 = arith.constant dense<0.000000e+00> : vector<2x256xf32>
    %104 = tpu.matmul %103, %2, %cst_32 {dimension_numbers = #tpu.dot_dimension_numbers<[1], [0], [0], [1], [0, 0, 1, 1], [], []>} : vector<2x64xf32>, vector<64x256xf32>, vector<2x256xf32> -> vector<2x256xf32>
    %cst_33 = arith.constant dense<0.000000e+00> : vector<2x256xf32>
    %105 = tpu.matmul %59, %3, %cst_33 {dimension_numbers = #tpu.dot_dimension_numbers<[1], [0], [0], [1], [0, 0, 1, 1], [], []>} : vector<2x64xf32>, vector<64x256xf32>, vector<2x256xf32> -> vector<2x256xf32>
    %106 = arith.addf %104, %105 : vector<2x256xf32>
    %107 = arith.addf %106, %11 : vector<2x256xf32>
    %108 = vector.extract_strided_slice %107 {offsets = [0, 0], sizes = [2, 192], strides = [1, 1]} : vector<2x256xf32> to vector<2x192xf32>
    %109 = arith.negf %108 : vector<2x192xf32>
    %110 = math.exp %109 : vector<2x192xf32>
    %cst_34 = arith.constant 1.000000e+00 : f32
    %111 = vector.broadcast %cst_34 : f32 to vector<2x192xf32>
    %112 = arith.addf %111, %110 : vector<2x192xf32>
    %113 = arith.divf %111, %112 : vector<2x192xf32>
    %114 = vector.extract_strided_slice %113 {offsets = [0, 0], sizes = [2, 64], strides = [1, 1]} : vector<2x192xf32> to vector<2x64xf32>
    %115 = vector.extract_strided_slice %113 {offsets = [0, 64], sizes = [2, 64], strides = [1, 1]} : vector<2x192xf32> to vector<2x64xf32>
    %116 = vector.extract_strided_slice %113 {offsets = [0, 128], sizes = [2, 64], strides = [1, 1]} : vector<2x192xf32> to vector<2x64xf32>
    %117 = vector.extract_strided_slice %107 {offsets = [0, 192], sizes = [2, 64], strides = [1, 1]} : vector<2x256xf32> to vector<2x64xf32>
    %118 = math.tanh %117 : vector<2x64xf32>
    %119 = arith.mulf %115, %57 : vector<2x64xf32>
    %120 = arith.mulf %114, %118 : vector<2x64xf32>
    %121 = arith.addf %119, %120 : vector<2x64xf32>
    %122 = math.tanh %121 : vector<2x64xf32>
    %123 = arith.mulf %116, %122 : vector<2x64xf32>
    %cst_35 = arith.constant dense<0.000000e+00> : vector<2x256xf32>
    %124 = tpu.matmul %123, %4, %cst_35 {dimension_numbers = #tpu.dot_dimension_numbers<[1], [0], [0], [1], [0, 0, 1, 1], [], []>} : vector<2x64xf32>, vector<64x256xf32>, vector<2x256xf32> -> vector<2x256xf32>
    %cst_36 = arith.constant dense<0.000000e+00> : vector<2x256xf32>
    %125 = tpu.matmul %79, %5, %cst_36 {dimension_numbers = #tpu.dot_dimension_numbers<[1], [0], [0], [1], [0, 0, 1, 1], [], []>} : vector<2x64xf32>, vector<64x256xf32>, vector<2x256xf32> -> vector<2x256xf32>
    %126 = arith.addf %124, %125 : vector<2x256xf32>
    %127 = arith.addf %126, %14 : vector<2x256xf32>
    %128 = vector.extract_strided_slice %127 {offsets = [0, 0], sizes = [2, 192], strides = [1, 1]} : vector<2x256xf32> to vector<2x192xf32>
    %129 = arith.negf %128 : vector<2x192xf32>
    %130 = math.exp %129 : vector<2x192xf32>
    %cst_37 = arith.constant 1.000000e+00 : f32
    %131 = vector.broadcast %cst_37 : f32 to vector<2x192xf32>
    %132 = arith.addf %131, %130 : vector<2x192xf32>
    %133 = arith.divf %131, %132 : vector<2x192xf32>
    %134 = vector.extract_strided_slice %133 {offsets = [0, 0], sizes = [2, 64], strides = [1, 1]} : vector<2x192xf32> to vector<2x64xf32>
    %135 = vector.extract_strided_slice %133 {offsets = [0, 64], sizes = [2, 64], strides = [1, 1]} : vector<2x192xf32> to vector<2x64xf32>
    %136 = vector.extract_strided_slice %133 {offsets = [0, 128], sizes = [2, 64], strides = [1, 1]} : vector<2x192xf32> to vector<2x64xf32>
    %137 = vector.extract_strided_slice %127 {offsets = [0, 192], sizes = [2, 64], strides = [1, 1]} : vector<2x256xf32> to vector<2x64xf32>
    %138 = math.tanh %137 : vector<2x64xf32>
    %139 = arith.mulf %135, %77 : vector<2x64xf32>
    %140 = arith.mulf %134, %138 : vector<2x64xf32>
    %141 = arith.addf %139, %140 : vector<2x64xf32>
    %142 = math.tanh %141 : vector<2x64xf32>
    %143 = arith.mulf %136, %142 : vector<2x64xf32>
    %c2 = arith.constant 2 : index
    %c0_38 = arith.constant 0 : index
    %c0_39 = arith.constant 0 : index
    %144 = vector.load %arg0[%c2, %c0_38, %c0_39] : memref<8x2x1xf32, #tpu.memory_space<vmem>>, vector<1x2x1xf32>
    %145 = vector.shape_cast %144 : vector<1x2x1xf32> to vector<2x1xf32>
    %146 = vector.broadcast %145 : vector<2x1xf32> to vector<2x256xf32>
    %147 = vector.broadcast %0 : vector<1x256xf32> to vector<2x256xf32>
    %148 = arith.mulf %146, %147 : vector<2x256xf32>
    %cst_40 = arith.constant dense<0.000000e+00> : vector<2x256xf32>
    %149 = tpu.matmul %103, %1, %cst_40 {dimension_numbers = #tpu.dot_dimension_numbers<[1], [0], [0], [1], [0, 0, 1, 1], [], []>} : vector<2x64xf32>, vector<64x256xf32>, vector<2x256xf32> -> vector<2x256xf32>
    %150 = arith.addf %148, %149 : vector<2x256xf32>
    %151 = arith.addf %150, %8 : vector<2x256xf32>
    %152 = vector.extract_strided_slice %151 {offsets = [0, 0], sizes = [2, 192], strides = [1, 1]} : vector<2x256xf32> to vector<2x192xf32>
    %153 = arith.negf %152 : vector<2x192xf32>
    %154 = math.exp %153 : vector<2x192xf32>
    %cst_41 = arith.constant 1.000000e+00 : f32
    %155 = vector.broadcast %cst_41 : f32 to vector<2x192xf32>
    %156 = arith.addf %155, %154 : vector<2x192xf32>
    %157 = arith.divf %155, %156 : vector<2x192xf32>
    %158 = vector.extract_strided_slice %157 {offsets = [0, 0], sizes = [2, 64], strides = [1, 1]} : vector<2x192xf32> to vector<2x64xf32>
    %159 = vector.extract_strided_slice %157 {offsets = [0, 64], sizes = [2, 64], strides = [1, 1]} : vector<2x192xf32> to vector<2x64xf32>
    %160 = vector.extract_strided_slice %157 {offsets = [0, 128], sizes = [2, 64], strides = [1, 1]} : vector<2x192xf32> to vector<2x64xf32>
    %161 = vector.extract_strided_slice %151 {offsets = [0, 192], sizes = [2, 64], strides = [1, 1]} : vector<2x256xf32> to vector<2x64xf32>
    %162 = math.tanh %161 : vector<2x64xf32>
    %163 = arith.mulf %159, %101 : vector<2x64xf32>
    %164 = arith.mulf %158, %162 : vector<2x64xf32>
    %165 = arith.addf %163, %164 : vector<2x64xf32>
    %166 = math.tanh %165 : vector<2x64xf32>
    %167 = arith.mulf %160, %166 : vector<2x64xf32>
    %cst_42 = arith.constant dense<0.000000e+00> : vector<2x256xf32>
    %168 = tpu.matmul %167, %2, %cst_42 {dimension_numbers = #tpu.dot_dimension_numbers<[1], [0], [0], [1], [0, 0, 1, 1], [], []>} : vector<2x64xf32>, vector<64x256xf32>, vector<2x256xf32> -> vector<2x256xf32>
    %cst_43 = arith.constant dense<0.000000e+00> : vector<2x256xf32>
    %169 = tpu.matmul %123, %3, %cst_43 {dimension_numbers = #tpu.dot_dimension_numbers<[1], [0], [0], [1], [0, 0, 1, 1], [], []>} : vector<2x64xf32>, vector<64x256xf32>, vector<2x256xf32> -> vector<2x256xf32>
    %170 = arith.addf %168, %169 : vector<2x256xf32>
    %171 = arith.addf %170, %11 : vector<2x256xf32>
    %172 = vector.extract_strided_slice %171 {offsets = [0, 0], sizes = [2, 192], strides = [1, 1]} : vector<2x256xf32> to vector<2x192xf32>
    %173 = arith.negf %172 : vector<2x192xf32>
    %174 = math.exp %173 : vector<2x192xf32>
    %cst_44 = arith.constant 1.000000e+00 : f32
    %175 = vector.broadcast %cst_44 : f32 to vector<2x192xf32>
    %176 = arith.addf %175, %174 : vector<2x192xf32>
    %177 = arith.divf %175, %176 : vector<2x192xf32>
    %178 = vector.extract_strided_slice %177 {offsets = [0, 0], sizes = [2, 64], strides = [1, 1]} : vector<2x192xf32> to vector<2x64xf32>
    %179 = vector.extract_strided_slice %177 {offsets = [0, 64], sizes = [2, 64], strides = [1, 1]} : vector<2x192xf32> to vector<2x64xf32>
    %180 = vector.extract_strided_slice %177 {offsets = [0, 128], sizes = [2, 64], strides = [1, 1]} : vector<2x192xf32> to vector<2x64xf32>
    %181 = vector.extract_strided_slice %171 {offsets = [0, 192], sizes = [2, 64], strides = [1, 1]} : vector<2x256xf32> to vector<2x64xf32>
    %182 = math.tanh %181 : vector<2x64xf32>
    %183 = arith.mulf %179, %121 : vector<2x64xf32>
    %184 = arith.mulf %178, %182 : vector<2x64xf32>
    %185 = arith.addf %183, %184 : vector<2x64xf32>
    %186 = math.tanh %185 : vector<2x64xf32>
    %187 = arith.mulf %180, %186 : vector<2x64xf32>
    %cst_45 = arith.constant dense<0.000000e+00> : vector<2x256xf32>
    %188 = tpu.matmul %187, %4, %cst_45 {dimension_numbers = #tpu.dot_dimension_numbers<[1], [0], [0], [1], [0, 0, 1, 1], [], []>} : vector<2x64xf32>, vector<64x256xf32>, vector<2x256xf32> -> vector<2x256xf32>
    %cst_46 = arith.constant dense<0.000000e+00> : vector<2x256xf32>
    %189 = tpu.matmul %143, %5, %cst_46 {dimension_numbers = #tpu.dot_dimension_numbers<[1], [0], [0], [1], [0, 0, 1, 1], [], []>} : vector<2x64xf32>, vector<64x256xf32>, vector<2x256xf32> -> vector<2x256xf32>
    %190 = arith.addf %188, %189 : vector<2x256xf32>
    %191 = arith.addf %190, %14 : vector<2x256xf32>
    %192 = vector.extract_strided_slice %191 {offsets = [0, 0], sizes = [2, 192], strides = [1, 1]} : vector<2x256xf32> to vector<2x192xf32>
    %193 = arith.negf %192 : vector<2x192xf32>
    %194 = math.exp %193 : vector<2x192xf32>
    %cst_47 = arith.constant 1.000000e+00 : f32
    %195 = vector.broadcast %cst_47 : f32 to vector<2x192xf32>
    %196 = arith.addf %195, %194 : vector<2x192xf32>
    %197 = arith.divf %195, %196 : vector<2x192xf32>
    %198 = vector.extract_strided_slice %197 {offsets = [0, 0], sizes = [2, 64], strides = [1, 1]} : vector<2x192xf32> to vector<2x64xf32>
    %199 = vector.extract_strided_slice %197 {offsets = [0, 64], sizes = [2, 64], strides = [1, 1]} : vector<2x192xf32> to vector<2x64xf32>
    %200 = vector.extract_strided_slice %197 {offsets = [0, 128], sizes = [2, 64], strides = [1, 1]} : vector<2x192xf32> to vector<2x64xf32>
    %201 = vector.extract_strided_slice %191 {offsets = [0, 192], sizes = [2, 64], strides = [1, 1]} : vector<2x256xf32> to vector<2x64xf32>
    %202 = math.tanh %201 : vector<2x64xf32>
    %203 = arith.mulf %199, %141 : vector<2x64xf32>
    %204 = arith.mulf %198, %202 : vector<2x64xf32>
    %205 = arith.addf %203, %204 : vector<2x64xf32>
    %206 = math.tanh %205 : vector<2x64xf32>
    %207 = arith.mulf %200, %206 : vector<2x64xf32>
    %c3 = arith.constant 3 : index
    %c0_48 = arith.constant 0 : index
    %c0_49 = arith.constant 0 : index
    %208 = vector.load %arg0[%c3, %c0_48, %c0_49] : memref<8x2x1xf32, #tpu.memory_space<vmem>>, vector<1x2x1xf32>
    %209 = vector.shape_cast %208 : vector<1x2x1xf32> to vector<2x1xf32>
    %210 = vector.broadcast %209 : vector<2x1xf32> to vector<2x256xf32>
    %211 = vector.broadcast %0 : vector<1x256xf32> to vector<2x256xf32>
    %212 = arith.mulf %210, %211 : vector<2x256xf32>
    %cst_50 = arith.constant dense<0.000000e+00> : vector<2x256xf32>
    %213 = tpu.matmul %167, %1, %cst_50 {dimension_numbers = #tpu.dot_dimension_numbers<[1], [0], [0], [1], [0, 0, 1, 1], [], []>} : vector<2x64xf32>, vector<64x256xf32>, vector<2x256xf32> -> vector<2x256xf32>
    %214 = arith.addf %212, %213 : vector<2x256xf32>
    %215 = arith.addf %214, %8 : vector<2x256xf32>
    %216 = vector.extract_strided_slice %215 {offsets = [0, 0], sizes = [2, 192], strides = [1, 1]} : vector<2x256xf32> to vector<2x192xf32>
    %217 = arith.negf %216 : vector<2x192xf32>
    %218 = math.exp %217 : vector<2x192xf32>
    %cst_51 = arith.constant 1.000000e+00 : f32
    %219 = vector.broadcast %cst_51 : f32 to vector<2x192xf32>
    %220 = arith.addf %219, %218 : vector<2x192xf32>
    %221 = arith.divf %219, %220 : vector<2x192xf32>
    %222 = vector.extract_strided_slice %221 {offsets = [0, 0], sizes = [2, 64], strides = [1, 1]} : vector<2x192xf32> to vector<2x64xf32>
    %223 = vector.extract_strided_slice %221 {offsets = [0, 64], sizes = [2, 64], strides = [1, 1]} : vector<2x192xf32> to vector<2x64xf32>
    %224 = vector.extract_strided_slice %221 {offsets = [0, 128], sizes = [2, 64], strides = [1, 1]} : vector<2x192xf32> to vector<2x64xf32>
    %225 = vector.extract_strided_slice %215 {offsets = [0, 192], sizes = [2, 64], strides = [1, 1]} : vector<2x256xf32> to vector<2x64xf32>
    %226 = math.tanh %225 : vector<2x64xf32>
    %227 = arith.mulf %223, %165 : vector<2x64xf32>
    %228 = arith.mulf %222, %226 : vector<2x64xf32>
    %229 = arith.addf %227, %228 : vector<2x64xf32>
    %230 = math.tanh %229 : vector<2x64xf32>
    %231 = arith.mulf %224, %230 : vector<2x64xf32>
    %cst_52 = arith.constant dense<0.000000e+00> : vector<2x256xf32>
    %232 = tpu.matmul %231, %2, %cst_52 {dimension_numbers = #tpu.dot_dimension_numbers<[1], [0], [0], [1], [0, 0, 1, 1], [], []>} : vector<2x64xf32>, vector<64x256xf32>, vector<2x256xf32> -> vector<2x256xf32>
    %cst_53 = arith.constant dense<0.000000e+00> : vector<2x256xf32>
    %233 = tpu.matmul %187, %3, %cst_53 {dimension_numbers = #tpu.dot_dimension_numbers<[1], [0], [0], [1], [0, 0, 1, 1], [], []>} : vector<2x64xf32>, vector<64x256xf32>, vector<2x256xf32> -> vector<2x256xf32>
    %234 = arith.addf %232, %233 : vector<2x256xf32>
    %235 = arith.addf %234, %11 : vector<2x256xf32>
    %236 = vector.extract_strided_slice %235 {offsets = [0, 0], sizes = [2, 192], strides = [1, 1]} : vector<2x256xf32> to vector<2x192xf32>
    %237 = arith.negf %236 : vector<2x192xf32>
    %238 = math.exp %237 : vector<2x192xf32>
    %cst_54 = arith.constant 1.000000e+00 : f32
    %239 = vector.broadcast %cst_54 : f32 to vector<2x192xf32>
    %240 = arith.addf %239, %238 : vector<2x192xf32>
    %241 = arith.divf %239, %240 : vector<2x192xf32>
    %242 = vector.extract_strided_slice %241 {offsets = [0, 0], sizes = [2, 64], strides = [1, 1]} : vector<2x192xf32> to vector<2x64xf32>
    %243 = vector.extract_strided_slice %241 {offsets = [0, 64], sizes = [2, 64], strides = [1, 1]} : vector<2x192xf32> to vector<2x64xf32>
    %244 = vector.extract_strided_slice %241 {offsets = [0, 128], sizes = [2, 64], strides = [1, 1]} : vector<2x192xf32> to vector<2x64xf32>
    %245 = vector.extract_strided_slice %235 {offsets = [0, 192], sizes = [2, 64], strides = [1, 1]} : vector<2x256xf32> to vector<2x64xf32>
    %246 = math.tanh %245 : vector<2x64xf32>
    %247 = arith.mulf %243, %185 : vector<2x64xf32>
    %248 = arith.mulf %242, %246 : vector<2x64xf32>
    %249 = arith.addf %247, %248 : vector<2x64xf32>
    %250 = math.tanh %249 : vector<2x64xf32>
    %251 = arith.mulf %244, %250 : vector<2x64xf32>
    %cst_55 = arith.constant dense<0.000000e+00> : vector<2x256xf32>
    %252 = tpu.matmul %251, %4, %cst_55 {dimension_numbers = #tpu.dot_dimension_numbers<[1], [0], [0], [1], [0, 0, 1, 1], [], []>} : vector<2x64xf32>, vector<64x256xf32>, vector<2x256xf32> -> vector<2x256xf32>
    %cst_56 = arith.constant dense<0.000000e+00> : vector<2x256xf32>
    %253 = tpu.matmul %207, %5, %cst_56 {dimension_numbers = #tpu.dot_dimension_numbers<[1], [0], [0], [1], [0, 0, 1, 1], [], []>} : vector<2x64xf32>, vector<64x256xf32>, vector<2x256xf32> -> vector<2x256xf32>
    %254 = arith.addf %252, %253 : vector<2x256xf32>
    %255 = arith.addf %254, %14 : vector<2x256xf32>
    %256 = vector.extract_strided_slice %255 {offsets = [0, 0], sizes = [2, 192], strides = [1, 1]} : vector<2x256xf32> to vector<2x192xf32>
    %257 = arith.negf %256 : vector<2x192xf32>
    %258 = math.exp %257 : vector<2x192xf32>
    %cst_57 = arith.constant 1.000000e+00 : f32
    %259 = vector.broadcast %cst_57 : f32 to vector<2x192xf32>
    %260 = arith.addf %259, %258 : vector<2x192xf32>
    %261 = arith.divf %259, %260 : vector<2x192xf32>
    %262 = vector.extract_strided_slice %261 {offsets = [0, 0], sizes = [2, 64], strides = [1, 1]} : vector<2x192xf32> to vector<2x64xf32>
    %263 = vector.extract_strided_slice %261 {offsets = [0, 64], sizes = [2, 64], strides = [1, 1]} : vector<2x192xf32> to vector<2x64xf32>
    %264 = vector.extract_strided_slice %261 {offsets = [0, 128], sizes = [2, 64], strides = [1, 1]} : vector<2x192xf32> to vector<2x64xf32>
    %265 = vector.extract_strided_slice %255 {offsets = [0, 192], sizes = [2, 64], strides = [1, 1]} : vector<2x256xf32> to vector<2x64xf32>
    %266 = math.tanh %265 : vector<2x64xf32>
    %267 = arith.mulf %263, %205 : vector<2x64xf32>
    %268 = arith.mulf %262, %266 : vector<2x64xf32>
    %269 = arith.addf %267, %268 : vector<2x64xf32>
    %270 = math.tanh %269 : vector<2x64xf32>
    %271 = arith.mulf %264, %270 : vector<2x64xf32>
    %c4 = arith.constant 4 : index
    %c0_58 = arith.constant 0 : index
    %c0_59 = arith.constant 0 : index
    %272 = vector.load %arg0[%c4, %c0_58, %c0_59] : memref<8x2x1xf32, #tpu.memory_space<vmem>>, vector<1x2x1xf32>
    %273 = vector.shape_cast %272 : vector<1x2x1xf32> to vector<2x1xf32>
    %274 = vector.broadcast %273 : vector<2x1xf32> to vector<2x256xf32>
    %275 = vector.broadcast %0 : vector<1x256xf32> to vector<2x256xf32>
    %276 = arith.mulf %274, %275 : vector<2x256xf32>
    %cst_60 = arith.constant dense<0.000000e+00> : vector<2x256xf32>
    %277 = tpu.matmul %231, %1, %cst_60 {dimension_numbers = #tpu.dot_dimension_numbers<[1], [0], [0], [1], [0, 0, 1, 1], [], []>} : vector<2x64xf32>, vector<64x256xf32>, vector<2x256xf32> -> vector<2x256xf32>
    %278 = arith.addf %276, %277 : vector<2x256xf32>
    %279 = arith.addf %278, %8 : vector<2x256xf32>
    %280 = vector.extract_strided_slice %279 {offsets = [0, 0], sizes = [2, 192], strides = [1, 1]} : vector<2x256xf32> to vector<2x192xf32>
    %281 = arith.negf %280 : vector<2x192xf32>
    %282 = math.exp %281 : vector<2x192xf32>
    %cst_61 = arith.constant 1.000000e+00 : f32
    %283 = vector.broadcast %cst_61 : f32 to vector<2x192xf32>
    %284 = arith.addf %283, %282 : vector<2x192xf32>
    %285 = arith.divf %283, %284 : vector<2x192xf32>
    %286 = vector.extract_strided_slice %285 {offsets = [0, 0], sizes = [2, 64], strides = [1, 1]} : vector<2x192xf32> to vector<2x64xf32>
    %287 = vector.extract_strided_slice %285 {offsets = [0, 64], sizes = [2, 64], strides = [1, 1]} : vector<2x192xf32> to vector<2x64xf32>
    %288 = vector.extract_strided_slice %285 {offsets = [0, 128], sizes = [2, 64], strides = [1, 1]} : vector<2x192xf32> to vector<2x64xf32>
    %289 = vector.extract_strided_slice %279 {offsets = [0, 192], sizes = [2, 64], strides = [1, 1]} : vector<2x256xf32> to vector<2x64xf32>
    %290 = math.tanh %289 : vector<2x64xf32>
    %291 = arith.mulf %287, %229 : vector<2x64xf32>
    %292 = arith.mulf %286, %290 : vector<2x64xf32>
    %293 = arith.addf %291, %292 : vector<2x64xf32>
    %294 = math.tanh %293 : vector<2x64xf32>
    %295 = arith.mulf %288, %294 : vector<2x64xf32>
    %cst_62 = arith.constant dense<0.000000e+00> : vector<2x256xf32>
    %296 = tpu.matmul %295, %2, %cst_62 {dimension_numbers = #tpu.dot_dimension_numbers<[1], [0], [0], [1], [0, 0, 1, 1], [], []>} : vector<2x64xf32>, vector<64x256xf32>, vector<2x256xf32> -> vector<2x256xf32>
    %cst_63 = arith.constant dense<0.000000e+00> : vector<2x256xf32>
    %297 = tpu.matmul %251, %3, %cst_63 {dimension_numbers = #tpu.dot_dimension_numbers<[1], [0], [0], [1], [0, 0, 1, 1], [], []>} : vector<2x64xf32>, vector<64x256xf32>, vector<2x256xf32> -> vector<2x256xf32>
    %298 = arith.addf %296, %297 : vector<2x256xf32>
    %299 = arith.addf %298, %11 : vector<2x256xf32>
    %300 = vector.extract_strided_slice %299 {offsets = [0, 0], sizes = [2, 192], strides = [1, 1]} : vector<2x256xf32> to vector<2x192xf32>
    %301 = arith.negf %300 : vector<2x192xf32>
    %302 = math.exp %301 : vector<2x192xf32>
    %cst_64 = arith.constant 1.000000e+00 : f32
    %303 = vector.broadcast %cst_64 : f32 to vector<2x192xf32>
    %304 = arith.addf %303, %302 : vector<2x192xf32>
    %305 = arith.divf %303, %304 : vector<2x192xf32>
    %306 = vector.extract_strided_slice %305 {offsets = [0, 0], sizes = [2, 64], strides = [1, 1]} : vector<2x192xf32> to vector<2x64xf32>
    %307 = vector.extract_strided_slice %305 {offsets = [0, 64], sizes = [2, 64], strides = [1, 1]} : vector<2x192xf32> to vector<2x64xf32>
    %308 = vector.extract_strided_slice %305 {offsets = [0, 128], sizes = [2, 64], strides = [1, 1]} : vector<2x192xf32> to vector<2x64xf32>
    %309 = vector.extract_strided_slice %299 {offsets = [0, 192], sizes = [2, 64], strides = [1, 1]} : vector<2x256xf32> to vector<2x64xf32>
    %310 = math.tanh %309 : vector<2x64xf32>
    %311 = arith.mulf %307, %249 : vector<2x64xf32>
    %312 = arith.mulf %306, %310 : vector<2x64xf32>
    %313 = arith.addf %311, %312 : vector<2x64xf32>
    %314 = math.tanh %313 : vector<2x64xf32>
    %315 = arith.mulf %308, %314 : vector<2x64xf32>
    %cst_65 = arith.constant dense<0.000000e+00> : vector<2x256xf32>
    %316 = tpu.matmul %315, %4, %cst_65 {dimension_numbers = #tpu.dot_dimension_numbers<[1], [0], [0], [1], [0, 0, 1, 1], [], []>} : vector<2x64xf32>, vector<64x256xf32>, vector<2x256xf32> -> vector<2x256xf32>
    %cst_66 = arith.constant dense<0.000000e+00> : vector<2x256xf32>
    %317 = tpu.matmul %271, %5, %cst_66 {dimension_numbers = #tpu.dot_dimension_numbers<[1], [0], [0], [1], [0, 0, 1, 1], [], []>} : vector<2x64xf32>, vector<64x256xf32>, vector<2x256xf32> -> vector<2x256xf32>
    %318 = arith.addf %316, %317 : vector<2x256xf32>
    %319 = arith.addf %318, %14 : vector<2x256xf32>
    %320 = vector.extract_strided_slice %319 {offsets = [0, 0], sizes = [2, 192], strides = [1, 1]} : vector<2x256xf32> to vector<2x192xf32>
    %321 = arith.negf %320 : vector<2x192xf32>
    %322 = math.exp %321 : vector<2x192xf32>
    %cst_67 = arith.constant 1.000000e+00 : f32
    %323 = vector.broadcast %cst_67 : f32 to vector<2x192xf32>
    %324 = arith.addf %323, %322 : vector<2x192xf32>
    %325 = arith.divf %323, %324 : vector<2x192xf32>
    %326 = vector.extract_strided_slice %325 {offsets = [0, 0], sizes = [2, 64], strides = [1, 1]} : vector<2x192xf32> to vector<2x64xf32>
    %327 = vector.extract_strided_slice %325 {offsets = [0, 64], sizes = [2, 64], strides = [1, 1]} : vector<2x192xf32> to vector<2x64xf32>
    %328 = vector.extract_strided_slice %325 {offsets = [0, 128], sizes = [2, 64], strides = [1, 1]} : vector<2x192xf32> to vector<2x64xf32>
    %329 = vector.extract_strided_slice %319 {offsets = [0, 192], sizes = [2, 64], strides = [1, 1]} : vector<2x256xf32> to vector<2x64xf32>
    %330 = math.tanh %329 : vector<2x64xf32>
    %331 = arith.mulf %327, %269 : vector<2x64xf32>
    %332 = arith.mulf %326, %330 : vector<2x64xf32>
    %333 = arith.addf %331, %332 : vector<2x64xf32>
    %334 = math.tanh %333 : vector<2x64xf32>
    %335 = arith.mulf %328, %334 : vector<2x64xf32>
    %c5 = arith.constant 5 : index
    %c0_68 = arith.constant 0 : index
    %c0_69 = arith.constant 0 : index
    %336 = vector.load %arg0[%c5, %c0_68, %c0_69] : memref<8x2x1xf32, #tpu.memory_space<vmem>>, vector<1x2x1xf32>
    %337 = vector.shape_cast %336 : vector<1x2x1xf32> to vector<2x1xf32>
    %338 = vector.broadcast %337 : vector<2x1xf32> to vector<2x256xf32>
    %339 = vector.broadcast %0 : vector<1x256xf32> to vector<2x256xf32>
    %340 = arith.mulf %338, %339 : vector<2x256xf32>
    %cst_70 = arith.constant dense<0.000000e+00> : vector<2x256xf32>
    %341 = tpu.matmul %295, %1, %cst_70 {dimension_numbers = #tpu.dot_dimension_numbers<[1], [0], [0], [1], [0, 0, 1, 1], [], []>} : vector<2x64xf32>, vector<64x256xf32>, vector<2x256xf32> -> vector<2x256xf32>
    %342 = arith.addf %340, %341 : vector<2x256xf32>
    %343 = arith.addf %342, %8 : vector<2x256xf32>
    %344 = vector.extract_strided_slice %343 {offsets = [0, 0], sizes = [2, 192], strides = [1, 1]} : vector<2x256xf32> to vector<2x192xf32>
    %345 = arith.negf %344 : vector<2x192xf32>
    %346 = math.exp %345 : vector<2x192xf32>
    %cst_71 = arith.constant 1.000000e+00 : f32
    %347 = vector.broadcast %cst_71 : f32 to vector<2x192xf32>
    %348 = arith.addf %347, %346 : vector<2x192xf32>
    %349 = arith.divf %347, %348 : vector<2x192xf32>
    %350 = vector.extract_strided_slice %349 {offsets = [0, 0], sizes = [2, 64], strides = [1, 1]} : vector<2x192xf32> to vector<2x64xf32>
    %351 = vector.extract_strided_slice %349 {offsets = [0, 64], sizes = [2, 64], strides = [1, 1]} : vector<2x192xf32> to vector<2x64xf32>
    %352 = vector.extract_strided_slice %349 {offsets = [0, 128], sizes = [2, 64], strides = [1, 1]} : vector<2x192xf32> to vector<2x64xf32>
    %353 = vector.extract_strided_slice %343 {offsets = [0, 192], sizes = [2, 64], strides = [1, 1]} : vector<2x256xf32> to vector<2x64xf32>
    %354 = math.tanh %353 : vector<2x64xf32>
    %355 = arith.mulf %351, %293 : vector<2x64xf32>
    %356 = arith.mulf %350, %354 : vector<2x64xf32>
    %357 = arith.addf %355, %356 : vector<2x64xf32>
    %358 = math.tanh %357 : vector<2x64xf32>
    %359 = arith.mulf %352, %358 : vector<2x64xf32>
    %cst_72 = arith.constant dense<0.000000e+00> : vector<2x256xf32>
    %360 = tpu.matmul %359, %2, %cst_72 {dimension_numbers = #tpu.dot_dimension_numbers<[1], [0], [0], [1], [0, 0, 1, 1], [], []>} : vector<2x64xf32>, vector<64x256xf32>, vector<2x256xf32> -> vector<2x256xf32>
    %cst_73 = arith.constant dense<0.000000e+00> : vector<2x256xf32>
    %361 = tpu.matmul %315, %3, %cst_73 {dimension_numbers = #tpu.dot_dimension_numbers<[1], [0], [0], [1], [0, 0, 1, 1], [], []>} : vector<2x64xf32>, vector<64x256xf32>, vector<2x256xf32> -> vector<2x256xf32>
    %362 = arith.addf %360, %361 : vector<2x256xf32>
    %363 = arith.addf %362, %11 : vector<2x256xf32>
    %364 = vector.extract_strided_slice %363 {offsets = [0, 0], sizes = [2, 192], strides = [1, 1]} : vector<2x256xf32> to vector<2x192xf32>
    %365 = arith.negf %364 : vector<2x192xf32>
    %366 = math.exp %365 : vector<2x192xf32>
    %cst_74 = arith.constant 1.000000e+00 : f32
    %367 = vector.broadcast %cst_74 : f32 to vector<2x192xf32>
    %368 = arith.addf %367, %366 : vector<2x192xf32>
    %369 = arith.divf %367, %368 : vector<2x192xf32>
    %370 = vector.extract_strided_slice %369 {offsets = [0, 0], sizes = [2, 64], strides = [1, 1]} : vector<2x192xf32> to vector<2x64xf32>
    %371 = vector.extract_strided_slice %369 {offsets = [0, 64], sizes = [2, 64], strides = [1, 1]} : vector<2x192xf32> to vector<2x64xf32>
    %372 = vector.extract_strided_slice %369 {offsets = [0, 128], sizes = [2, 64], strides = [1, 1]} : vector<2x192xf32> to vector<2x64xf32>
    %373 = vector.extract_strided_slice %363 {offsets = [0, 192], sizes = [2, 64], strides = [1, 1]} : vector<2x256xf32> to vector<2x64xf32>
    %374 = math.tanh %373 : vector<2x64xf32>
    %375 = arith.mulf %371, %313 : vector<2x64xf32>
    %376 = arith.mulf %370, %374 : vector<2x64xf32>
    %377 = arith.addf %375, %376 : vector<2x64xf32>
    %378 = math.tanh %377 : vector<2x64xf32>
    %379 = arith.mulf %372, %378 : vector<2x64xf32>
    %cst_75 = arith.constant dense<0.000000e+00> : vector<2x256xf32>
    %380 = tpu.matmul %379, %4, %cst_75 {dimension_numbers = #tpu.dot_dimension_numbers<[1], [0], [0], [1], [0, 0, 1, 1], [], []>} : vector<2x64xf32>, vector<64x256xf32>, vector<2x256xf32> -> vector<2x256xf32>
    %cst_76 = arith.constant dense<0.000000e+00> : vector<2x256xf32>
    %381 = tpu.matmul %335, %5, %cst_76 {dimension_numbers = #tpu.dot_dimension_numbers<[1], [0], [0], [1], [0, 0, 1, 1], [], []>} : vector<2x64xf32>, vector<64x256xf32>, vector<2x256xf32> -> vector<2x256xf32>
    %382 = arith.addf %380, %381 : vector<2x256xf32>
    %383 = arith.addf %382, %14 : vector<2x256xf32>
    %384 = vector.extract_strided_slice %383 {offsets = [0, 0], sizes = [2, 192], strides = [1, 1]} : vector<2x256xf32> to vector<2x192xf32>
    %385 = arith.negf %384 : vector<2x192xf32>
    %386 = math.exp %385 : vector<2x192xf32>
    %cst_77 = arith.constant 1.000000e+00 : f32
    %387 = vector.broadcast %cst_77 : f32 to vector<2x192xf32>
    %388 = arith.addf %387, %386 : vector<2x192xf32>
    %389 = arith.divf %387, %388 : vector<2x192xf32>
    %390 = vector.extract_strided_slice %389 {offsets = [0, 0], sizes = [2, 64], strides = [1, 1]} : vector<2x192xf32> to vector<2x64xf32>
    %391 = vector.extract_strided_slice %389 {offsets = [0, 64], sizes = [2, 64], strides = [1, 1]} : vector<2x192xf32> to vector<2x64xf32>
    %392 = vector.extract_strided_slice %389 {offsets = [0, 128], sizes = [2, 64], strides = [1, 1]} : vector<2x192xf32> to vector<2x64xf32>
    %393 = vector.extract_strided_slice %383 {offsets = [0, 192], sizes = [2, 64], strides = [1, 1]} : vector<2x256xf32> to vector<2x64xf32>
    %394 = math.tanh %393 : vector<2x64xf32>
    %395 = arith.mulf %391, %333 : vector<2x64xf32>
    %396 = arith.mulf %390, %394 : vector<2x64xf32>
    %397 = arith.addf %395, %396 : vector<2x64xf32>
    %398 = math.tanh %397 : vector<2x64xf32>
    %399 = arith.mulf %392, %398 : vector<2x64xf32>
    %c6 = arith.constant 6 : index
    %c0_78 = arith.constant 0 : index
    %c0_79 = arith.constant 0 : index
    %400 = vector.load %arg0[%c6, %c0_78, %c0_79] : memref<8x2x1xf32, #tpu.memory_space<vmem>>, vector<1x2x1xf32>
    %401 = vector.shape_cast %400 : vector<1x2x1xf32> to vector<2x1xf32>
    %402 = vector.broadcast %401 : vector<2x1xf32> to vector<2x256xf32>
    %403 = vector.broadcast %0 : vector<1x256xf32> to vector<2x256xf32>
    %404 = arith.mulf %402, %403 : vector<2x256xf32>
    %cst_80 = arith.constant dense<0.000000e+00> : vector<2x256xf32>
    %405 = tpu.matmul %359, %1, %cst_80 {dimension_numbers = #tpu.dot_dimension_numbers<[1], [0], [0], [1], [0, 0, 1, 1], [], []>} : vector<2x64xf32>, vector<64x256xf32>, vector<2x256xf32> -> vector<2x256xf32>
    %406 = arith.addf %404, %405 : vector<2x256xf32>
    %407 = arith.addf %406, %8 : vector<2x256xf32>
    %408 = vector.extract_strided_slice %407 {offsets = [0, 0], sizes = [2, 192], strides = [1, 1]} : vector<2x256xf32> to vector<2x192xf32>
    %409 = arith.negf %408 : vector<2x192xf32>
    %410 = math.exp %409 : vector<2x192xf32>
    %cst_81 = arith.constant 1.000000e+00 : f32
    %411 = vector.broadcast %cst_81 : f32 to vector<2x192xf32>
    %412 = arith.addf %411, %410 : vector<2x192xf32>
    %413 = arith.divf %411, %412 : vector<2x192xf32>
    %414 = vector.extract_strided_slice %413 {offsets = [0, 0], sizes = [2, 64], strides = [1, 1]} : vector<2x192xf32> to vector<2x64xf32>
    %415 = vector.extract_strided_slice %413 {offsets = [0, 64], sizes = [2, 64], strides = [1, 1]} : vector<2x192xf32> to vector<2x64xf32>
    %416 = vector.extract_strided_slice %413 {offsets = [0, 128], sizes = [2, 64], strides = [1, 1]} : vector<2x192xf32> to vector<2x64xf32>
    %417 = vector.extract_strided_slice %407 {offsets = [0, 192], sizes = [2, 64], strides = [1, 1]} : vector<2x256xf32> to vector<2x64xf32>
    %418 = math.tanh %417 : vector<2x64xf32>
    %419 = arith.mulf %415, %357 : vector<2x64xf32>
    %420 = arith.mulf %414, %418 : vector<2x64xf32>
    %421 = arith.addf %419, %420 : vector<2x64xf32>
    %422 = math.tanh %421 : vector<2x64xf32>
    %423 = arith.mulf %416, %422 : vector<2x64xf32>
    %cst_82 = arith.constant dense<0.000000e+00> : vector<2x256xf32>
    %424 = tpu.matmul %423, %2, %cst_82 {dimension_numbers = #tpu.dot_dimension_numbers<[1], [0], [0], [1], [0, 0, 1, 1], [], []>} : vector<2x64xf32>, vector<64x256xf32>, vector<2x256xf32> -> vector<2x256xf32>
    %cst_83 = arith.constant dense<0.000000e+00> : vector<2x256xf32>
    %425 = tpu.matmul %379, %3, %cst_83 {dimension_numbers = #tpu.dot_dimension_numbers<[1], [0], [0], [1], [0, 0, 1, 1], [], []>} : vector<2x64xf32>, vector<64x256xf32>, vector<2x256xf32> -> vector<2x256xf32>
    %426 = arith.addf %424, %425 : vector<2x256xf32>
    %427 = arith.addf %426, %11 : vector<2x256xf32>
    %428 = vector.extract_strided_slice %427 {offsets = [0, 0], sizes = [2, 192], strides = [1, 1]} : vector<2x256xf32> to vector<2x192xf32>
    %429 = arith.negf %428 : vector<2x192xf32>
    %430 = math.exp %429 : vector<2x192xf32>
    %cst_84 = arith.constant 1.000000e+00 : f32
    %431 = vector.broadcast %cst_84 : f32 to vector<2x192xf32>
    %432 = arith.addf %431, %430 : vector<2x192xf32>
    %433 = arith.divf %431, %432 : vector<2x192xf32>
    %434 = vector.extract_strided_slice %433 {offsets = [0, 0], sizes = [2, 64], strides = [1, 1]} : vector<2x192xf32> to vector<2x64xf32>
    %435 = vector.extract_strided_slice %433 {offsets = [0, 64], sizes = [2, 64], strides = [1, 1]} : vector<2x192xf32> to vector<2x64xf32>
    %436 = vector.extract_strided_slice %433 {offsets = [0, 128], sizes = [2, 64], strides = [1, 1]} : vector<2x192xf32> to vector<2x64xf32>
    %437 = vector.extract_strided_slice %427 {offsets = [0, 192], sizes = [2, 64], strides = [1, 1]} : vector<2x256xf32> to vector<2x64xf32>
    %438 = math.tanh %437 : vector<2x64xf32>
    %439 = arith.mulf %435, %377 : vector<2x64xf32>
    %440 = arith.mulf %434, %438 : vector<2x64xf32>
    %441 = arith.addf %439, %440 : vector<2x64xf32>
    %442 = math.tanh %441 : vector<2x64xf32>
    %443 = arith.mulf %436, %442 : vector<2x64xf32>
    %cst_85 = arith.constant dense<0.000000e+00> : vector<2x256xf32>
    %444 = tpu.matmul %443, %4, %cst_85 {dimension_numbers = #tpu.dot_dimension_numbers<[1], [0], [0], [1], [0, 0, 1, 1], [], []>} : vector<2x64xf32>, vector<64x256xf32>, vector<2x256xf32> -> vector<2x256xf32>
    %cst_86 = arith.constant dense<0.000000e+00> : vector<2x256xf32>
    %445 = tpu.matmul %399, %5, %cst_86 {dimension_numbers = #tpu.dot_dimension_numbers<[1], [0], [0], [1], [0, 0, 1, 1], [], []>} : vector<2x64xf32>, vector<64x256xf32>, vector<2x256xf32> -> vector<2x256xf32>
    %446 = arith.addf %444, %445 : vector<2x256xf32>
    %447 = arith.addf %446, %14 : vector<2x256xf32>
    %448 = vector.extract_strided_slice %447 {offsets = [0, 0], sizes = [2, 192], strides = [1, 1]} : vector<2x256xf32> to vector<2x192xf32>
    %449 = arith.negf %448 : vector<2x192xf32>
    %450 = math.exp %449 : vector<2x192xf32>
    %cst_87 = arith.constant 1.000000e+00 : f32
    %451 = vector.broadcast %cst_87 : f32 to vector<2x192xf32>
    %452 = arith.addf %451, %450 : vector<2x192xf32>
    %453 = arith.divf %451, %452 : vector<2x192xf32>
    %454 = vector.extract_strided_slice %453 {offsets = [0, 0], sizes = [2, 64], strides = [1, 1]} : vector<2x192xf32> to vector<2x64xf32>
    %455 = vector.extract_strided_slice %453 {offsets = [0, 64], sizes = [2, 64], strides = [1, 1]} : vector<2x192xf32> to vector<2x64xf32>
    %456 = vector.extract_strided_slice %453 {offsets = [0, 128], sizes = [2, 64], strides = [1, 1]} : vector<2x192xf32> to vector<2x64xf32>
    %457 = vector.extract_strided_slice %447 {offsets = [0, 192], sizes = [2, 64], strides = [1, 1]} : vector<2x256xf32> to vector<2x64xf32>
    %458 = math.tanh %457 : vector<2x64xf32>
    %459 = arith.mulf %455, %397 : vector<2x64xf32>
    %460 = arith.mulf %454, %458 : vector<2x64xf32>
    %461 = arith.addf %459, %460 : vector<2x64xf32>
    %462 = math.tanh %461 : vector<2x64xf32>
    %463 = arith.mulf %456, %462 : vector<2x64xf32>
    %c7 = arith.constant 7 : index
    %c0_88 = arith.constant 0 : index
    %c0_89 = arith.constant 0 : index
    %464 = vector.load %arg0[%c7, %c0_88, %c0_89] : memref<8x2x1xf32, #tpu.memory_space<vmem>>, vector<1x2x1xf32>
    %465 = vector.shape_cast %464 : vector<1x2x1xf32> to vector<2x1xf32>
    %466 = vector.broadcast %465 : vector<2x1xf32> to vector<2x256xf32>
    %467 = vector.broadcast %0 : vector<1x256xf32> to vector<2x256xf32>
    %468 = arith.mulf %466, %467 : vector<2x256xf32>
    %cst_90 = arith.constant dense<0.000000e+00> : vector<2x256xf32>
    %469 = tpu.matmul %423, %1, %cst_90 {dimension_numbers = #tpu.dot_dimension_numbers<[1], [0], [0], [1], [0, 0, 1, 1], [], []>} : vector<2x64xf32>, vector<64x256xf32>, vector<2x256xf32> -> vector<2x256xf32>
    %470 = arith.addf %468, %469 : vector<2x256xf32>
    %471 = arith.addf %470, %8 : vector<2x256xf32>
    %472 = vector.extract_strided_slice %471 {offsets = [0, 0], sizes = [2, 192], strides = [1, 1]} : vector<2x256xf32> to vector<2x192xf32>
    %473 = arith.negf %472 : vector<2x192xf32>
    %474 = math.exp %473 : vector<2x192xf32>
    %cst_91 = arith.constant 1.000000e+00 : f32
    %475 = vector.broadcast %cst_91 : f32 to vector<2x192xf32>
    %476 = arith.addf %475, %474 : vector<2x192xf32>
    %477 = arith.divf %475, %476 : vector<2x192xf32>
    %478 = vector.extract_strided_slice %477 {offsets = [0, 0], sizes = [2, 64], strides = [1, 1]} : vector<2x192xf32> to vector<2x64xf32>
    %479 = vector.extract_strided_slice %477 {offsets = [0, 64], sizes = [2, 64], strides = [1, 1]} : vector<2x192xf32> to vector<2x64xf32>
    %480 = vector.extract_strided_slice %477 {offsets = [0, 128], sizes = [2, 64], strides = [1, 1]} : vector<2x192xf32> to vector<2x64xf32>
    %481 = vector.extract_strided_slice %471 {offsets = [0, 192], sizes = [2, 64], strides = [1, 1]} : vector<2x256xf32> to vector<2x64xf32>
    %482 = math.tanh %481 : vector<2x64xf32>
    %483 = arith.mulf %479, %421 : vector<2x64xf32>
    %484 = arith.mulf %478, %482 : vector<2x64xf32>
    %485 = arith.addf %483, %484 : vector<2x64xf32>
    %486 = math.tanh %485 : vector<2x64xf32>
    %487 = arith.mulf %480, %486 : vector<2x64xf32>
    %cst_92 = arith.constant dense<0.000000e+00> : vector<2x256xf32>
    %488 = tpu.matmul %487, %2, %cst_92 {dimension_numbers = #tpu.dot_dimension_numbers<[1], [0], [0], [1], [0, 0, 1, 1], [], []>} : vector<2x64xf32>, vector<64x256xf32>, vector<2x256xf32> -> vector<2x256xf32>
    %cst_93 = arith.constant dense<0.000000e+00> : vector<2x256xf32>
    %489 = tpu.matmul %443, %3, %cst_93 {dimension_numbers = #tpu.dot_dimension_numbers<[1], [0], [0], [1], [0, 0, 1, 1], [], []>} : vector<2x64xf32>, vector<64x256xf32>, vector<2x256xf32> -> vector<2x256xf32>
    %490 = arith.addf %488, %489 : vector<2x256xf32>
    %491 = arith.addf %490, %11 : vector<2x256xf32>
    %492 = vector.extract_strided_slice %491 {offsets = [0, 0], sizes = [2, 192], strides = [1, 1]} : vector<2x256xf32> to vector<2x192xf32>
    %493 = arith.negf %492 : vector<2x192xf32>
    %494 = math.exp %493 : vector<2x192xf32>
    %cst_94 = arith.constant 1.000000e+00 : f32
    %495 = vector.broadcast %cst_94 : f32 to vector<2x192xf32>
    %496 = arith.addf %495, %494 : vector<2x192xf32>
    %497 = arith.divf %495, %496 : vector<2x192xf32>
    %498 = vector.extract_strided_slice %497 {offsets = [0, 0], sizes = [2, 64], strides = [1, 1]} : vector<2x192xf32> to vector<2x64xf32>
    %499 = vector.extract_strided_slice %497 {offsets = [0, 64], sizes = [2, 64], strides = [1, 1]} : vector<2x192xf32> to vector<2x64xf32>
    %500 = vector.extract_strided_slice %497 {offsets = [0, 128], sizes = [2, 64], strides = [1, 1]} : vector<2x192xf32> to vector<2x64xf32>
    %501 = vector.extract_strided_slice %491 {offsets = [0, 192], sizes = [2, 64], strides = [1, 1]} : vector<2x256xf32> to vector<2x64xf32>
    %502 = math.tanh %501 : vector<2x64xf32>
    %503 = arith.mulf %499, %441 : vector<2x64xf32>
    %504 = arith.mulf %498, %502 : vector<2x64xf32>
    %505 = arith.addf %503, %504 : vector<2x64xf32>
    %506 = math.tanh %505 : vector<2x64xf32>
    %507 = arith.mulf %500, %506 : vector<2x64xf32>
    %cst_95 = arith.constant dense<0.000000e+00> : vector<2x256xf32>
    %508 = tpu.matmul %507, %4, %cst_95 {dimension_numbers = #tpu.dot_dimension_numbers<[1], [0], [0], [1], [0, 0, 1, 1], [], []>} : vector<2x64xf32>, vector<64x256xf32>, vector<2x256xf32> -> vector<2x256xf32>
    %cst_96 = arith.constant dense<0.000000e+00> : vector<2x256xf32>
    %509 = tpu.matmul %463, %5, %cst_96 {dimension_numbers = #tpu.dot_dimension_numbers<[1], [0], [0], [1], [0, 0, 1, 1], [], []>} : vector<2x64xf32>, vector<64x256xf32>, vector<2x256xf32> -> vector<2x256xf32>
    %510 = arith.addf %508, %509 : vector<2x256xf32>
    %511 = arith.addf %510, %14 : vector<2x256xf32>
    %512 = vector.extract_strided_slice %511 {offsets = [0, 0], sizes = [2, 192], strides = [1, 1]} : vector<2x256xf32> to vector<2x192xf32>
    %513 = arith.negf %512 : vector<2x192xf32>
    %514 = math.exp %513 : vector<2x192xf32>
    %cst_97 = arith.constant 1.000000e+00 : f32
    %515 = vector.broadcast %cst_97 : f32 to vector<2x192xf32>
    %516 = arith.addf %515, %514 : vector<2x192xf32>
    %517 = arith.divf %515, %516 : vector<2x192xf32>
    %518 = vector.extract_strided_slice %517 {offsets = [0, 0], sizes = [2, 64], strides = [1, 1]} : vector<2x192xf32> to vector<2x64xf32>
    %519 = vector.extract_strided_slice %517 {offsets = [0, 64], sizes = [2, 64], strides = [1, 1]} : vector<2x192xf32> to vector<2x64xf32>
    %520 = vector.extract_strided_slice %517 {offsets = [0, 128], sizes = [2, 64], strides = [1, 1]} : vector<2x192xf32> to vector<2x64xf32>
    %521 = vector.extract_strided_slice %511 {offsets = [0, 192], sizes = [2, 64], strides = [1, 1]} : vector<2x256xf32> to vector<2x64xf32>
    %522 = math.tanh %521 : vector<2x64xf32>
    %523 = arith.mulf %519, %461 : vector<2x64xf32>
    %524 = arith.mulf %518, %522 : vector<2x64xf32>
    %525 = arith.addf %523, %524 : vector<2x64xf32>
    %526 = math.tanh %525 : vector<2x64xf32>
    %527 = arith.mulf %520, %526 : vector<2x64xf32>
    %c0_98 = arith.constant 0 : index
    %c0_99 = arith.constant 0 : index
    %528 = vector.load %arg10[%c0_98, %c0_99] : memref<64x1xf32, #tpu.memory_space<vmem>>, vector<64x1xf32>
    %cst_100 = arith.constant dense<0.000000e+00> : vector<2x1xf32>
    %529 = tpu.matmul %527, %528, %cst_100 {dimension_numbers = #tpu.dot_dimension_numbers<[1], [0], [0], [1], [0, 0, 1, 1], [], []>} : vector<2x64xf32>, vector<64x1xf32>, vector<2x1xf32> -> vector<2x1xf32>
    %c0_101 = arith.constant 0 : index
    %c0_102 = arith.constant 0 : index
    %530 = vector.load %arg11[%c0_101, %c0_102] : memref<1x1xf32, #tpu.memory_space<vmem>>, vector<1x1xf32>
    %531 = vector.broadcast %530 : vector<1x1xf32> to vector<2x1xf32>
    %532 = arith.addf %529, %531 : vector<2x1xf32>
    %c0_103 = arith.constant 0 : index
    %c0_104 = arith.constant 0 : index
    %533 = vector.load %arg12[%c0_103, %c0_104] : memref<2x1xf32, #tpu.memory_space<vmem>>, vector<2x1xf32>
    tpu.vector_store %arg12[%c0_103, %c0_104], %532 {strides = array<i32>} : memref<2x1xf32, #tpu.memory_space<vmem>>, vector<2x1xf32>,
    return
  }
}

</mosaic_0001>

<bundles_post_ra>
// kernel: lstm_model_forward.1
= control target key start
LH: loop header
LB: loop body
LE: loop exit
PB: predicated region body
PF: predicated region fallthrough
CT: control target
= control target key end

     0   :  { %s6409_s0 = inlined_call_operand.vmem [shape: f32[8,2,1], index: 0, kind: input, shape index: {}]   ;;  %s6410_s1 = inlined_call_operand.vmem [shape: f32[1,256], index: 1, kind: input, shape index: {}]   ;;  %s6411_s2 = inlined_call_operand.hbm [shape: f32[64,256], index: 2, kind: input, shape index: {}]   ;;  %s6412_s3 = inlined_call_operand.vmem [shape: f32[1,256], index: 3, kind: input, shape index: {}]   ;;  %s6413_s4 = inlined_call_operand.hbm [shape: f32[64,256], index: 4, kind: input, shape index: {}]   ;;  %s6414_s5 = inlined_call_operand.hbm [shape: f32[64,256], index: 5, kind: input, shape index: {}]   ;;  %s6415_s6 = inlined_call_operand.vmem [shape: f32[1,256], index: 6, kind: input, shape index: {}]   ;;  %s6416_s7 = inlined_call_operand.hbm [shape: f32[64,256], index: 7, kind: input, shape index: {}]   ;;  %s6417_s8 = inlined_call_operand.hbm [shape: f32[64,256], index: 8, kind: input, shape index: {}]   ;;  %s6418_s9 = inlined_call_operand.vmem [shape: f32[1,256], index: 9, kind: input, shape index: {}]   ;;  %s6419_s10 = inlined_call_operand.vmem [shape: f32[64,1], index: 10, kind: input, shape index: {}]   ;;  %s6420_s11 = inlined_call_operand.<no memory space> [shape: f32[1,1], index: 11, kind: input, shape index: {}]   ;;  %s6421_s12 = inlined_call_operand.vmem [shape: f32[2,1], index: 12, kind: output, shape index: {}]  }
   0x1   :  { %v17_v0 = vstv %s6420_s11 }
   0x2   :  { %18 = vst [vmem:[#allocation2] sm:$0x1] %v17_v0 }
   0x3   :  { %19 = vsyncpa [#allocation4], 0 }
   0x4   :  { %20 = vsyncpa [#allocation6], 0 }
   0x5   :  { %21 = vsyncpa [#allocation9], 0  ;;  %s4793_s23 = smov [#allocation5]   ;;  %s4794_s25 = smov [#allocation8]  }
   0x6   :  { %s45_s24 = sshll.u32 %s4793_s23, 4  ;;  %s71_s26 = sshll.u32 %s4794_s25, 4  ;;  %s46_s24 = int_to_ptr.vmem [resolvable:$true] %s45_s24  ;;  %s72_s26 = int_to_ptr.vmem [resolvable:$true] %s71_s26 }
   0x7   :  { %s4695_s27 = scalar_lea.vmem %s46_s24, 2048  ;;  %p4700_p1 = scmp.lt.s32.totalorder %s46_s24, %s46_s24 }
   0x8   :  { %p4696_p0 = scmp.ne.s32.totalorder %s46_s24, %s4695_s27  ;;  %p4701_p2 = scmp.lt.s32.totalorder %s4695_s27, %s4695_s27 }
   0xa   :  { %p4702_p3 = por %p4701_p2, %p4700_p1 }
   0xc   :  { %p4703_p4 = pnand %p4702_p3, %p4696_p0 }
   0xe   :  { %4706 = shalt.err (!%p4703_p4)
}
   0xf   :  { %s4795_s28 = smov 256   ;;  %s4796_s29 = smov 16  }
  0x10   :  { %51 = dma.hbm_to_vmem [thread:$0]  %s6413_s4, 2048, %s46_s24, [#allocation6], %s4795_s28, %s4795_s28, %s4796_s29  }
  0x11   :  { %s4715_s13 = scalar_lea.vmem %s72_s26, 2048  ;;  %p4720_p6 = scmp.lt.s32.totalorder %s72_s26, %s72_s26 }
  0x12   :  { %p4716_p5 = scmp.ne.s32.totalorder %s72_s26, %s4715_s13  ;;  %p4721_p7 = scmp.lt.s32.totalorder %s4715_s13, %s4715_s13 }
  0x14   :  { %p4722_p8 = por %p4721_p7, %p4720_p6 }
  0x16   :  { %p4723_p9 = pnand %p4722_p8, %p4716_p5 }
  0x18   :  { %4726 = shalt.err (!%p4723_p9)
}
  0x19   :  { %77 = dma.hbm_to_vmem [thread:$0]  %s6416_s7, 2048, %s72_s26, [#allocation9], %s4795_s28, %s4795_s28, %s4796_s29  }
  0x1a   :  { %s4797_s16 = smov [#allocation3]   ;;  %s4798_s18 = smov [#allocation7]  }
  0x1b   :  { %s31_s17 = sshll.u32 %s4797_s16, 4  ;;  %s57_s19 = sshll.u32 %s4798_s18, 4  ;;  %s32_s17 = int_to_ptr.vmem [resolvable:$true] %s31_s17  ;;  %s58_s19 = int_to_ptr.vmem [resolvable:$true] %s57_s19 }
  0x1c   :  { %s4735_s4 = scalar_lea.vmem %s32_s17, 2048  ;;  %p4740_p11 = scmp.lt.s32.totalorder %s32_s17, %s32_s17 }
  0x1d   :  { %p4736_p10 = scmp.ne.s32.totalorder %s32_s17, %s4735_s4  ;;  %p4741_p12 = scmp.lt.s32.totalorder %s4735_s4, %s4735_s4 }
  0x1f   :  { %p4742_p13 = por %p4741_p12, %p4740_p11 }
  0x21   :  { %p4743_p0 = pnand %p4742_p13, %p4736_p10 }
  0x23   :  { %4746 = shalt.err (!%p4743_p0)
}
  0x24   :  { %37 = dma.hbm_to_vmem [thread:$0]  %s6411_s2, 2048, %s32_s17, [#allocation4], %s4795_s28, %s4795_s28, %s4796_s29  }
  0x25   :  { %s4755_s7 = scalar_lea.vmem %s58_s19, 2048  ;;  %p4760_p2 = scmp.lt.s32.totalorder %s58_s19, %s58_s19 }
  0x26   :  { %p4756_p1 = scmp.ne.s32.totalorder %s58_s19, %s4755_s7  ;;  %p4761_p3 = scmp.lt.s32.totalorder %s4755_s7, %s4755_s7 }
  0x28   :  { %p4762_p4 = por %p4761_p3, %p4760_p2 }
  0x2a   :  { %p4763_p5 = pnand %p4762_p4, %p4756_p1 }
  0x2c   :  { %4766 = shalt.err (!%p4763_p5)
}
  0x2d   :  { %63 = dma.hbm_to_vmem [thread:$0]  %s6414_s5, 2048, %s58_s19, [#allocation6], %s4795_s28, %s4795_s28, %s4796_s29  }
  0x2e   :  { %s4799_s24 = smov [#allocation10]  }
  0x2f   :  { %s83_s25 = sshll.u32 %s4799_s24, 4  ;;  %s84_s25 = int_to_ptr.vmem [resolvable:$true] %s83_s25 }
  0x30   :  { %s4775_s26 = scalar_lea.vmem %s84_s25, 2048  ;;  %p4780_p7 = scmp.lt.s32.totalorder %s84_s25, %s84_s25 }
  0x31   :  { %p4776_p6 = scmp.ne.s32.totalorder %s84_s25, %s4775_s26  ;;  %p4781_p8 = scmp.lt.s32.totalorder %s4775_s26, %s4775_s26 }
  0x33   :  { %p4782_p9 = por %p4781_p8, %p4780_p7 }
  0x35   :  { %p4783_p10 = pnand %p4782_p9, %p4776_p6 }
  0x37   :  { %4786 = shalt.err (!%p4783_p10)
}
  0x38   :  { %89 = dma.hbm_to_vmem [thread:$0]  %s6417_s8, 2048, %s84_s25, [#allocation9], %s4795_s28, %s4795_s28, %s4796_s29  }
  0x39   :  { %4787 = dma.done.wait [#allocation4], 2048  }
  0x3a   :  { %4788 = vsyncadd [#allocation4], 4294965248 }
  0x3b   :  { %4789 = dma.done.wait [#allocation6], 4096  }
  0x3c   :  { %4790 = vsyncadd [#allocation6], 4294963200 }
  0x3d   :  { %4791 = dma.done.wait [#allocation9], 4096  }
  0x3e   :  { %4792 = vsyncadd [#allocation9], 4294963200  ;;  %v6422_v1 = vmov 0.0   ;;  %v4801_v2 = vmov 0   ;;  %v4904_v3 = vld [vmem:[#allocation3 + $0x78] sm:$0xff]  ;;  %v4906_v4 = vld [vmem:[#allocation3 + $0x70] sm:$0xff]  ;;  %v194_v20 = vlaneseq }
  0x3f   :  { %315 = vmatprep.mubr.f32.mxu0 %v6422_v1  ;;  %4237 = vset.pattern.permute.xlu0 %v4801_v2  ;;  %6605 = vst [vmem:[#allocation14_spill] sm:$0xff] %v4906_v4  ;;  %v4908_v5 = vld [vmem:[#allocation3 + $0x68] sm:$0xff]  ;;  %v4911_v6 = vld [vmem:[#allocation3 + $0x60] sm:$0xff]  ;;  %v4914_v7 = vld [vmem:[#allocation3 + $0x58] sm:$0xff]  ;;  %vm247_vm0 = vcmask 523264   ;;  %vm4803_vm1 = vmmov 0  }
  0x40   :  { %420 = vmatprep.mubr.f32.mxu1 %v6422_v1  ;;  %4238 = vset.pattern.permute.xlu1 %v4801_v2  ;;  %6606 = vst [vmem:[#allocation15_spill] sm:$0xff] %v4908_v5  ;;  %6607 = vst [vmem:[#allocation16_spill] sm:$0xff] %v4911_v6  ;;  %v4917_v8 = vld [vmem:[#allocation3 + $0x50] sm:$0xff]  ;;  %v4920_v9 = vld [vmem:[#allocation3 + $0x48] sm:$0xff]  ;;  %v195_v21 = vshrl.u32 %v194_v20, 7  ;;  %vm4095_vm2 = vcmask 1024  }
  0x41   :  { %267 = vmatprep.subr.mxu0 %v4904_v3  ;;  %6608 = vst [vmem:[#allocation17_spill] sm:$0xff] %v4914_v7  ;;  %6609 = vst [vmem:[#allocation18_spill] sm:$0xff] %v4917_v8  ;;  %v4923_v10 = vld [vmem:[#allocation3 + $0x40] sm:$0xff]  ;;  %v4929_v12 = vld [vmem:[#allocation3 + $0x38] sm:$0xff] }
  0x42   :  { %268 = vmatpush1.msra.mxu0 %v4906_v4  ;;  %6610 = vst [vmem:[#allocation19_spill] sm:$0xff] %v4920_v9  ;;  %6611 = vst [vmem:[#allocation20_spill] sm:$0xff] %v4923_v10  ;;  %v228_v11 = vld [vmem:[%s6409_s0] sm:$0x3]  ;;  %v4932_v13 = vld [vmem:[#allocation3 + $0x30] sm:$0xff]  ;;  %v4957_v22 = vsub.s32 1, %v195_v21 }
  0x43   :  { %269 = vmatprep.subr.mxu0 %v4908_v5  ;;  %6612 = vst [vmem:[#allocation21_spill] sm:$0xff] %v4929_v12  ;;  %231 = vperm.xlu0 %4237, %v228_v11   ;;  %6613 = vst [vmem:[#allocation22_spill] sm:$0xff] %v4932_v13  ;;  %v4935_v14 = vld [vmem:[#allocation3 + $0x28] sm:$0xff]  ;;  %v4938_v15 = vld [vmem:[#allocation3 + $0x20] sm:$0xff]  ;;  %v4980_v35 = vsub.s32 0, %v195_v21 }
  0x44   :  { %270 = vmatpush1.msra.mxu0 %v4911_v6  ;;  %6614 = vst [vmem:[#allocation23_spill] sm:$0xff] %v4935_v14  ;;  %6615 = vst [vmem:[#allocation24_spill] sm:$0xff] %v4938_v15  ;;  %v4941_v16 = vld [vmem:[#allocation3 + $0x18] sm:$0xff]  ;;  %v4944_v17 = vld [vmem:[#allocation3 + $0x10] sm:$0xff] }
  0x45   :  { %271 = vmatprep.subr.mxu0 %v4914_v7  ;;  %6616 = vst [vmem:[#allocation25_spill] sm:$0xff] %v4941_v16  ;;  %6617 = vst [vmem:[#allocation26_spill] sm:$0xff] %v4944_v17  ;;  %v4947_v18 = vld [vmem:[#allocation3 + $0x8] sm:$0xff]  ;;  %v4950_v19 = vld [vmem:[#allocation3] sm:$0xff] }
  0x46   :  { %272 = vmatpush1.msra.mxu0 %v4917_v8  ;;  %6618 = vst [vmem:[#allocation27_spill] sm:$0xff] %v4947_v18  ;;  %6619 = vst [vmem:[#allocation28_spill] sm:$0xff] %v4950_v19  ;;  %v111_v23 = vld [vmem:[%s6410_s1] sm:$0x3]  ;;  %s4802_s1 = smov 64   ;;  %v4996_v48 = vld [vmem:[#allocation7 + $0x70] sm:$0xff] }
  0x47   :  { %273 = vmatprep.subr.mxu0 %v4920_v9  ;;  %v4963_v24 = vrot.slane %v111_v23, %v4957_v22  ;;  %v192_v27 = vld [vmem:[%s6412_s3] sm:$0x3]  ;;  %v4112_v34 = vld [vmem:[%s6409_s0 + $0x2] sm:$0x3]  ;;  %v4983_v36 = vrot.slane %v111_v23, %v4980_v35  ;;  %v4998_v49 = vld [vmem:[#allocation7 + $0x68] sm:$0xff] }
  0x48   :  { %274 = vmatpush1.msra.mxu0 %v4923_v10  ;;  %v4970_v29 = vrot.slane %v192_v27, %v4957_v22  ;;  %v4987_v38 = vrot.slane %v192_v27, %v4980_v35  ;;  %v4994_v47 = vld [vmem:[#allocation7 + $0x78] sm:$0xff]  ;;  %v5001_v50 = vld [vmem:[#allocation7 + $0x60] sm:$0xff]  ;;  %v5007_v52 = vld [vmem:[#allocation7 + $0x50] sm:$0xff] }
  0x49   :  { %275 = vmatprep.subr.mxu0 %v4929_v12  ;;  %6620 = vst [vmem:[#allocation29_spill] sm:$0xff] %v4963_v24  ;;  %6622 = vst [vmem:[#allocation31_spill] sm:$0xff] %v4983_v36  ;;  %372 = vmatprep.subr.mxu1 %v4994_v47  ;;  %v5004_v51 = vld [vmem:[#allocation7 + $0x58] sm:$0xff]  ;;  %v5010_v53 = vld [vmem:[#allocation7 + $0x48] sm:$0xff] }
  0x4a   :  { %276 = vmatpush1.msra.mxu0 %v4932_v13  ;;  %6621 = vst [vmem:[#allocation30_spill] sm:$0xff] %v4970_v29  ;;  %6623 = vst [vmem:[#allocation32_spill] sm:$0xff] %v4987_v38  ;;  %373 = vmatpush1.msra.mxu1 %v4996_v48  ;;  %v5013_v54 = vld [vmem:[#allocation7 + $0x40] sm:$0xff]  ;;  %v5016_v55 = vld [vmem:[#allocation7 + $0x38] sm:$0xff] }
  0x4b   :  { %277 = vmatprep.subr.mxu0 %v4935_v14  ;;  %374 = vmatprep.subr.mxu1 %v4998_v49  ;;  %v5019_v56 = vld [vmem:[#allocation7 + $0x30] sm:$0xff]  ;;  %v5022_v57 = vld [vmem:[#allocation7 + $0x28] sm:$0xff]  ;;  %v5025_v58 = vld [vmem:[#allocation7 + $0x20] sm:$0xff] }
  0x4c   :  { %278 = vmatpush1.msra.mxu0 %v4938_v15  ;;  %375 = vmatpush1.msra.mxu1 %v5001_v50  ;;  %v5028_v59 = vld [vmem:[#allocation7 + $0x18] sm:$0xff]  ;;  %v5030_v60 = vld [vmem:[#allocation7 + $0x10] sm:$0xff]  ;;  %v5038_v63 = vld [vmem:[#allocation5 + $0x68] sm:$0xff] }
  0x4d   :  { %279 = vmatprep.subr.mxu0 %v4941_v16  ;;  %376 = vmatprep.subr.mxu1 %v5004_v51  ;;  %v5032_v61 = vld [vmem:[#allocation5 + $0x78] sm:$0xff]  ;;  %v5036_v62 = vld [vmem:[#allocation5 + $0x70] sm:$0xff]  ;;  %6626 = vst [vmem:[#allocation35_spill] sm:$0xff] %v5038_v63  ;;  %v5040_v0 = vld [vmem:[#allocation5 + $0x60] sm:$0xff] }
  0x4e   :  { %280 = vmatpush1.msra.mxu0 %v4944_v17  ;;  %377 = vmatpush1.msra.mxu1 %v5007_v52  ;;  %6624 = vst [vmem:[#allocation33_spill] sm:$0xff] %v5032_v61  ;;  %6625 = vst [vmem:[#allocation34_spill] sm:$0xff] %v5036_v62  ;;  %v5043_v2 = vld [vmem:[#allocation7 + $0x8] sm:$0xff]  ;;  %v5046_v11 = vld [vmem:[#allocation5 + $0x58] sm:$0xff] }
  0x4f   :  { %281 = vmatprep.subr.mxu0 %v4947_v18  ;;  %378 = vmatprep.subr.mxu1 %v5010_v53  ;;  %6627 = vst [vmem:[#allocation36_spill] sm:$0xff] %v5040_v0  ;;  %6628 = vst [vmem:[#allocation37_spill] sm:$0xff] %v5046_v11  ;;  %v5049_v20 = vld [vmem:[#allocation7] sm:$0xff]  ;;  %v5052_v21 = vld [vmem:[#allocation5 + $0x50] sm:$0xff] }
  0x50   :  { %282 = vmatpush1.msra.mxu0 %v4950_v19  ;;  %379 = vmatpush1.msra.mxu1 %v5013_v54  ;;  %6629 = vst [vmem:[#allocation38_spill] sm:$0xff] %v5052_v21  ;;  %v5055_v23 = vld [vmem:[#allocation10 + $0x78] sm:$0xff]  ;;  %v5066_v27 = vld [vmem:[#allocation5 + $0x48] sm:$0xff] }
  0x51   :  { %316 = vmatmul.mubr.f32.vlgmr.msra.gmra.mxu0 %v6422_v1  ;;  %380 = vmatprep.subr.mxu1 %v5016_v55  ;;  %6630 = vst [vmem:[#allocation39_spill] sm:$0xff] %v5066_v27 }
  0x52   :  { %494 = vmatprep.mubr.f32.mxu0 %v6422_v1  ;;  %381 = vmatpush1.msra.mxu1 %v5019_v56 }
  0x53   :  { %382 = vmatprep.subr.mxu1 %v5022_v57  ;;  %446 = vmatprep.subr.mxu0 %v5032_v61 }
  0x54   :  { %383 = vmatpush1.msra.mxu1 %v5025_v58  ;;  %447 = vmatpush1.msra.mxu0 %v5036_v62 }
  0x55   :  { %384 = vmatprep.subr.mxu1 %v5028_v59  ;;  %448 = vmatprep.subr.mxu0 %v5038_v63 }
  0x56   :  { %385 = vmatpush1.msra.mxu1 %v5030_v60  ;;  %449 = vmatpush1.msra.mxu0 %v5040_v0 }
  0x57   :  { %386 = vmatprep.subr.mxu1 %v5043_v2  ;;  %450 = vmatprep.subr.mxu0 %v5046_v11 }
  0x58   :  { %387 = vmatpush1.msra.mxu1 %v5049_v20  ;;  %451 = vmatpush1.msra.mxu0 %v5052_v21 }
  0x59   :  { %549 = vmatprep.subr.mxu1 %v5055_v23  ;;  %421 = vmatmul.mubr.f32.vlgmr.msra.gmra.mxu1 %v6422_v1 }
  0x5a   :  { %597 = vmatprep.mubr.f32.mxu1 %v6422_v1  ;;  %452 = vmatprep.subr.mxu0 %v5066_v27  ;;  %v5108_v1 = vld [vmem:[#allocation5 + $0x10] sm:$0xff] }
  0x5b   :  { %6644 = vst [vmem:[#allocation53_spill] sm:$0xff] %v5108_v1 }
  0xbe   :  { %v232_v25 = vpop.permute.xlu0 %231 }
  0xbf   :  { %v246_v26 = vmul.f32 %v4963_v24, %v232_v25  ;;  %v245_v37 = vmul.f32 %v4983_v36, %v232_v25  ;;  %v5059_v25 = vld [vmem:[#allocation10 + $0x70] sm:$0xff] }
  0xc0   :  { %550 = vmatpush1.msra.mxu1 %v5059_v25 }
 0x111   :  { %v317_v28 = vpop.f32.mrf.mxu0 }
 0x112   :  { %v322_v39 = vadd.f32 %v317_v28, %v245_v37  ;;  %v5070_v28 = vld [vmem:[#allocation10 + $0x60] sm:$0xff]  ;;  %v5084_v37 = vld [vmem:[#allocation5 + $0x30] sm:$0xff] }
 0x113   :  { %v319_v30 = vpop.f32.mrf.mxu0  ;;  %6631 = vst [vmem:[#allocation40_spill] sm:$0xff] %v5070_v28  ;;  %6636 = vst [vmem:[#allocation45_spill] sm:$0xff] %v5084_v37 }
 0x114   :  { %v323_v31 = vadd.f32 %v319_v30, %v246_v26  ;;  %v324_v40 = vadd.f32 %v322_v39, %v4987_v38  ;;  %v5063_v26 = vld [vmem:[#allocation10 + $0x68] sm:$0xff]  ;;  %v5072_v30 = vld [vmem:[#allocation5 + $0x40] sm:$0xff] }
 0x115   :  { %6632 = vst [vmem:[#allocation41_spill] sm:$0xff] %v5072_v30  ;;  %551 = vmatprep.subr.mxu1 %v5063_v26  ;;  %v5087_v39 = vld [vmem:[#allocation10 + $0x48] sm:$0xff]  ;;  %453 = vmatpush1.msra.mxu0 %v5072_v30 }
 0x116   :  { %v4973_v32 = vadd.f32 %v323_v31, %v4970_v29  ;;  %v4104_v41 = vmul.f32 -1.442695, %v324_v40  ;;  %v5075_v31 = vld [vmem:[#allocation10 + $0x58] sm:$0xff]  ;;  %552 = vmatpush1.msra.mxu1 %v5070_v28  ;;  %6637 = vst [vmem:[#allocation46_spill] sm:$0xff] %v5087_v39  ;;  %v5090_v40 = vld [vmem:[#allocation5 + $0x28] sm:$0xff]  ;;  %v5123_v28 = vld [vmem:[#allocation10 + $0x10] sm:$0xff] }
 0x117   :  { %6633 = vst [vmem:[#allocation42_spill] sm:$0xff] %v5075_v31  ;;  %6638 = vst [vmem:[#allocation47_spill] sm:$0xff] %v5090_v40  ;;  %553 = vmatprep.subr.mxu1 %v5075_v31  ;;  %v5111_v31 = vld [vmem:[#allocation10 + $0x28] sm:$0xff] }
 0x118   :  { %4239 = vtanh.f32 %v4973_v32 }
 0x119   :  { %4241 = vpow2.f32 %v4104_v41  ;;  %v5093_v41 = vld [vmem:[#allocation10 + $0x40] sm:$0xff] }
 0x11a   :  { %6639 = vst [vmem:[#allocation48_spill] sm:$0xff] %v5093_v41 }
 0x125   :  { %v4240_v33 = vpop.eup %4239 }
 0x126   :  { %341 = vrot.lane.b32.xlu0 %v4240_v33, %s4802_s1  ;;  %v4242_v42 = vpop.eup %4241  ;;  %v5078_v33 = vld [vmem:[#allocation5 + $0x38] sm:$0xff] }
 0x127   :  { %v332_v43 = vadd.f32 1.0, %v4242_v42  ;;  %6634 = vst [vmem:[#allocation43_spill] sm:$0xff] %v5078_v33  ;;  %454 = vmatprep.subr.mxu0 %v5078_v33  ;;  %v5096_v42 = vld [vmem:[#allocation5 + $0x20] sm:$0xff] }
 0x128   :  { %6640 = vst [vmem:[#allocation49_spill] sm:$0xff] %v5096_v42  ;;  %455 = vmatpush1.msra.mxu0 %v5084_v37 }
 0x129   :  { %4243 = vrcp.f32 %v332_v43  ;;  %v5099_v43 = vld [vmem:[#allocation10 + $0x38] sm:$0xff]  ;;  %456 = vmatprep.subr.mxu0 %v5090_v40 }
 0x12a   :  { %714 = vperm.xlu0 %4237, %v4112_v34   ;;  %v5081_v34 = vld [vmem:[#allocation10 + $0x50] sm:$0xff]  ;;  %6641 = vst [vmem:[#allocation50_spill] sm:$0xff] %v5099_v43  ;;  %457 = vmatpush1.msra.mxu0 %v5096_v42 }
 0x12b   :  { %6635 = vst [vmem:[#allocation44_spill] sm:$0xff] %v5081_v34  ;;  %554 = vmatpush1.msra.mxu1 %v5081_v34  ;;  %v5115_v34 = vld [vmem:[#allocation10 + $0x20] sm:$0xff] }
 0x12c   :  { %555 = vmatprep.subr.mxu1 %v5087_v39  ;;  %v5119_v39 = vld [vmem:[#allocation10 + $0x18] sm:$0xff] }
 0x12d   :  { %556 = vmatpush1.msra.mxu1 %v5093_v41  ;;  %v5126_v41 = vld [vmem:[#allocation10 + $0x8] sm:$0xff] }
 0x12e   :  { %557 = vmatprep.subr.mxu1 %v5099_v43  ;;  %v5129_v43 = vld [vmem:[#allocation10] sm:$0xff] }
 0x136   :  { %v4990_v44 = vpop.eup %4243 }
 0x198   :  { %v342_v45 = vpop.permute.xlu0 %341 }
 0x199   :  { %v344_v46 = vmul.f32 %v4990_v44, %v342_v45  ;;  %v5102_v45 = vld [vmem:[#allocation5 + $0x18] sm:$0xff] }
 0x19a   :  { %6642 = vst [vmem:[#allocation51_spill] sm:$0xff] %v5102_v45  ;;  %458 = vmatprep.subr.mxu0 %v5102_v45 }
 0x19b   :  { %346 = vrot.lane.b32.xlu1 %v344_v46, %s4802_s1  ;;  %v5105_v46 = vld [vmem:[#allocation10 + $0x30] sm:$0xff]  ;;  %459 = vmatpush1.msra.mxu0 %v5108_v1 }
 0x19c   :  { %6643 = vst [vmem:[#allocation52_spill] sm:$0xff] %v5105_v46  ;;  %558 = vmatpush1.msra.mxu1 %v5105_v46  ;;  %v6645_v46 = vmov 0.0  }
 0x19d   :  { %559 = vmatprep.subr.mxu1 %v5111_v31 }
 0x19e   :  { %560 = vmatpush1.msra.mxu1 %v5115_v34 }
 0x19f   :  { %561 = vmatprep.subr.mxu1 %v5119_v39 }
 0x1a0   :  { %562 = vmatpush1.msra.mxu1 %v5123_v28 }
 0x1a1   :  { %563 = vmatprep.subr.mxu1 %v5126_v41 }
 0x1a2   :  { %564 = vmatpush1.msra.mxu1 %v5129_v43 }
 0x1a3   :  { %735 = vmatprep.subr.mxu1 %v4904_v3  ;;  %598 = vmatmul.mubr.f32.vlgmr.msra.gmra.mxu1 %v6645_v46 }
 0x1a4   :  { %736 = vmatpush1.msra.mxu1 %v4906_v4  ;;  %783 = vmatprep.mubr.f32.mxu1 %v6645_v46 }
 0x1a5   :  { %737 = vmatprep.subr.mxu1 %v4908_v5 }
 0x1a6   :  { %738 = vmatpush1.msra.mxu1 %v4911_v6 }
 0x1a7   :  { %739 = vmatprep.subr.mxu1 %v4914_v7 }
 0x1a8   :  { %740 = vmatpush1.msra.mxu1 %v4917_v8 }
 0x1a9   :  { %741 = vmatprep.subr.mxu1 %v4920_v9 }
 0x1aa   :  { %742 = vmatpush1.msra.mxu1 %v4923_v10  ;;  %v339_v10 = vmul.f32 0.0, %v4990_v44 }
 0x1ab   :  { %743 = vmatprep.subr.mxu1 %v4929_v12 }
 0x1ac   :  { %744 = vmatpush1.msra.mxu1 %v4932_v13  ;;  %v5266_v13 = vld [vmem:[#allocation8] sm:$0xff] }
 0x1ad   :  { %745 = vmatprep.subr.mxu1 %v4935_v14  ;;  %v5157_v14 = vld [vmem:[#allocation5 + $0x8] sm:$0xff]  ;;  %6658 = vst [vmem:[#allocation66_spill] sm:$0xff] %v5266_v13 }
 0x1ae   :  { %746 = vmatpush1.msra.mxu1 %v4938_v15  ;;  %6646 = vst [vmem:[#allocation54_spill] sm:$0xff] %v5157_v14  ;;  %460 = vmatprep.subr.mxu0 %v5157_v14  ;;  %v5262_v15 = vld [vmem:[#allocation8 + $0x8] sm:$0xff] }
 0x1af   :  { %747 = vmatprep.subr.mxu1 %v4941_v16  ;;  %v5160_v16 = vld [vmem:[#allocation5] sm:$0xff]  ;;  %6657 = vst [vmem:[#allocation65_spill] sm:$0xff] %v5262_v15 }
 0x1b0   :  { %748 = vmatpush1.msra.mxu1 %v4944_v17  ;;  %6647 = vst [vmem:[#allocation55_spill] sm:$0xff] %v5160_v16  ;;  %461 = vmatpush1.msra.mxu0 %v5160_v16 }
 0x1b1   :  { %749 = vmatprep.subr.mxu1 %v4947_v18 }
 0x1b2   :  { %750 = vmatpush1.msra.mxu1 %v4950_v19 }
 0x1b3   :  { %914 = vmatprep.subr.mxu1 %v5032_v61  ;;  %v4105_v61 = vmul.f32 -1.442695, %v4973_v32 }
 0x20d   :  { %v347_v9 = vpop.permute.xlu1 %346 }
 0x20e   :  { %v5154_v12 = vadd.f32 %v347_v9, %v339_v10 }
 0x210   :  { %4245 = vtanh.f32 %v5154_v12 }
 0x211   :  { %4247 = vpow2.f32 %v4105_v61  ;;  %v715_v61 = vpop.permute.xlu0 %714 }
 0x21d   :  { %v4246_v18 = vpop.eup %4245 }
 0x21e   :  { %352 = vrot.lane.b32.xlu1 %v4246_v18, %s4802_s1  ;;  %v4248_v44 = vpop.eup %4247 }
 0x21f   :  { %v333_v19 = vadd.f32 1.0, %v4248_v44 }
 0x221   :  { %4249 = vrcp.f32 %v333_v19 }
 0x22e   :  { %v4250_v9 = vpop.eup %4249 }
 0x290   :  { %v353_v10 = vpop.permute.xlu1 %352 }
 0x291   :  { %v355_v17 = vmul.f32 %v4250_v9, %v353_v10  ;;  %v204_v10 = vld [vmem:[%s6415_s6] sm:$0x3] }
 0x293   :  { %4106 = vmatmul.mubr.msk.f32.vlgmr.msra.gmra.mxu0 %vm247_vm0, %v355_v17  ;;  %4113 = vmatmul.mubr.msk.f32.vlgmr.msra.gmra.mxu1 %vm247_vm0, %v355_v17  ;;  %v422_v17 = vpop.f32.mrf.mxu1 }
 0x294   :  { %915 = vmatpush1.msra.mxu1 %v5036_v62  ;;  %671 = vmatprep.mubr.f32.mxu0 %v6645_v46 }
 0x295   :  { %916 = vmatprep.subr.mxu1 %v5038_v63  ;;  %962 = vmatprep.mubr.f32.mxu1 %v6645_v46  ;;  %v424_v18 = vpop.f32.mrf.mxu1 }
 0x296   :  { %917 = vmatpush1.msra.mxu1 %v5040_v0 }
 0x297   :  { %918 = vmatprep.subr.mxu1 %v5046_v11  ;;  %v5184_v19 = vpop.f32.mrf.mxu1 }
 0x298   :  { %919 = vmatpush1.msra.mxu1 %v5052_v21 }
 0x299   :  { %920 = vmatprep.subr.mxu1 %v5066_v27  ;;  %v5186_v32 = vpop.f32.mrf.mxu1  ;;  %v717_v27 = vmul.f32 %v715_v61, %v4983_v36 }
 0x29a   :  { %921 = vmatpush1.msra.mxu1 %v5072_v30 }
 0x29b   :  { %922 = vmatprep.subr.mxu1 %v5078_v33 }
 0x29c   :  { %923 = vmatpush1.msra.mxu1 %v5084_v37 }
 0x29d   :  { %924 = vmatprep.subr.mxu1 %v5090_v40 }
 0x29e   :  { %925 = vmatpush1.msra.mxu1 %v5096_v42 }
 0x29f   :  { %926 = vmatprep.subr.mxu1 %v5102_v45  ;;  %v718_v45 = vmul.f32 %v715_v61, %v4963_v24 }
 0x2a0   :  { %927 = vmatpush1.msra.mxu1 %v5108_v1  ;;  %v5193_v1 = vrot.slane %v204_v10, %v4957_v22 }
 0x2a1   :  { %928 = vmatprep.subr.mxu1 %v5157_v14 }
 0x2a2   :  { %929 = vmatpush1.msra.mxu1 %v5160_v16  ;;  %6648 = vst [vmem:[#allocation56_spill] sm:$0xff] %v5193_v1 }
 0x353   :  { %v496_v44 = vpop.f32.mrf.mxu0  ;;  %v785_v9 = vpop.f32.mrf.mxu1 }
 0x355   :  { %v498_v14 = vpop.f32.mrf.mxu0  ;;  %v787_v16 = vpop.f32.mrf.mxu1 }
 0x356   :  { %v499_v42 = vadd.f32 %v498_v14, %v424_v18  ;;  %v791_v40 = vadd.f32 %v787_v16, %v718_v45  ;;  %v5207_v14 = vrot.slane %v204_v10, %v4980_v35  ;;  %v497_v16 = vadd.f32 %v496_v44, %v422_v17  ;;  %v5213_v44 = vld [vmem:[#allocation8 + $0x78] sm:$0xff] }
 0x357   :  { %6650 = vst [vmem:[#allocation58_spill] sm:$0xff] %v5213_v44  ;;  %623 = vmatprep.subr.mxu0 %v5213_v44  ;;  %1094 = vmatprep.subr.mxu1 %v5213_v44 }
 0x358   :  { %v5196_v37 = vadd.f32 %v499_v42, %v5193_v1  ;;  %v5199_v33 = vadd.f32 %v791_v40, %v4970_v29  ;;  %6649 = vst [vmem:[#allocation57_spill] sm:$0xff] %v5207_v14  ;;  %v790_v42 = vadd.f32 %v785_v9, %v717_v27  ;;  %v501_v40 = vadd.f32 %v497_v16, %v5207_v14  ;;  %v5215_v9 = vld [vmem:[#allocation8 + $0x70] sm:$0xff]  ;;  %v5230_v16 = vld [vmem:[#allocation8 + $0x48] sm:$0xff] }
 0x359   :  { %624 = vmatpush1.msra.mxu0 %v5215_v9 }
 0x35a   :  { %4251 = vtanh.f32 %v5196_v37  ;;  %v792_v45 = vadd.f32 %v790_v42, %v4987_v38  ;;  %v4107_v18 = vmul.f32 -1.442695, %v501_v40  ;;  %v5233_v42 = vld [vmem:[#allocation8 + $0x40] sm:$0xff]  ;;  %v5236_v40 = vld [vmem:[#allocation8 + $0x38] sm:$0xff] }
 0x35b   :  { %4253 = vtanh.f32 %v5199_v33 }
 0x35c   :  { %v4114_v29 = vmul.f32 -1.442695, %v792_v45  ;;  %4255 = vpow2.f32 %v4107_v18  ;;  %v5239_v45 = vld [vmem:[#allocation8 + $0x30] sm:$0xff]  ;;  %v5242_v18 = vld [vmem:[#allocation8 + $0x28] sm:$0xff] }
 0x35d   :  { %6651 = vst [vmem:[#allocation59_spill] sm:$0xff] %v5239_v45  ;;  %6652 = vst [vmem:[#allocation60_spill] sm:$0xff] %v5242_v18 }
 0x35e   :  { %4257 = vpow2.f32 %v4114_v29  ;;  %v5217_v29 = vld [vmem:[#allocation8 + $0x68] sm:$0xff] }
 0x35f   :  { %625 = vmatprep.subr.mxu0 %v5217_v29 }
 0x367   :  { %v4252_v30 = vpop.eup %4251 }
 0x368   :  { %518 = vrot.lane.b32.xlu1 %v4252_v30, %s4802_s1  ;;  %v4254_v24 = vpop.eup %4253 }
 0x369   :  { %809 = vrot.lane.b32.xlu0 %v4254_v24, %s4802_s1  ;;  %v4256_v21 = vpop.eup %4255 }
 0x36a   :  { %v509_v11 = vadd.f32 1.0, %v4256_v21  ;;  %v5227_v21 = vld [vmem:[#allocation8 + $0x50] sm:$0xff] }
 0x36b   :  { %v4258_v30 = vpop.eup %4257 }
 0x36c   :  { %v800_v0 = vadd.f32 1.0, %v4258_v30  ;;  %4259 = vrcp.f32 %v509_v11  ;;  %v5220_v11 = vld [vmem:[#allocation8 + $0x60] sm:$0xff] }
 0x36d   :  { %626 = vmatpush1.msra.mxu0 %v5220_v11  ;;  %v5245_v30 = vld [vmem:[#allocation8 + $0x20] sm:$0xff] }
 0x36e   :  { %4261 = vrcp.f32 %v800_v0  ;;  %v5224_v0 = vld [vmem:[#allocation8 + $0x58] sm:$0xff]  ;;  %6653 = vst [vmem:[#allocation61_spill] sm:$0xff] %v5245_v30 }
 0x36f   :  { %627 = vmatprep.subr.mxu0 %v5224_v0 }
 0x370   :  { %628 = vmatpush1.msra.mxu0 %v5227_v21 }
 0x371   :  { %629 = vmatprep.subr.mxu0 %v5230_v16 }
 0x372   :  { %630 = vmatpush1.msra.mxu0 %v5233_v42 }
 0x373   :  { %631 = vmatprep.subr.mxu0 %v5236_v40 }
 0x374   :  { %632 = vmatpush1.msra.mxu0 %v5239_v45 }
 0x375   :  { %633 = vmatprep.subr.mxu0 %v5242_v18 }
 0x376   :  { %634 = vmatpush1.msra.mxu0 %v5245_v30 }
 0x379   :  { %v4260_v24 = vpop.eup %4259 }
 0x37b   :  { %v4262_v36 = vpop.eup %4261 }
 0x37c   :  { %v807_v38 = vmul.f32 %v4262_v36, %v5154_v12 }
 0x3da   :  { %v519_v61 = vpop.permute.xlu1 %518 }
 0x3db   :  { %v521_v10 = vmul.f32 %v4260_v24, %v519_v61  ;;  %v810_v17 = vpop.permute.xlu0 %809  ;;  %v5248_v61 = vld [vmem:[#allocation8 + $0x18] sm:$0xff] }
 0x3dc   :  { %v812_v27 = vmul.f32 %v4262_v36, %v810_v17  ;;  %6654 = vst [vmem:[#allocation62_spill] sm:$0xff] %v5248_v61  ;;  %635 = vmatprep.subr.mxu0 %v5248_v61  ;;  %v516_v17 = vmul.f32 0.0, %v4260_v24 }
 0x3dd   :  { %523 = vrot.lane.b32.xlu1 %v521_v10, %s4802_s1  ;;  %v5251_v10 = vld [vmem:[#allocation8 + $0x10] sm:$0xff] }
 0x3de   :  { %814 = vrot.lane.b32.xlu0 %v812_v27, %s4802_s1  ;;  %6655 = vst [vmem:[#allocation63_spill] sm:$0xff] %v5251_v10  ;;  %636 = vmatpush1.msra.mxu0 %v5251_v10 }
 0x3df   :  { %637 = vmatprep.subr.mxu0 %v5262_v15 }
 0x3e0   :  { %638 = vmatpush1.msra.mxu0 %v5266_v13 }
 0x3e1   :  { %840 = vmatprep.subr.mxu0 %v4994_v47 }
 0x44f   :  { %v524_v27 = vpop.permute.xlu1 %523 }
 0x450   :  { %v5257_v44 = vadd.f32 %v524_v27, %v516_v17  ;;  %v815_v63 = vpop.permute.xlu0 %814 }
 0x451   :  { %v5259_v62 = vadd.f32 %v815_v63, %v807_v38  ;;  %v4108_v38 = vmul.f32 -1.442695, %v5196_v37  ;;  %v4115_v63 = vmul.f32 -1.442695, %v5199_v33  ;;  %v6664_v33 = vld [vmem:[#allocation50_spill] sm:$0xff]  ;;  %v6665_v37 = vld [vmem:[#allocation52_spill] sm:$0xff] }
 0x452   :  { %4263 = vtanh.f32 %v5257_v44 }
 0x453   :  { %6656 = vst [vmem:[#allocation64_spill] sm:$0xff] %v5259_v62  ;;  %4265 = vtanh.f32 %v5259_v62 }
 0x454   :  { %4267 = vpow2.f32 %v4108_v38 }
 0x455   :  { %4269 = vpow2.f32 %v4115_v63 }
 0x45f   :  { %v4264_v12 = vpop.eup %4263 }
 0x460   :  { %529 = vrot.lane.b32.xlu1 %v4264_v12, %s4802_s1  ;;  %v4266_v36 = vpop.eup %4265 }
 0x461   :  { %820 = vrot.lane.b32.xlu0 %v4266_v36, %s4802_s1  ;;  %v4268_v24 = vpop.eup %4267 }
 0x462   :  { %v4270_v17 = vpop.eup %4269  ;;  %v510_v27 = vadd.f32 1.0, %v4268_v24 }
 0x463   :  { %v801_v62 = vadd.f32 1.0, %v4270_v17 }
 0x464   :  { %4271 = vrcp.f32 %v510_v27 }
 0x465   :  { %4273 = vrcp.f32 %v801_v62  ;;  %v6663_v62 = vld [vmem:[#allocation48_spill] sm:$0xff] }
 0x471   :  { %v4272_v8 = vpop.eup %4271 }
 0x472   :  { %v4274_v5 = vpop.eup %4273 }
 0x4d2   :  { %v530_v7 = vpop.permute.xlu1 %529 }
 0x4d3   :  { %v532_v6 = vmul.f32 %v4272_v8, %v530_v7  ;;  %v821_v12 = vpop.permute.xlu0 %820  ;;  %v6660_v7 = vld [vmem:[#allocation42_spill] sm:$0xff]  ;;  %v6661_v8 = vld [vmem:[#allocation44_spill] sm:$0xff] }
 0x4d4   :  { %v5274_v4 = vmul.f32 %v4274_v5, %v821_v12  ;;  %v6659_v5 = vld [vmem:[#allocation40_spill] sm:$0xff] }
 0x4d5   :  { %4109 = vmatmul.mubr.msk.f32.vlgmr.msra.gmra.mxu0 %vm247_vm0, %v532_v6 }
 0x4d6   :  { %841 = vmatpush1.msra.mxu0 %v4996_v48  ;;  %888 = vmatprep.mubr.f32.mxu0 %v6645_v46 }
 0x4d7   :  { %4117 = vmatmul.mubr.msk.f32.vlgmr.msra.gmra.mxu1 %vm247_vm0, %v5274_v4  ;;  %842 = vmatprep.subr.mxu0 %v4998_v49 }
 0x4d8   :  { %843 = vmatpush1.msra.mxu0 %v5001_v50  ;;  %1095 = vmatpush1.msra.mxu1 %v5215_v9 }
 0x4d9   :  { %844 = vmatprep.subr.mxu0 %v5004_v51  ;;  %1096 = vmatprep.subr.mxu1 %v5217_v29 }
 0x4da   :  { %845 = vmatpush1.msra.mxu0 %v5007_v52  ;;  %1097 = vmatpush1.msra.mxu1 %v5220_v11 }
 0x4db   :  { %846 = vmatprep.subr.mxu0 %v5010_v53  ;;  %1098 = vmatprep.subr.mxu1 %v5224_v0 }
 0x4dc   :  { %847 = vmatpush1.msra.mxu0 %v5013_v54  ;;  %1099 = vmatpush1.msra.mxu1 %v5227_v21 }
 0x4dd   :  { %848 = vmatprep.subr.mxu0 %v5016_v55  ;;  %1100 = vmatprep.subr.mxu1 %v5230_v16 }
 0x4de   :  { %849 = vmatpush1.msra.mxu0 %v5019_v56  ;;  %1101 = vmatpush1.msra.mxu1 %v5233_v42 }
 0x4df   :  { %850 = vmatprep.subr.mxu0 %v5022_v57  ;;  %1102 = vmatprep.subr.mxu1 %v5236_v40 }
 0x4e0   :  { %851 = vmatpush1.msra.mxu0 %v5025_v58  ;;  %1103 = vmatpush1.msra.mxu1 %v5239_v45 }
 0x4e1   :  { %852 = vmatprep.subr.mxu0 %v5028_v59  ;;  %1104 = vmatprep.subr.mxu1 %v5242_v18 }
 0x4e2   :  { %853 = vmatpush1.msra.mxu0 %v5030_v60  ;;  %1105 = vmatpush1.msra.mxu1 %v5245_v30 }
 0x4e3   :  { %854 = vmatprep.subr.mxu0 %v5043_v2  ;;  %1106 = vmatprep.subr.mxu1 %v5248_v61 }
 0x4e4   :  { %855 = vmatpush1.msra.mxu0 %v5049_v20  ;;  %1107 = vmatpush1.msra.mxu1 %v5251_v10 }
 0x4e5   :  { %4116 = vmatmul.mubr.msk.f32.vlgmr.msra.gmra.mxu0 %vm247_vm0, %v532_v6  ;;  %1020 = vmatprep.subr.mxu0 %v5055_v23  ;;  %v6662_v6 = vld [vmem:[#allocation46_spill] sm:$0xff] }
 0x4e6   :  { %1021 = vmatpush1.msra.mxu0 %v5059_v25  ;;  %1068 = vmatprep.mubr.f32.mxu0 %v6645_v46 }
 0x4e7   :  { %1022 = vmatprep.subr.mxu0 %v5063_v26  ;;  %1108 = vmatprep.subr.mxu1 %v5262_v15 }
 0x4e8   :  { %1023 = vmatpush1.msra.mxu0 %v6659_v5  ;;  %1109 = vmatpush1.msra.mxu1 %v5266_v13 }
 0x4e9   :  { %1024 = vmatprep.subr.mxu0 %v6660_v7  ;;  %1142 = vmatprep.mubr.f32.mxu1 %v6645_v46 }
 0x4ea   :  { %1025 = vmatpush1.msra.mxu0 %v6661_v8  ;;  %1311 = vmatprep.subr.mxu1 %v4994_v47  ;;  %v216_v47 = vld [vmem:[%s6418_s9] sm:$0x3] }
 0x4eb   :  { %1026 = vmatprep.subr.mxu0 %v6662_v6  ;;  %v5335_v38 = vrot.slane %v216_v47, %v4957_v22 }
 0x4ec   :  { %1027 = vmatpush1.msra.mxu0 %v6663_v62 }
 0x4ed   :  { %1028 = vmatprep.subr.mxu0 %v6664_v33  ;;  %6666 = vst [vmem:[#allocation40_spill] sm:$0xff] %v5335_v38 }
 0x4ee   :  { %1029 = vmatpush1.msra.mxu0 %v6665_v37 }
 0x4ef   :  { %1030 = vmatprep.subr.mxu0 %v5111_v31 }
 0x4f0   :  { %1031 = vmatpush1.msra.mxu0 %v5115_v34 }
 0x4f1   :  { %1032 = vmatprep.subr.mxu0 %v5119_v39 }
 0x4f2   :  { %1033 = vmatpush1.msra.mxu0 %v5123_v28 }
 0x4f3   :  { %1034 = vmatprep.subr.mxu0 %v5126_v41 }
 0x4f4   :  { %1035 = vmatpush1.msra.mxu0 %v5129_v43 }
 0x4f5   :  { %1206 = vmatprep.subr.mxu0 %v4904_v3 }
 0x595   :  { %v673_v36 = vpop.f32.mrf.mxu0 }
 0x597   :  { %v675_v63 = vpop.f32.mrf.mxu0  ;;  %v964_v27 = vpop.f32.mrf.mxu1 }
 0x598   :  { %v676_v24 = vadd.f32 %v675_v63, %v5186_v32  ;;  %v5343_v32 = vrot.slane %v216_v47, %v4980_v35  ;;  %v674_v63 = vadd.f32 %v673_v36, %v5184_v19 }
 0x599   :  { %v966_v15 = vpop.f32.mrf.mxu1 }
 0x59a   :  { %v679_v17 = vadd.f32 %v676_v24, %v5335_v38  ;;  %v678_v24 = vadd.f32 %v674_v63, %v5343_v32 }
 0x59c   :  { %4275 = vtanh.f32 %v679_v17 }
 0x5a5   :  { %v890_v12 = vpop.f32.mrf.mxu0 }
 0x5a6   :  { %v965_v13 = vadd.f32 %v964_v27, %v890_v12  ;;  %v4110_v27 = vmul.f32 -1.442695, %v678_v24 }
 0x5a7   :  { %v892_v10 = vpop.f32.mrf.mxu0 }
 0x5a8   :  { %v967_v3 = vadd.f32 %v966_v15, %v892_v10  ;;  %v969_v15 = vadd.f32 %v965_v13, %v5207_v14 }
 0x5a9   :  { %v4276_v61 = vpop.eup %4275 }
 0x5aa   :  { %695 = vrot.lane.b32.xlu1 %v4276_v61, %s4802_s1  ;;  %v970_v30 = vadd.f32 %v967_v3, %v5193_v1  ;;  %v4118_v12 = vmul.f32 -1.442695, %v969_v15 }
 0x5ac   :  { %4277 = vtanh.f32 %v970_v30 }
 0x5ad   :  { %4279 = vpow2.f32 %v4110_v27 }
 0x5ae   :  { %4281 = vpow2.f32 %v4118_v12 }
 0x5b9   :  { %v4278_v22 = vpop.eup %4277 }
 0x5ba   :  { %986 = vrot.lane.b32.xlu0 %v4278_v22, %s4802_s1  ;;  %v4280_v10 = vpop.eup %4279 }
 0x5bb   :  { %v686_v61 = vadd.f32 1.0, %v4280_v10  ;;  %v4282_v3 = vpop.eup %4281  ;;  %v4111_v10 = vmul.f32 -1.442695, %v679_v17  ;;  %v6669_v17 = vld [vmem:[#allocation16_spill] sm:$0xff] }
 0x5bc   :  { %v977_v45 = vadd.f32 1.0, %v4282_v3 }
 0x5bd   :  { %4283 = vrcp.f32 %v686_v61  ;;  %v4119_v61 = vmul.f32 -1.442695, %v970_v30  ;;  %v6670_v30 = vld [vmem:[#allocation17_spill] sm:$0xff] }
 0x5be   :  { %4285 = vrcp.f32 %v977_v45 }
 0x5ca   :  { %v4284_v1 = vpop.eup %4283 }
 0x5cb   :  { %v4286_v35 = vpop.eup %4285  ;;  %v693_v36 = vmul.f32 0.0, %v4284_v1 }
 0x61c   :  { %v696_v18 = vpop.permute.xlu1 %695 }
 0x61d   :  { %v698_v22 = vmul.f32 %v4284_v1, %v696_v18  ;;  %v984_v18 = vmul.f32 %v4286_v35, %v5257_v44  ;;  %v4124_v1 = vld [vmem:[%s6409_s0 + $0x4] sm:$0x3] }
 0x61f   :  { %700 = vrot.lane.b32.xlu1 %v698_v22, %s4802_s1 }
 0x62c   :  { %v987_v19 = vpop.permute.xlu0 %986 }
 0x62d   :  { %v989_v47 = vmul.f32 %v4286_v35, %v987_v19 }
 0x62f   :  { %991 = vrot.lane.b32.xlu0 %v989_v47, %s4802_s1 }
 0x691   :  { %v701_v13 = vpop.permute.xlu1 %700 }
 0x692   :  { %v5350_v63 = vadd.f32 %v701_v13, %v693_v36  ;;  %v6667_v36 = vld [vmem:[#allocation14_spill] sm:$0xff]  ;;  %v6668_v13 = vld [vmem:[#allocation15_spill] sm:$0xff] }
 0x694   :  { %4287 = vtanh.f32 %v5350_v63 }
 0x6a1   :  { %v4288_v24 = vpop.eup %4287  ;;  %v992_v27 = vpop.permute.xlu0 %991 }
 0x6a2   :  { %706 = vrot.lane.b32.xlu1 %v4288_v24, %s4802_s1  ;;  %v5355_v15 = vadd.f32 %v992_v27, %v984_v18  ;;  %v6671_v24 = vld [vmem:[#allocation18_spill] sm:$0xff]  ;;  %v6672_v18 = vld [vmem:[#allocation19_spill] sm:$0xff]  ;;  %v6673_v27 = vld [vmem:[#allocation20_spill] sm:$0xff] }
 0x6a4   :  { %4289 = vtanh.f32 %v5355_v15 }
 0x6a5   :  { %4291 = vpow2.f32 %v4111_v10  ;;  %v6676_v10 = vld [vmem:[#allocation23_spill] sm:$0xff] }
 0x6a6   :  { %1185 = vperm.xlu1 %4238, %v4124_v1   ;;  %4293 = vpow2.f32 %v4119_v61  ;;  %v6675_v1 = vld [vmem:[#allocation22_spill] sm:$0xff]  ;;  %v6678_v61 = vld [vmem:[#allocation25_spill] sm:$0xff] }
 0x6b1   :  { %v4290_v45 = vpop.eup %4289 }
 0x6b2   :  { %997 = vrot.lane.b32.xlu0 %v4290_v45, %s4802_s1  ;;  %v4292_v12 = vpop.eup %4291  ;;  %v6674_v45 = vld [vmem:[#allocation21_spill] sm:$0xff] }
 0x6b3   :  { %v687_v3 = vadd.f32 1.0, %v4292_v12  ;;  %v4294_v44 = vpop.eup %4293  ;;  %v6677_v12 = vld [vmem:[#allocation24_spill] sm:$0xff] }
 0x6b4   :  { %v978_v47 = vadd.f32 1.0, %v4294_v44  ;;  %v6680_v44 = vld [vmem:[#allocation27_spill] sm:$0xff] }
 0x6b5   :  { %4295 = vrcp.f32 %v687_v3  ;;  %v6679_v3 = vld [vmem:[#allocation26_spill] sm:$0xff] }
 0x6b6   :  { %4297 = vrcp.f32 %v978_v47  ;;  %v6682_v47 = vld [vmem:[#allocation33_spill] sm:$0xff] }
 0x6c2   :  { %v4296_v22 = vpop.eup %4295 }
 0x714   :  { %v707_v35 = vpop.permute.xlu1 %706 }
 0x715   :  { %v709_v19 = vmul.f32 %v4296_v22, %v707_v35  ;;  %v6681_v22 = vld [vmem:[#allocation28_spill] sm:$0xff]  ;;  %v4298_v35 = vpop.eup %4297 }
 0x717   :  { %4120 = vmatmul.mubr.msk.f32.vlgmr.msra.gmra.mxu0 %vm247_vm0, %v709_v19 }
 0x718   :  { %1207 = vmatpush1.msra.mxu0 %v6667_v36  ;;  %1254 = vmatprep.mubr.f32.mxu0 %v6645_v46 }
 0x719   :  { %1208 = vmatprep.subr.mxu0 %v6668_v13  ;;  %v6683_v13 = vld [vmem:[#allocation34_spill] sm:$0xff] }
 0x71a   :  { %1209 = vmatpush1.msra.mxu0 %v6669_v17  ;;  %v6684_v17 = vld [vmem:[#allocation35_spill] sm:$0xff] }
 0x71b   :  { %1210 = vmatprep.subr.mxu0 %v6670_v30  ;;  %v6685_v30 = vld [vmem:[#allocation36_spill] sm:$0xff] }
 0x71c   :  { %1211 = vmatpush1.msra.mxu0 %v6671_v24  ;;  %v6687_v24 = vld [vmem:[#allocation38_spill] sm:$0xff] }
 0x71d   :  { %1212 = vmatprep.subr.mxu0 %v6672_v18  ;;  %v6688_v18 = vld [vmem:[#allocation39_spill] sm:$0xff] }
 0x71e   :  { %1213 = vmatpush1.msra.mxu0 %v6673_v27  ;;  %v6689_v27 = vld [vmem:[#allocation41_spill] sm:$0xff] }
 0x71f   :  { %1214 = vmatprep.subr.mxu0 %v6674_v45 }
 0x720   :  { %1215 = vmatpush1.msra.mxu0 %v6675_v1 }
 0x721   :  { %1216 = vmatprep.subr.mxu0 %v6676_v10 }
 0x722   :  { %1217 = vmatpush1.msra.mxu0 %v6677_v12 }
 0x723   :  { %1218 = vmatprep.subr.mxu0 %v6678_v61 }
 0x724   :  { %1219 = vmatpush1.msra.mxu0 %v6679_v3  ;;  %v998_v19 = vpop.permute.xlu0 %997 }
 0x725   :  { %1220 = vmatprep.subr.mxu0 %v6680_v44  ;;  %v1000_v36 = vmul.f32 %v4298_v35, %v998_v19 }
 0x726   :  { %1221 = vmatpush1.msra.mxu0 %v6681_v22 }
 0x727   :  { %4125 = vmatmul.mubr.msk.f32.vlgmr.msra.gmra.mxu0 %vm247_vm0, %v5274_v4  ;;  %1385 = vmatprep.subr.mxu0 %v6682_v47  ;;  %v6686_v4 = vld [vmem:[#allocation37_spill] sm:$0xff] }
 0x728   :  { %1386 = vmatpush1.msra.mxu0 %v6683_v13  ;;  %1433 = vmatprep.mubr.f32.mxu0 %v6645_v46 }
 0x729   :  { %1387 = vmatprep.subr.mxu0 %v6684_v17  ;;  %4121 = vmatmul.mubr.msk.f32.vlgmr.msra.gmra.mxu1 %vm247_vm0, %v1000_v36 }
 0x72a   :  { %1388 = vmatpush1.msra.mxu0 %v6685_v30  ;;  %1312 = vmatpush1.msra.mxu1 %v4996_v48  ;;  %v6690_v48 = vld [vmem:[#allocation43_spill] sm:$0xff]  ;;  %v6704_v30 = vld [vmem:[#allocation64_spill] sm:$0xff] }
 0x72b   :  { %1359 = vmatprep.mubr.f32.mxu1 %v6645_v46  ;;  %1313 = vmatprep.subr.mxu1 %v4998_v49  ;;  %v6691_v49 = vld [vmem:[#allocation45_spill] sm:$0xff] }
 0x72c   :  { %1389 = vmatprep.subr.mxu0 %v6686_v4  ;;  %1314 = vmatpush1.msra.mxu1 %v5001_v50  ;;  %v6692_v50 = vld [vmem:[#allocation47_spill] sm:$0xff] }
 0x72d   :  { %1390 = vmatpush1.msra.mxu0 %v6687_v24  ;;  %1315 = vmatprep.subr.mxu1 %v5004_v51  ;;  %v6693_v51 = vld [vmem:[#allocation49_spill] sm:$0xff] }
 0x72e   :  { %1391 = vmatprep.subr.mxu0 %v6688_v18  ;;  %1316 = vmatpush1.msra.mxu1 %v5007_v52  ;;  %v6694_v52 = vld [vmem:[#allocation51_spill] sm:$0xff] }
 0x72f   :  { %1392 = vmatpush1.msra.mxu0 %v6689_v27  ;;  %1317 = vmatprep.subr.mxu1 %v5010_v53  ;;  %v6695_v53 = vld [vmem:[#allocation53_spill] sm:$0xff] }
 0x730   :  { %1393 = vmatprep.subr.mxu0 %v6690_v48  ;;  %1318 = vmatpush1.msra.mxu1 %v5013_v54  ;;  %v6696_v54 = vld [vmem:[#allocation54_spill] sm:$0xff] }
 0x731   :  { %1394 = vmatpush1.msra.mxu0 %v6691_v49  ;;  %1319 = vmatprep.subr.mxu1 %v5016_v55  ;;  %v6697_v55 = vld [vmem:[#allocation55_spill] sm:$0xff] }
 0x732   :  { %1395 = vmatprep.subr.mxu0 %v6692_v50  ;;  %1320 = vmatpush1.msra.mxu1 %v5019_v56  ;;  %v6698_v56 = vld [vmem:[#allocation58_spill] sm:$0xff] }
 0x733   :  { %1396 = vmatpush1.msra.mxu0 %v6693_v51  ;;  %1321 = vmatprep.subr.mxu1 %v5022_v57  ;;  %v5434_v57 = vld [vmem:[#allocation3 + $0x78] sm:$0xff] }
 0x734   :  { %1397 = vmatprep.subr.mxu0 %v6694_v52  ;;  %1322 = vmatpush1.msra.mxu1 %v5025_v58  ;;  %6699 = vst [vmem:[#allocation42_spill] sm:$0xff] %v5434_v57 }
 0x735   :  { %1398 = vmatpush1.msra.mxu0 %v6695_v53  ;;  %1323 = vmatprep.subr.mxu1 %v5028_v59 }
 0x736   :  { %1399 = vmatprep.subr.mxu0 %v6696_v54  ;;  %1324 = vmatpush1.msra.mxu1 %v5030_v60  ;;  %v1186_v60 = vpop.permute.xlu1 %1185 }
 0x737   :  { %1400 = vmatpush1.msra.mxu0 %v6697_v55  ;;  %1325 = vmatprep.subr.mxu1 %v5043_v2  ;;  %v6700_v2 = vld [vmem:[#allocation29_spill] sm:$0xff] }
 0x738   :  { %1565 = vmatprep.subr.mxu0 %v6698_v56  ;;  %1326 = vmatpush1.msra.mxu1 %v5049_v20  ;;  %v1189_v20 = vmul.f32 %v1186_v60, %v6700_v2 }
 0x739   :  { %4128 = vmatmul.mubr.msk.f32.vlgmr.msra.gmra.mxu1 %vm247_vm0, %v1000_v36  ;;  %1491 = vmatprep.subr.mxu1 %v5055_v23 }
 0x73a   :  { %1492 = vmatpush1.msra.mxu1 %v5059_v25  ;;  %1539 = vmatprep.mubr.f32.mxu1 %v6645_v46 }
 0x73b   :  { %1493 = vmatprep.subr.mxu1 %v5063_v26 }
 0x73c   :  { %1494 = vmatpush1.msra.mxu1 %v6659_v5 }
 0x73d   :  { %1495 = vmatprep.subr.mxu1 %v6660_v7 }
 0x73e   :  { %1496 = vmatpush1.msra.mxu1 %v6661_v8 }
 0x73f   :  { %1497 = vmatprep.subr.mxu1 %v6662_v6  ;;  %v6702_v6 = vld [vmem:[#allocation31_spill] sm:$0xff] }
 0x740   :  { %1498 = vmatpush1.msra.mxu1 %v6663_v62  ;;  %v1188_v62 = vmul.f32 %v1186_v60, %v6702_v6  ;;  %v4136_v60 = vld [vmem:[%s6409_s0 + $0x6] sm:$0x3] }
 0x741   :  { %1499 = vmatprep.subr.mxu1 %v6664_v33 }
 0x742   :  { %1500 = vmatpush1.msra.mxu1 %v6665_v37  ;;  %v6703_v37 = vld [vmem:[#allocation32_spill] sm:$0xff] }
 0x743   :  { %1501 = vmatprep.subr.mxu1 %v5111_v31 }
 0x744   :  { %1502 = vmatpush1.msra.mxu1 %v5115_v34 }
 0x745   :  { %1503 = vmatprep.subr.mxu1 %v5119_v39 }
 0x746   :  { %1504 = vmatpush1.msra.mxu1 %v5123_v28  ;;  %v6701_v28 = vld [vmem:[#allocation30_spill] sm:$0xff] }
 0x747   :  { %1505 = vmatprep.subr.mxu1 %v5126_v41 }
 0x748   :  { %1506 = vmatpush1.msra.mxu1 %v5129_v43 }
 0x749   :  { %1677 = vmatprep.subr.mxu1 %v5434_v57 }
 0x7d7   :  { %v1070_v58 = vpop.f32.mrf.mxu0 }
 0x7d9   :  { %v1072_v59 = vpop.f32.mrf.mxu0 }
 0x7e7   :  { %v1256_v23 = vpop.f32.mrf.mxu0 }
 0x7e8   :  { %v1261_v33 = vadd.f32 %v1256_v23, %v1188_v62 }
 0x7e9   :  { %v1258_v25 = vpop.f32.mrf.mxu0  ;;  %v1144_v26 = vpop.f32.mrf.mxu1 }
 0x7ea   :  { %v1262_v31 = vadd.f32 %v1258_v25, %v1189_v20  ;;  %v1145_v34 = vadd.f32 %v1144_v26, %v1070_v58  ;;  %v1263_v45 = vadd.f32 %v1261_v33, %v6703_v37  ;;  %v5474_v33 = vld [vmem:[#allocation3 + $0x60] sm:$0xff] }
 0x7eb   :  { %v1146_v39 = vpop.f32.mrf.mxu1 }
 0x7ec   :  { %v1264_v5 = vadd.f32 %v1262_v31, %v6701_v28  ;;  %v1147_v41 = vadd.f32 %v1146_v39, %v1072_v59  ;;  %v1149_v1 = vadd.f32 %v1145_v34, %v5343_v32  ;;  %v4126_v10 = vmul.f32 -1.442695, %v1263_v45  ;;  %v5478_v45 = vld [vmem:[#allocation3 + $0x58] sm:$0xff] }
 0x7ee   :  { %v1150_v43 = vadd.f32 %v1147_v41, %v5335_v38  ;;  %4299 = vtanh.f32 %v1264_v5  ;;  %v4122_v12 = vmul.f32 -1.442695, %v1149_v1  ;;  %v4127_v20 = vmul.f32 -1.442695, %v1264_v5  ;;  %v5466_v5 = vld [vmem:[#allocation3 + $0x70] sm:$0xff] }
 0x7ef   :  { %v5482_v1 = vld [vmem:[#allocation3 + $0x50] sm:$0xff] }
 0x7f0   :  { %4301 = vtanh.f32 %v1150_v43 }
 0x7f1   :  { %4303 = vpow2.f32 %v4126_v10  ;;  %v5486_v10 = vld [vmem:[#allocation3 + $0x48] sm:$0xff] }
 0x7f2   :  { %4305 = vpow2.f32 %v4122_v12  ;;  %v5490_v12 = vld [vmem:[#allocation3 + $0x40] sm:$0xff] }
 0x7fb   :  { %v4300_v7 = vpop.eup %4299 }
 0x7fc   :  { %1280 = vrot.lane.b32.xlu1 %v4300_v7, %s4802_s1 }
 0x7fd   :  { %v4302_v8 = vpop.eup %4301 }
 0x7fe   :  { %1166 = vrot.lane.b32.xlu0 %v4302_v8, %s4802_s1  ;;  %v4304_v61 = vpop.eup %4303 }
 0x7ff   :  { %v4306_v3 = vpop.eup %4305  ;;  %v1271_v44 = vadd.f32 1.0, %v4304_v61  ;;  %v6705_v61 = vld [vmem:[#allocation59_spill] sm:$0xff] }
 0x800   :  { %v1157_v22 = vadd.f32 1.0, %v4306_v3  ;;  %v5494_v3 = vld [vmem:[#allocation3 + $0x38] sm:$0xff] }
 0x801   :  { %4307 = vrcp.f32 %v1271_v44  ;;  %v6706_v44 = vld [vmem:[#allocation60_spill] sm:$0xff] }
 0x802   :  { %4309 = vrcp.f32 %v1157_v22  ;;  %v5498_v22 = vld [vmem:[#allocation3 + $0x30] sm:$0xff] }
 0x80e   :  { %v4308_v35 = vpop.eup %4307 }
 0x80f   :  { %v4310_v36 = vpop.eup %4309  ;;  %v1278_v4 = vmul.f32 %v4308_v35, %v6704_v30  ;;  %v6710_v30 = vld [vmem:[#allocation65_spill] sm:$0xff] }
 0x810   :  { %v1164_v27 = vmul.f32 %v4310_v36, %v5350_v63  ;;  %v4123_v63 = vmul.f32 -1.442695, %v1150_v43  ;;  %v5470_v43 = vld [vmem:[#allocation3 + $0x68] sm:$0xff] }
 0x86e   :  { %v1281_v19 = vpop.permute.xlu1 %1280 }
 0x86f   :  { %v1283_v47 = vmul.f32 %v4308_v35, %v1281_v19  ;;  %v6707_v35 = vld [vmem:[#allocation61_spill] sm:$0xff]  ;;  %v5502_v19 = vld [vmem:[#allocation3 + $0x28] sm:$0xff] }
 0x870   :  { %v1167_v13 = vpop.permute.xlu0 %1166 }
 0x871   :  { %1285 = vrot.lane.b32.xlu1 %v1283_v47, %s4802_s1  ;;  %v1169_v17 = vmul.f32 %v4310_v36, %v1167_v13  ;;  %v6708_v47 = vld [vmem:[#allocation62_spill] sm:$0xff]  ;;  %v6709_v13 = vld [vmem:[#allocation63_spill] sm:$0xff] }
 0x872   :  { %v5506_v36 = vld [vmem:[#allocation3 + $0x20] sm:$0xff] }
 0x873   :  { %1171 = vrot.lane.b32.xlu0 %v1169_v17, %s4802_s1  ;;  %v5510_v17 = vld [vmem:[#allocation3 + $0x18] sm:$0xff] }
 0x8e3   :  { %v1286_v24 = vpop.permute.xlu1 %1285 }
 0x8e4   :  { %v5448_v18 = vadd.f32 %v1286_v24, %v1278_v4  ;;  %v5514_v4 = vld [vmem:[#allocation3 + $0x10] sm:$0xff]  ;;  %v6711_v24 = vld [vmem:[#allocation66_spill] sm:$0xff] }
 0x8e5   :  { %v1172_v48 = vpop.permute.xlu0 %1171 }
 0x8e6   :  { %4311 = vtanh.f32 %v5448_v18  ;;  %v5452_v49 = vadd.f32 %v1172_v48, %v1164_v27  ;;  %v5518_v27 = vld [vmem:[#allocation3 + $0x8] sm:$0xff]  ;;  %v5521_v48 = vld [vmem:[#allocation7 + $0x78] sm:$0xff] }
 0x8e7   :  { %6712 = vst [vmem:[#allocation44_spill] sm:$0xff] %v5521_v48 }
 0x8e8   :  { %4313 = vtanh.f32 %v5452_v49 }
 0x8e9   :  { %4315 = vpow2.f32 %v4127_v20  ;;  %v5535_v20 = vld [vmem:[#allocation5 + $0x68] sm:$0xff] }
 0x8ea   :  { %4317 = vpow2.f32 %v4123_v63  ;;  %6715 = vst [vmem:[#allocation50_spill] sm:$0xff] %v5535_v20  ;;  %v5538_v63 = vld [vmem:[#allocation5 + $0x60] sm:$0xff] }
 0x8eb   :  { %6716 = vst [vmem:[#allocation52_spill] sm:$0xff] %v5538_v63 }
 0x8f3   :  { %v4312_v58 = vpop.eup %4311 }
 0x8f4   :  { %1291 = vrot.lane.b32.xlu1 %v4312_v58, %s4802_s1  ;;  %v5524_v58 = vld [vmem:[#allocation3] sm:$0xff] }
 0x8f5   :  { %v4314_v59 = vpop.eup %4313 }
 0x8f6   :  { %1177 = vrot.lane.b32.xlu0 %v4314_v59, %s4802_s1  ;;  %v4316_v23 = vpop.eup %4315  ;;  %v5528_v59 = vld [vmem:[#allocation5 + $0x78] sm:$0xff] }
 0x8f7   :  { %v4318_v25 = vpop.eup %4317  ;;  %v1272_v26 = vadd.f32 1.0, %v4316_v23  ;;  %6713 = vst [vmem:[#allocation46_spill] sm:$0xff] %v5528_v59  ;;  %v5541_v23 = vld [vmem:[#allocation5 + $0x58] sm:$0xff] }
 0x8f8   :  { %v1158_v31 = vadd.f32 1.0, %v4318_v25  ;;  %6717 = vst [vmem:[#allocation14_spill] sm:$0xff] %v5541_v23  ;;  %v5544_v25 = vld [vmem:[#allocation5 + $0x50] sm:$0xff] }
 0x8f9   :  { %4319 = vrcp.f32 %v1272_v26  ;;  %6718 = vst [vmem:[#allocation15_spill] sm:$0xff] %v5544_v25  ;;  %v5547_v26 = vld [vmem:[#allocation5 + $0x48] sm:$0xff] }
 0x8fa   :  { %1656 = vperm.xlu0 %4237, %v4136_v60   ;;  %4321 = vrcp.f32 %v1158_v31  ;;  %v5531_v60 = vld [vmem:[#allocation5 + $0x70] sm:$0xff]  ;;  %6719 = vst [vmem:[#allocation16_spill] sm:$0xff] %v5547_v26  ;;  %v5550_v31 = vld [vmem:[#allocation5 + $0x40] sm:$0xff] }
 0x8fb   :  { %6714 = vst [vmem:[#allocation48_spill] sm:$0xff] %v5531_v60  ;;  %6720 = vst [vmem:[#allocation17_spill] sm:$0xff] %v5550_v31 }
 0x906   :  { %v4320_v34 = vpop.eup %4319 }
 0x907   :  { %v4322_v7 = vpop.eup %4321 }
 0x966   :  { %v1292_v39 = vpop.permute.xlu1 %1291 }
 0x967   :  { %v1294_v41 = vmul.f32 %v4320_v34, %v1292_v39  ;;  %v5553_v34 = vld [vmem:[#allocation5 + $0x38] sm:$0xff]  ;;  %v5556_v39 = vld [vmem:[#allocation5 + $0x30] sm:$0xff] }
 0x968   :  { %v1178_v8 = vpop.permute.xlu0 %1177  ;;  %6721 = vst [vmem:[#allocation18_spill] sm:$0xff] %v5553_v34  ;;  %6722 = vst [vmem:[#allocation19_spill] sm:$0xff] %v5556_v39 }
 0x969   :  { %4129 = vmatmul.mubr.msk.f32.vlgmr.msra.gmra.mxu0 %vm247_vm0, %v1294_v41  ;;  %v1180_v62 = vmul.f32 %v4322_v7, %v1178_v8 }
 0x96a   :  { %1566 = vmatpush1.msra.mxu0 %v5215_v9  ;;  %1613 = vmatprep.mubr.f32.mxu0 %v6645_v46 }
 0x96b   :  { %1567 = vmatprep.subr.mxu0 %v5217_v29  ;;  %4132 = vmatmul.mubr.msk.f32.vlgmr.msra.gmra.mxu1 %vm247_vm0, %v1180_v62 }
 0x96c   :  { %1568 = vmatpush1.msra.mxu0 %v5220_v11  ;;  %1678 = vmatpush1.msra.mxu1 %v5466_v5 }
 0x96d   :  { %1725 = vmatprep.mubr.f32.mxu1 %v6645_v46  ;;  %1679 = vmatprep.subr.mxu1 %v5470_v43 }
 0x96e   :  { %1569 = vmatprep.subr.mxu0 %v5224_v0  ;;  %1680 = vmatpush1.msra.mxu1 %v5474_v33 }
 0x96f   :  { %1570 = vmatpush1.msra.mxu0 %v5227_v21  ;;  %1681 = vmatprep.subr.mxu1 %v5478_v45 }
 0x970   :  { %1571 = vmatprep.subr.mxu0 %v5230_v16  ;;  %1682 = vmatpush1.msra.mxu1 %v5482_v1 }
 0x971   :  { %1572 = vmatpush1.msra.mxu0 %v5233_v42  ;;  %1683 = vmatprep.subr.mxu1 %v5486_v10 }
 0x972   :  { %1573 = vmatprep.subr.mxu0 %v5236_v40  ;;  %1684 = vmatpush1.msra.mxu1 %v5490_v12 }
 0x973   :  { %1574 = vmatpush1.msra.mxu0 %v6705_v61  ;;  %1685 = vmatprep.subr.mxu1 %v5494_v3 }
 0x974   :  { %1575 = vmatprep.subr.mxu0 %v6706_v44  ;;  %1686 = vmatpush1.msra.mxu1 %v5498_v22 }
 0x975   :  { %1576 = vmatpush1.msra.mxu0 %v6707_v35  ;;  %1687 = vmatprep.subr.mxu1 %v5502_v19 }
 0x976   :  { %1577 = vmatprep.subr.mxu0 %v6708_v47  ;;  %1688 = vmatpush1.msra.mxu1 %v5506_v36 }
 0x977   :  { %1578 = vmatpush1.msra.mxu0 %v6709_v13  ;;  %1689 = vmatprep.subr.mxu1 %v5510_v17 }
 0x978   :  { %1579 = vmatprep.subr.mxu0 %v6710_v30  ;;  %1690 = vmatpush1.msra.mxu1 %v5514_v4 }
 0x979   :  { %1580 = vmatpush1.msra.mxu0 %v6711_v24  ;;  %1691 = vmatprep.subr.mxu1 %v5518_v27 }
 0x97a   :  { %1782 = vmatprep.subr.mxu0 %v5521_v48  ;;  %1692 = vmatpush1.msra.mxu1 %v5524_v58 }
 0x97b   :  { %4137 = vmatmul.mubr.msk.f32.vlgmr.msra.gmra.mxu1 %vm247_vm0, %v1294_v41  ;;  %1856 = vmatprep.subr.mxu1 %v5528_v59  ;;  %v1361_v41 = vpop.f32.mrf.mxu1 }
 0x97c   :  { %1857 = vmatpush1.msra.mxu1 %v5531_v60  ;;  %1904 = vmatprep.mubr.f32.mxu1 %v6645_v46 }
 0x97d   :  { %1858 = vmatprep.subr.mxu1 %v5535_v20  ;;  %v1363_v8 = vpop.f32.mrf.mxu1 }
 0x97e   :  { %1859 = vmatpush1.msra.mxu1 %v5538_v63 }
 0x97f   :  { %1860 = vmatprep.subr.mxu1 %v5541_v23 }
 0x980   :  { %1861 = vmatpush1.msra.mxu1 %v5544_v25 }
 0x981   :  { %1862 = vmatprep.subr.mxu1 %v5547_v26 }
 0x982   :  { %1863 = vmatpush1.msra.mxu1 %v5550_v31 }
 0x983   :  { %1864 = vmatprep.subr.mxu1 %v5553_v34 }
 0x984   :  { %1865 = vmatpush1.msra.mxu1 %v5556_v39  ;;  %v6723_v39 = vld [vmem:[#allocation56_spill] sm:$0xff] }
 0x985   :  { %1866 = vmatprep.subr.mxu1 %v6692_v50 }
 0x986   :  { %1867 = vmatpush1.msra.mxu1 %v6693_v51  ;;  %v1657_v51 = vpop.permute.xlu0 %1656 }
 0x987   :  { %1868 = vmatprep.subr.mxu1 %v6694_v52  ;;  %v1659_v63 = vmul.f32 %v1657_v51, %v6702_v6  ;;  %v5655_v6 = vld [vmem:[#allocation10 + $0x58] sm:$0xff] }
 0x988   :  { %1869 = vmatpush1.msra.mxu1 %v6695_v53  ;;  %6740 = vst [vmem:[#allocation41_spill] sm:$0xff] %v5655_v6 }
 0x989   :  { %1870 = vmatprep.subr.mxu1 %v6696_v54  ;;  %v1660_v54 = vmul.f32 %v1657_v51, %v6700_v2 }
 0x98a   :  { %1871 = vmatpush1.msra.mxu1 %v6697_v55 }
 0x98b   :  { %2036 = vmatprep.subr.mxu1 %v6698_v56 }
 0xa29   :  { %v1435_v7 = vpop.f32.mrf.mxu0 }
 0xa2b   :  { %v1437_v62 = vpop.f32.mrf.mxu0  ;;  %v5567_v50 = vpop.f32.mrf.mxu1 }
 0xa2c   :  { %v1438_v34 = vadd.f32 %v1437_v62, %v1363_v8 }
 0xa2d   :  { %v5569_v52 = vpop.f32.mrf.mxu1 }
 0xa2e   :  { %v1441_v31 = vadd.f32 %v1438_v34, %v6723_v39  ;;  %v1436_v34 = vadd.f32 %v1435_v7, %v1361_v41 }
 0xa30   :  { %4323 = vtanh.f32 %v1441_v31  ;;  %v1440_v62 = vadd.f32 %v1436_v34, %v5207_v14  ;;  %v4131_v34 = vmul.f32 -1.442695, %v1441_v31  ;;  %v5595_v31 = vld [vmem:[#allocation7 + $0x68] sm:$0xff] }
 0xa32   :  { %v4130_v23 = vmul.f32 -1.442695, %v1440_v62 }
 0xa3b   :  { %v1727_v53 = vpop.f32.mrf.mxu1 }
 0xa3c   :  { %v1732_v20 = vadd.f32 %v1727_v53, %v1659_v63 }
 0xa3d   :  { %v4324_v26 = vpop.eup %4323  ;;  %v1729_v55 = vpop.f32.mrf.mxu1 }
 0xa3e   :  { %v1733_v25 = vadd.f32 %v1729_v55, %v1660_v54  ;;  %1457 = vrot.lane.b32.xlu1 %v4324_v26, %s4802_s1  ;;  %v1734_v2 = vadd.f32 %v1732_v20, %v6703_v37  ;;  %v5647_v37 = vld [vmem:[#allocation10 + $0x68] sm:$0xff] }
 0xa3f   :  { %6738 = vst [vmem:[#allocation38_spill] sm:$0xff] %v5647_v37 }
 0xa40   :  { %v1735_v56 = vadd.f32 %v1733_v25, %v6701_v28  ;;  %v4138_v54 = vmul.f32 -1.442695, %v1734_v2 }
 0xa42   :  { %4325 = vtanh.f32 %v1735_v56  ;;  %v4139_v62 = vmul.f32 -1.442695, %v1735_v56  ;;  %v5598_v56 = vld [vmem:[#allocation7 + $0x60] sm:$0xff] }
 0xa43   :  { %4327 = vpow2.f32 %v4130_v23 }
 0xa44   :  { %4329 = vpow2.f32 %v4138_v54 }
 0xa4f   :  { %v4326_v8 = vpop.eup %4325 }
 0xa50   :  { %1751 = vrot.lane.b32.xlu0 %v4326_v8, %s4802_s1  ;;  %v4328_v60 = vpop.eup %4327 }
 0xa51   :  { %v1448_v55 = vadd.f32 1.0, %v4328_v60  ;;  %v4330_v25 = vpop.eup %4329 }
 0xa52   :  { %v1742_v8 = vadd.f32 1.0, %v4330_v25 }
 0xa53   :  { %4331 = vrcp.f32 %v1448_v55 }
 0xa54   :  { %4333 = vrcp.f32 %v1742_v8 }
 0xa60   :  { %v4332_v26 = vpop.eup %4331 }
 0xa61   :  { %v4334_v41 = vpop.eup %4333  ;;  %v1455_v20 = vmul.f32 %v4332_v26, %v5355_v15 }
 0xab0   :  { %v1458_v28 = vpop.permute.xlu1 %1457 }
 0xab1   :  { %v1460_v59 = vmul.f32 %v4332_v26, %v1458_v28  ;;  %v1749_v28 = vmul.f32 %v4334_v41, %v5448_v18 }
 0xab3   :  { %1462 = vrot.lane.b32.xlu1 %v1460_v59, %s4802_s1 }
 0xac2   :  { %v1752_v23 = vpop.permute.xlu0 %1751 }
 0xac3   :  { %v1754_v7 = vmul.f32 %v4334_v41, %v1752_v23  ;;  %v5591_v41 = vld [vmem:[#allocation7 + $0x70] sm:$0xff]  ;;  %v5601_v23 = vld [vmem:[#allocation7 + $0x58] sm:$0xff] }
 0xac5   :  { %1756 = vrot.lane.b32.xlu0 %v1754_v7, %s4802_s1  ;;  %v5604_v7 = vld [vmem:[#allocation7 + $0x50] sm:$0xff] }
 0xac6   :  { %6725 = vst [vmem:[#allocation21_spill] sm:$0xff] %v5604_v7 }
 0xb25   :  { %v1463_v63 = vpop.permute.xlu1 %1462 }
 0xb26   :  { %v5581_v2 = vadd.f32 %v1463_v63, %v1455_v20  ;;  %v5607_v20 = vld [vmem:[#allocation7 + $0x48] sm:$0xff]  ;;  %v5610_v63 = vld [vmem:[#allocation7 + $0x40] sm:$0xff] }
 0xb27   :  { %6726 = vst [vmem:[#allocation22_spill] sm:$0xff] %v5607_v20  ;;  %6727 = vst [vmem:[#allocation23_spill] sm:$0xff] %v5610_v63 }
 0xb28   :  { %4335 = vtanh.f32 %v5581_v2 }
 0xb35   :  { %v4336_v60 = vpop.eup %4335 }
 0xb36   :  { %1468 = vrot.lane.b32.xlu1 %v4336_v60, %s4802_s1  ;;  %v5613_v60 = vld [vmem:[#allocation7 + $0x38] sm:$0xff] }
 0xb37   :  { %v1757_v51 = vpop.permute.xlu0 %1756  ;;  %6728 = vst [vmem:[#allocation24_spill] sm:$0xff] %v5613_v60 }
 0xb38   :  { %v5586_v59 = vadd.f32 %v1757_v51, %v1749_v28  ;;  %v5616_v28 = vld [vmem:[#allocation7 + $0x30] sm:$0xff]  ;;  %v5619_v51 = vld [vmem:[#allocation7 + $0x28] sm:$0xff] }
 0xb39   :  { %6729 = vst [vmem:[#allocation25_spill] sm:$0xff] %v5616_v28  ;;  %6730 = vst [vmem:[#allocation26_spill] sm:$0xff] %v5619_v51 }
 0xb3a   :  { %6724 = vst [vmem:[#allocation20_spill] sm:$0xff] %v5586_v59  ;;  %4337 = vtanh.f32 %v5586_v59  ;;  %v5643_v59 = vld [vmem:[#allocation10 + $0x70] sm:$0xff] }
 0xb3b   :  { %4339 = vpow2.f32 %v4131_v34  ;;  %v5625_v34 = vld [vmem:[#allocation7 + $0x18] sm:$0xff]  ;;  %6737 = vst [vmem:[#allocation37_spill] sm:$0xff] %v5643_v59 }
 0xb3c   :  { %4341 = vpow2.f32 %v4139_v62  ;;  %6732 = vst [vmem:[#allocation28_spill] sm:$0xff] %v5625_v34  ;;  %v5631_v62 = vld [vmem:[#allocation7 + $0x8] sm:$0xff] }
 0xb3d   :  { %6734 = vst [vmem:[#allocation34_spill] sm:$0xff] %v5631_v62 }
 0xb47   :  { %v4338_v53 = vpop.eup %4337 }
 0xb48   :  { %1762 = vrot.lane.b32.xlu0 %v4338_v53, %s4802_s1  ;;  %v4340_v15 = vpop.eup %4339  ;;  %v5622_v53 = vld [vmem:[#allocation7 + $0x20] sm:$0xff] }
 0xb49   :  { %v1449_v54 = vadd.f32 1.0, %v4340_v15  ;;  %v4342_v55 = vpop.eup %4341  ;;  %6731 = vst [vmem:[#allocation27_spill] sm:$0xff] %v5622_v53  ;;  %v5628_v15 = vld [vmem:[#allocation7 + $0x10] sm:$0xff] }
 0xb4a   :  { %v1743_v18 = vadd.f32 1.0, %v4342_v55  ;;  %6733 = vst [vmem:[#allocation33_spill] sm:$0xff] %v5628_v15 }
 0xb4b   :  { %4343 = vrcp.f32 %v1449_v54  ;;  %v5634_v54 = vld [vmem:[#allocation7] sm:$0xff] }
 0xb4c   :  { %4345 = vrcp.f32 %v1743_v18  ;;  %6735 = vst [vmem:[#allocation35_spill] sm:$0xff] %v5634_v54 }
 0xb58   :  { %v4344_v25 = vpop.eup %4343 }
 0xb59   :  { %v4346_v55 = vpop.eup %4345 }
 0xba8   :  { %v1469_v26 = vpop.permute.xlu1 %1468 }
 0xba9   :  { %v1471_v8 = vmul.f32 %v4344_v25, %v1469_v26  ;;  %v5638_v26 = vld [vmem:[#allocation10 + $0x78] sm:$0xff] }
 0xbaa   :  { %6736 = vst [vmem:[#allocation36_spill] sm:$0xff] %v5638_v26 }
 0xbab   :  { %4133 = vmatmul.mubr.msk.f32.vlgmr.msra.gmra.mxu0 %vm247_vm0, %v1471_v8 }
 0xbac   :  { %1783 = vmatpush1.msra.mxu0 %v5591_v41  ;;  %1830 = vmatprep.mubr.f32.mxu0 %v6645_v46 }
 0xbad   :  { %1784 = vmatprep.subr.mxu0 %v5595_v31 }
 0xbae   :  { %1785 = vmatpush1.msra.mxu0 %v5598_v56 }
 0xbaf   :  { %1786 = vmatprep.subr.mxu0 %v5601_v23 }
 0xbb0   :  { %1787 = vmatpush1.msra.mxu0 %v5604_v7 }
 0xbb1   :  { %1788 = vmatprep.subr.mxu0 %v5607_v20 }
 0xbb2   :  { %1789 = vmatpush1.msra.mxu0 %v5610_v63 }
 0xbb3   :  { %1790 = vmatprep.subr.mxu0 %v5613_v60 }
 0xbb4   :  { %1791 = vmatpush1.msra.mxu0 %v5616_v28 }
 0xbb5   :  { %1792 = vmatprep.subr.mxu0 %v5619_v51 }
 0xbb6   :  { %1793 = vmatpush1.msra.mxu0 %v5622_v53 }
 0xbb7   :  { %1794 = vmatprep.subr.mxu0 %v5625_v34 }
 0xbb8   :  { %1795 = vmatpush1.msra.mxu0 %v5628_v15 }
 0xbb9   :  { %1796 = vmatprep.subr.mxu0 %v5631_v62 }
 0xbba   :  { %1797 = vmatpush1.msra.mxu0 %v5634_v54  ;;  %v1763_v25 = vpop.permute.xlu0 %1762 }
 0xbbb   :  { %4140 = vmatmul.mubr.msk.f32.vlgmr.msra.gmra.mxu0 %vm247_vm0, %v1471_v8  ;;  %1962 = vmatprep.subr.mxu0 %v5638_v26  ;;  %v5641_v18 = vmul.f32 %v4346_v55, %v1763_v25  ;;  %v5652_v8 = vld [vmem:[#allocation10 + $0x60] sm:$0xff]  ;;  %v5659_v55 = vld [vmem:[#allocation10 + $0x50] sm:$0xff]  ;;  %v5663_v25 = vld [vmem:[#allocation10 + $0x48] sm:$0xff] }
 0xbbc   :  { %1963 = vmatpush1.msra.mxu0 %v5643_v59  ;;  %2010 = vmatprep.mubr.f32.mxu0 %v6645_v46  ;;  %6739 = vst [vmem:[#allocation39_spill] sm:$0xff] %v5652_v8  ;;  %6741 = vst [vmem:[#allocation43_spill] sm:$0xff] %v5659_v55 }
 0xbbd   :  { %1964 = vmatprep.subr.mxu0 %v5647_v37  ;;  %4141 = vmatmul.mubr.msk.f32.vlgmr.msra.gmra.mxu1 %vm247_vm0, %v5641_v18  ;;  %6742 = vst [vmem:[#allocation45_spill] sm:$0xff] %v5663_v25  ;;  %v5667_v37 = vld [vmem:[#allocation10 + $0x40] sm:$0xff] }
 0xbbe   :  { %1965 = vmatpush1.msra.mxu0 %v5652_v8  ;;  %2037 = vmatpush1.msra.mxu1 %v5215_v9  ;;  %6743 = vst [vmem:[#allocation47_spill] sm:$0xff] %v5667_v37  ;;  %v5675_v9 = vld [vmem:[#allocation10 + $0x30] sm:$0xff] }
 0xbbf   :  { %1966 = vmatprep.subr.mxu0 %v5655_v6  ;;  %2038 = vmatprep.subr.mxu1 %v5217_v29  ;;  %v5671_v6 = vld [vmem:[#allocation10 + $0x38] sm:$0xff]  ;;  %6745 = vst [vmem:[#allocation51_spill] sm:$0xff] %v5675_v9  ;;  %v5679_v29 = vld [vmem:[#allocation10 + $0x28] sm:$0xff] }
 0xbc0   :  { %1967 = vmatpush1.msra.mxu0 %v5659_v55  ;;  %2039 = vmatpush1.msra.mxu1 %v5220_v11  ;;  %6744 = vst [vmem:[#allocation49_spill] sm:$0xff] %v5671_v6  ;;  %6746 = vst [vmem:[#allocation53_spill] sm:$0xff] %v5679_v29  ;;  %v5683_v11 = vld [vmem:[#allocation10 + $0x20] sm:$0xff] }
 0xbc1   :  { %1968 = vmatprep.subr.mxu0 %v5663_v25  ;;  %2040 = vmatprep.subr.mxu1 %v5224_v0  ;;  %6747 = vst [vmem:[#allocation54_spill] sm:$0xff] %v5683_v11  ;;  %v5687_v0 = vld [vmem:[#allocation10 + $0x18] sm:$0xff] }
 0xbc2   :  { %1969 = vmatpush1.msra.mxu0 %v5667_v37  ;;  %2041 = vmatpush1.msra.mxu1 %v5227_v21  ;;  %6748 = vst [vmem:[#allocation55_spill] sm:$0xff] %v5687_v0  ;;  %v5691_v21 = vld [vmem:[#allocation10 + $0x10] sm:$0xff] }
 0xbc3   :  { %1970 = vmatprep.subr.mxu0 %v5671_v6  ;;  %2042 = vmatprep.subr.mxu1 %v5230_v16  ;;  %6749 = vst [vmem:[#allocation58_spill] sm:$0xff] %v5691_v21  ;;  %v5695_v16 = vld [vmem:[#allocation10 + $0x8] sm:$0xff] }
 0xbc4   :  { %1971 = vmatpush1.msra.mxu0 %v5675_v9  ;;  %2043 = vmatpush1.msra.mxu1 %v5233_v42  ;;  %6750 = vst [vmem:[#allocation64_spill] sm:$0xff] %v5695_v16  ;;  %v5699_v42 = vld [vmem:[#allocation10] sm:$0xff] }
 0xbc5   :  { %1972 = vmatprep.subr.mxu0 %v5679_v29  ;;  %2044 = vmatprep.subr.mxu1 %v5236_v40  ;;  %6751 = vst [vmem:[#allocation59_spill] sm:$0xff] %v5699_v42 }
 0xbc6   :  { %1973 = vmatpush1.msra.mxu0 %v5683_v11  ;;  %2045 = vmatpush1.msra.mxu1 %v6705_v61 }
 0xbc7   :  { %1974 = vmatprep.subr.mxu0 %v5687_v0  ;;  %2046 = vmatprep.subr.mxu1 %v6706_v44 }
 0xbc8   :  { %1975 = vmatpush1.msra.mxu0 %v5691_v21  ;;  %2047 = vmatpush1.msra.mxu1 %v6707_v35 }
 0xbc9   :  { %1976 = vmatprep.subr.mxu0 %v5695_v16  ;;  %2048 = vmatprep.subr.mxu1 %v6708_v47 }
 0xbca   :  { %1977 = vmatpush1.msra.mxu0 %v5699_v42  ;;  %2049 = vmatpush1.msra.mxu1 %v6709_v13 }
 0xbcb   :  { %2148 = vmatprep.subr.mxu0 %v5434_v57  ;;  %2050 = vmatprep.subr.mxu1 %v6710_v30 }
 0xbcc   :  { %2084 = vmatprep.mubr.f32.mxu1 %v6645_v46  ;;  %2051 = vmatpush1.msra.mxu1 %v6711_v24 }
 0xbcd   :  { %2253 = vmatprep.subr.mxu1 %v5521_v48 }
 0xc6b   :  { %v1615_v40 = vpop.f32.mrf.mxu0 }
 0xc6d   :  { %v1617_v61 = vpop.f32.mrf.mxu0 }
 0xc6e   :  { %v1618_v44 = vadd.f32 %v1617_v61, %v5569_v52  ;;  %v1616_v52 = vadd.f32 %v1615_v40, %v5567_v50 }
 0xc70   :  { %v1621_v35 = vadd.f32 %v1618_v44, %v5335_v38  ;;  %v1620_v61 = vadd.f32 %v1616_v52, %v5343_v32 }
 0xc72   :  { %4347 = vtanh.f32 %v1621_v35  ;;  %v4134_v44 = vmul.f32 -1.442695, %v1620_v61 }
 0xc7b   :  { %v1832_v47 = vpop.f32.mrf.mxu0 }
 0xc7d   :  { %v1906_v42 = vpop.f32.mrf.mxu1  ;;  %v1834_v57 = vpop.f32.mrf.mxu0 }
 0xc7e   :  { %v1907_v16 = vadd.f32 %v1906_v42, %v1832_v47 }
 0xc7f   :  { %v4348_v13 = vpop.eup %4347  ;;  %v1908_v21 = vpop.f32.mrf.mxu1 }
 0xc80   :  { %v1909_v30 = vadd.f32 %v1908_v21, %v1834_v57  ;;  %1637 = vrot.lane.b32.xlu1 %v4348_v13, %s4802_s1  ;;  %v1911_v38 = vadd.f32 %v1907_v16, %v5207_v14 }
 0xc82   :  { %v1912_v24 = vadd.f32 %v1909_v30, %v6723_v39  ;;  %v4142_v47 = vmul.f32 -1.442695, %v1911_v38 }
 0xc84   :  { %4349 = vtanh.f32 %v1912_v24 }
 0xc85   :  { %4351 = vpow2.f32 %v4134_v44 }
 0xc86   :  { %4353 = vpow2.f32 %v4142_v47  ;;  %v4135_v47 = vmul.f32 -1.442695, %v1621_v35 }
 0xc91   :  { %v4350_v48 = vpop.eup %4349 }
 0xc92   :  { %1928 = vrot.lane.b32.xlu0 %v4350_v48, %s4802_s1  ;;  %v4352_v42 = vpop.eup %4351 }
 0xc93   :  { %v1628_v0 = vadd.f32 1.0, %v4352_v42  ;;  %v4354_v57 = vpop.eup %4353 }
 0xc94   :  { %v1919_v39 = vadd.f32 1.0, %v4354_v57 }
 0xc95   :  { %4355 = vrcp.f32 %v1628_v0 }
 0xc96   :  { %4357 = vrcp.f32 %v1919_v39  ;;  %v4148_v39 = vld [vmem:[%s6409_s0 + $0x8] sm:$0x3] }
 0xca2   :  { %v4356_v21 = vpop.eup %4355 }
 0xca3   :  { %v4358_v48 = vpop.eup %4357  ;;  %v1635_v16 = vmul.f32 %v4356_v21, %v5452_v49 }
 0xca4   :  { %v1926_v61 = vmul.f32 %v4358_v48, %v5581_v2 }
 0xcf2   :  { %v1638_v13 = vpop.permute.xlu1 %1637 }
 0xcf3   :  { %v1640_v30 = vmul.f32 %v4356_v21, %v1638_v13  ;;  %v4143_v21 = vmul.f32 -1.442695, %v1912_v24 }
 0xcf5   :  { %1642 = vrot.lane.b32.xlu1 %v1640_v30, %s4802_s1 }
 0xd04   :  { %v1929_v50 = vpop.permute.xlu0 %1928 }
 0xd05   :  { %v1931_v40 = vmul.f32 %v4358_v48, %v1929_v50 }
 0xd07   :  { %1933 = vrot.lane.b32.xlu0 %v1931_v40, %s4802_s1 }
 0xd67   :  { %v1643_v52 = vpop.permute.xlu1 %1642 }
 0xd68   :  { %v5720_v38 = vadd.f32 %v1643_v52, %v1635_v16  ;;  %v6752_v16 = vld [vmem:[#allocation46_spill] sm:$0xff] }
 0xd6a   :  { %4359 = vtanh.f32 %v5720_v38 }
 0xd77   :  { %v4360_v0 = vpop.eup %4359 }
 0xd78   :  { %1648 = vrot.lane.b32.xlu1 %v4360_v0, %s4802_s1  ;;  %v6753_v0 = vld [vmem:[#allocation48_spill] sm:$0xff] }
 0xd79   :  { %v1934_v44 = vpop.permute.xlu0 %1933 }
 0xd7a   :  { %v5728_v42 = vadd.f32 %v1934_v44, %v1926_v61  ;;  %v6754_v61 = vld [vmem:[#allocation50_spill] sm:$0xff]  ;;  %v6757_v44 = vld [vmem:[#allocation15_spill] sm:$0xff] }
 0xd7c   :  { %2127 = vperm.xlu1 %4238, %v4148_v39   ;;  %4361 = vtanh.f32 %v5728_v42  ;;  %v6755_v39 = vld [vmem:[#allocation52_spill] sm:$0xff] }
 0xd7d   :  { %4363 = vpow2.f32 %v4135_v47  ;;  %v6759_v47 = vld [vmem:[#allocation17_spill] sm:$0xff] }
 0xd7e   :  { %4365 = vpow2.f32 %v4143_v21  ;;  %v6761_v21 = vld [vmem:[#allocation19_spill] sm:$0xff] }
 0xd89   :  { %v4362_v49 = vpop.eup %4361 }
 0xd8a   :  { %1939 = vrot.lane.b32.xlu0 %v4362_v49, %s4802_s1  ;;  %v4364_v57 = vpop.eup %4363  ;;  %v6758_v49 = vld [vmem:[#allocation16_spill] sm:$0xff] }
 0xd8b   :  { %v1629_v13 = vadd.f32 1.0, %v4364_v57  ;;  %v4366_v2 = vpop.eup %4365  ;;  %v6760_v57 = vld [vmem:[#allocation18_spill] sm:$0xff] }
 0xd8c   :  { %v1920_v40 = vadd.f32 1.0, %v4366_v2  ;;  %v5776_v2 = vld [vmem:[#allocation5 + $0x20] sm:$0xff] }
 0xd8d   :  { %4367 = vrcp.f32 %v1629_v13  ;;  %v5772_v13 = vld [vmem:[#allocation5 + $0x28] sm:$0xff] }
 0xd8e   :  { %4369 = vrcp.f32 %v1920_v40  ;;  %v5792_v40 = vld [vmem:[#allocation5] sm:$0xff] }
 0xd9a   :  { %v4368_v30 = vpop.eup %4367 }
 0xd9b   :  { %v4370_v35 = vpop.eup %4369 }
 0xdea   :  { %v1649_v48 = vpop.permute.xlu1 %1648 }
 0xdeb   :  { %v1651_v50 = vmul.f32 %v4368_v30, %v1649_v48  ;;  %v5780_v30 = vld [vmem:[#allocation5 + $0x18] sm:$0xff]  ;;  %v5784_v48 = vld [vmem:[#allocation5 + $0x10] sm:$0xff] }
 0xded   :  { %4144 = vmatmul.mubr.msk.f32.vlgmr.msra.gmra.mxu0 %vm247_vm0, %v1651_v50  ;;  %v5788_v50 = vld [vmem:[#allocation5 + $0x8] sm:$0xff] }
 0xdee   :  { %2149 = vmatpush1.msra.mxu0 %v5466_v5  ;;  %2196 = vmatprep.mubr.f32.mxu0 %v6645_v46 }
 0xdef   :  { %2150 = vmatprep.subr.mxu0 %v5470_v43 }
 0xdf0   :  { %2151 = vmatpush1.msra.mxu0 %v5474_v33 }
 0xdf1   :  { %2152 = vmatprep.subr.mxu0 %v5478_v45 }
 0xdf2   :  { %2153 = vmatpush1.msra.mxu0 %v5482_v1 }
 0xdf3   :  { %2154 = vmatprep.subr.mxu0 %v5486_v10 }
 0xdf4   :  { %2155 = vmatpush1.msra.mxu0 %v5490_v12 }
 0xdf5   :  { %2156 = vmatprep.subr.mxu0 %v5494_v3 }
 0xdf6   :  { %2157 = vmatpush1.msra.mxu0 %v5498_v22 }
 0xdf7   :  { %2158 = vmatprep.subr.mxu0 %v5502_v19 }
 0xdf8   :  { %2159 = vmatpush1.msra.mxu0 %v5506_v36 }
 0xdf9   :  { %2160 = vmatprep.subr.mxu0 %v5510_v17 }
 0xdfa   :  { %2161 = vmatpush1.msra.mxu0 %v5514_v4 }
 0xdfb   :  { %2162 = vmatprep.subr.mxu0 %v5518_v27 }
 0xdfc   :  { %2163 = vmatpush1.msra.mxu0 %v5524_v58  ;;  %v1940_v24 = vpop.permute.xlu0 %1939 }
 0xdfd   :  { %4149 = vmatmul.mubr.msk.f32.vlgmr.msra.gmra.mxu0 %vm247_vm0, %v5641_v18  ;;  %2327 = vmatprep.subr.mxu0 %v6752_v16  ;;  %v1942_v52 = vmul.f32 %v4370_v35, %v1940_v24  ;;  %v6756_v18 = vld [vmem:[#allocation14_spill] sm:$0xff]  ;;  %v5796_v35 = vld [vmem:[#allocation8 + $0x78] sm:$0xff] }
 0xdfe   :  { %2328 = vmatpush1.msra.mxu0 %v6753_v0  ;;  %2375 = vmatprep.mubr.f32.mxu0 %v6645_v46  ;;  %v6762_v24 = vld [vmem:[#allocation38_spill] sm:$0xff] }
 0xdff   :  { %2329 = vmatprep.subr.mxu0 %v6754_v61  ;;  %4145 = vmatmul.mubr.msk.f32.vlgmr.msra.gmra.mxu1 %vm247_vm0, %v1942_v52 }
 0xe00   :  { %2330 = vmatpush1.msra.mxu0 %v6755_v39  ;;  %2254 = vmatpush1.msra.mxu1 %v5591_v41 }
 0xe01   :  { %2301 = vmatprep.mubr.f32.mxu1 %v6645_v46  ;;  %2255 = vmatprep.subr.mxu1 %v5595_v31 }
 0xe02   :  { %2331 = vmatprep.subr.mxu0 %v6756_v18  ;;  %2256 = vmatpush1.msra.mxu1 %v5598_v56 }
 0xe03   :  { %2332 = vmatpush1.msra.mxu0 %v6757_v44  ;;  %2257 = vmatprep.subr.mxu1 %v5601_v23 }
 0xe04   :  { %2333 = vmatprep.subr.mxu0 %v6758_v49  ;;  %2258 = vmatpush1.msra.mxu1 %v5604_v7 }
 0xe05   :  { %2334 = vmatpush1.msra.mxu0 %v6759_v47  ;;  %2259 = vmatprep.subr.mxu1 %v5607_v20  ;;  %v6773_v20 = vld [vmem:[#allocation32_spill] sm:$0xff] }
 0xe06   :  { %2335 = vmatprep.subr.mxu0 %v6760_v57  ;;  %2260 = vmatpush1.msra.mxu1 %v5610_v63 }
 0xe07   :  { %2336 = vmatpush1.msra.mxu0 %v6761_v21  ;;  %2261 = vmatprep.subr.mxu1 %v5613_v60 }
 0xe08   :  { %2337 = vmatprep.subr.mxu0 %v5772_v13  ;;  %2262 = vmatpush1.msra.mxu1 %v5616_v28  ;;  %v6772_v28 = vld [vmem:[#allocation31_spill] sm:$0xff] }
 0xe09   :  { %2338 = vmatpush1.msra.mxu0 %v5776_v2  ;;  %2263 = vmatprep.subr.mxu1 %v5619_v51  ;;  %v6771_v51 = vld [vmem:[#allocation40_spill] sm:$0xff] }
 0xe0a   :  { %2339 = vmatprep.subr.mxu0 %v5780_v30  ;;  %2264 = vmatpush1.msra.mxu1 %v5622_v53 }
 0xe0b   :  { %2340 = vmatpush1.msra.mxu0 %v5784_v48  ;;  %2265 = vmatprep.subr.mxu1 %v5625_v34 }
 0xe0c   :  { %2341 = vmatprep.subr.mxu0 %v5788_v50  ;;  %2266 = vmatpush1.msra.mxu1 %v5628_v15  ;;  %v6763_v15 = vld [vmem:[#allocation41_spill] sm:$0xff] }
 0xe0d   :  { %2342 = vmatpush1.msra.mxu0 %v5792_v40  ;;  %2267 = vmatprep.subr.mxu1 %v5631_v62 }
 0xe0e   :  { %2507 = vmatprep.subr.mxu0 %v5796_v35  ;;  %2268 = vmatpush1.msra.mxu1 %v5634_v54 }
 0xe0f   :  { %4152 = vmatmul.mubr.msk.f32.vlgmr.msra.gmra.mxu1 %vm247_vm0, %v1942_v52  ;;  %2433 = vmatprep.subr.mxu1 %v5638_v26  ;;  %v6764_v52 = vld [vmem:[#allocation55_spill] sm:$0xff]  ;;  %v6769_v26 = vld [vmem:[#allocation29_spill] sm:$0xff] }
 0xe10   :  { %2434 = vmatpush1.msra.mxu1 %v5643_v59  ;;  %2481 = vmatprep.mubr.f32.mxu1 %v6645_v46 }
 0xe11   :  { %2435 = vmatprep.subr.mxu1 %v6762_v24  ;;  %v6765_v24 = vld [vmem:[#allocation58_spill] sm:$0xff] }
 0xe12   :  { %2436 = vmatpush1.msra.mxu1 %v5652_v8  ;;  %v6766_v8 = vld [vmem:[#allocation64_spill] sm:$0xff] }
 0xe13   :  { %2437 = vmatprep.subr.mxu1 %v6763_v15  ;;  %v6767_v15 = vld [vmem:[#allocation59_spill] sm:$0xff] }
 0xe14   :  { %2438 = vmatpush1.msra.mxu1 %v5659_v55  ;;  %v6768_v55 = vld [vmem:[#allocation42_spill] sm:$0xff] }
 0xe15   :  { %2439 = vmatprep.subr.mxu1 %v5663_v25 }
 0xe16   :  { %2440 = vmatpush1.msra.mxu1 %v5667_v37  ;;  %v2128_v37 = vpop.permute.xlu1 %2127 }
 0xe17   :  { %2441 = vmatprep.subr.mxu1 %v5671_v6  ;;  %v2130_v60 = vmul.f32 %v2128_v37, %v6772_v28 }
 0xe18   :  { %2442 = vmatpush1.msra.mxu1 %v5675_v9  ;;  %v2131_v9 = vmul.f32 %v2128_v37, %v6769_v26 }
 0xe19   :  { %2443 = vmatprep.subr.mxu1 %v5679_v29 }
 0xe1a   :  { %2444 = vmatpush1.msra.mxu1 %v5683_v11 }
 0xe1b   :  { %2445 = vmatprep.subr.mxu1 %v6764_v52  ;;  %v6770_v52 = vld [vmem:[#allocation30_spill] sm:$0xff] }
 0xe1c   :  { %2446 = vmatpush1.msra.mxu1 %v6765_v24 }
 0xe1d   :  { %2447 = vmatprep.subr.mxu1 %v6766_v8 }
 0xe1e   :  { %2448 = vmatpush1.msra.mxu1 %v6767_v15 }
 0xe1f   :  { %2619 = vmatprep.subr.mxu1 %v6768_v55 }
 0xead   :  { %v2012_v25 = vpop.f32.mrf.mxu0 }
 0xeaf   :  { %v2014_v59 = vpop.f32.mrf.mxu0 }
 0xebd   :  { %v2198_v6 = vpop.f32.mrf.mxu0 }
 0xebe   :  { %v2203_v63 = vadd.f32 %v2198_v6, %v2130_v60 }
 0xebf   :  { %v2200_v54 = vpop.f32.mrf.mxu0  ;;  %v2086_v29 = vpop.f32.mrf.mxu1 }
 0xec0   :  { %v2204_v62 = vadd.f32 %v2200_v54, %v2131_v9  ;;  %v2087_v11 = vadd.f32 %v2086_v29, %v2012_v25  ;;  %v2205_v54 = vadd.f32 %v2203_v63, %v6773_v20  ;;  %v6774_v63 = vld [vmem:[#allocation20_spill] sm:$0xff] }
 0xec1   :  { %v2088_v34 = vpop.f32.mrf.mxu1 }
 0xec2   :  { %v2206_v53 = vadd.f32 %v2204_v62, %v6770_v52  ;;  %v2089_v24 = vadd.f32 %v2088_v34, %v2014_v59  ;;  %v2091_v25 = vadd.f32 %v2087_v11, %v5343_v32  ;;  %v4150_v9 = vmul.f32 -1.442695, %v2205_v54 }
 0xec4   :  { %v2092_v8 = vadd.f32 %v2089_v24, %v6771_v51  ;;  %4371 = vtanh.f32 %v2206_v53  ;;  %v4146_v62 = vmul.f32 -1.442695, %v2091_v25 }
 0xec6   :  { %4373 = vtanh.f32 %v2092_v8 }
 0xec7   :  { %4375 = vpow2.f32 %v4150_v9 }
 0xec8   :  { %4377 = vpow2.f32 %v4146_v62 }
 0xed1   :  { %v4372_v15 = vpop.eup %4371 }
 0xed2   :  { %2222 = vrot.lane.b32.xlu1 %v4372_v15, %s4802_s1 }
 0xed3   :  { %v4374_v55 = vpop.eup %4373 }
 0xed4   :  { %2108 = vrot.lane.b32.xlu0 %v4374_v55, %s4802_s1  ;;  %v4376_v59 = vpop.eup %4375 }
 0xed5   :  { %v4378_v34 = vpop.eup %4377  ;;  %v2213_v29 = vadd.f32 1.0, %v4376_v59 }
 0xed6   :  { %v2099_v24 = vadd.f32 1.0, %v4378_v34  ;;  %v4160_v34 = vld [vmem:[%s6409_s0 + $0xa] sm:$0x3] }
 0xed7   :  { %4379 = vrcp.f32 %v2213_v29  ;;  %v4151_v29 = vmul.f32 -1.442695, %v2206_v53  ;;  %v5847_v53 = vld [vmem:[#allocation8 + $0x68] sm:$0xff] }
 0xed8   :  { %4381 = vrcp.f32 %v2099_v24 }
 0xee4   :  { %v4380_v15 = vpop.eup %4379 }
 0xee5   :  { %v4382_v7 = vpop.eup %4381  ;;  %v2220_v60 = vmul.f32 %v4380_v15, %v6774_v63 }
 0xee6   :  { %v2106_v25 = vmul.f32 %v4382_v7, %v5720_v38 }
 0xf44   :  { %v2223_v51 = vpop.permute.xlu1 %2222 }
 0xf45   :  { %v2225_v55 = vmul.f32 %v4380_v15, %v2223_v51 }
 0xf46   :  { %v2109_v37 = vpop.permute.xlu0 %2108 }
 0xf47   :  { %2227 = vrot.lane.b32.xlu1 %v2225_v55, %s4802_s1  ;;  %v2111_v6 = vmul.f32 %v4382_v7, %v2109_v37  ;;  %v4147_v7 = vmul.f32 -1.442695, %v2092_v8  ;;  %v5851_v8 = vld [vmem:[#allocation8 + $0x60] sm:$0xff] }
 0xf49   :  { %2113 = vrot.lane.b32.xlu0 %v2111_v6, %s4802_s1 }
 0xfb9   :  { %v2228_v11 = vpop.permute.xlu1 %2227 }
 0xfba   :  { %v5830_v54 = vadd.f32 %v2228_v11, %v2220_v60 }
 0xfbb   :  { %v2114_v9 = vpop.permute.xlu0 %2113 }
 0xfbc   :  { %4383 = vtanh.f32 %v5830_v54  ;;  %v5834_v62 = vadd.f32 %v2114_v9, %v2106_v25  ;;  %v5843_v9 = vld [vmem:[#allocation8 + $0x70] sm:$0xff] }
 0xfbe   :  { %4385 = vtanh.f32 %v5834_v62 }
 0xfbf   :  { %4387 = vpow2.f32 %v4151_v29 }
 0xfc0   :  { %4389 = vpow2.f32 %v4147_v7 }
 0xfc9   :  { %v4384_v51 = vpop.eup %4383 }
 0xfca   :  { %2233 = vrot.lane.b32.xlu1 %v4384_v51, %s4802_s1  ;;  %v5857_v51 = vld [vmem:[#allocation8 + $0x58] sm:$0xff] }
 0xfcb   :  { %v4386_v59 = vpop.eup %4385 }
 0xfcc   :  { %2119 = vrot.lane.b32.xlu0 %v4386_v59, %s4802_s1  ;;  %v4388_v38 = vpop.eup %4387  ;;  %v5861_v59 = vld [vmem:[#allocation8 + $0x50] sm:$0xff] }
 0xfcd   :  { %v4390_v24 = vpop.eup %4389  ;;  %v2214_v15 = vadd.f32 1.0, %v4388_v38 }
 0xfce   :  { %v2100_v55 = vadd.f32 1.0, %v4390_v24 }
 0xfcf   :  { %4391 = vrcp.f32 %v2214_v15 }
 0xfd0   :  { %2598 = vperm.xlu0 %4237, %v4160_v34   ;;  %4393 = vrcp.f32 %v2100_v55  ;;  %v5865_v34 = vld [vmem:[#allocation8 + $0x48] sm:$0xff] }
 0xfdc   :  { %v4392_v37 = vpop.eup %4391 }
 0xfdd   :  { %v4394_v60 = vpop.eup %4393 }
0x103c   :  { %v2234_v6 = vpop.permute.xlu1 %2233 }
0x103d   :  { %v2236_v63 = vmul.f32 %v4392_v37, %v2234_v6 }
0x103e   :  { %v2120_v11 = vpop.permute.xlu0 %2119 }
0x103f   :  { %4153 = vmatmul.mubr.msk.f32.vlgmr.msra.gmra.mxu0 %vm247_vm0, %v2236_v63  ;;  %v2122_v25 = vmul.f32 %v4394_v60, %v2120_v11 }
0x1040   :  { %2508 = vmatpush1.msra.mxu0 %v5843_v9  ;;  %2555 = vmatprep.mubr.f32.mxu0 %v6645_v46 }
0x1041   :  { %2509 = vmatprep.subr.mxu0 %v5847_v53  ;;  %4156 = vmatmul.mubr.msk.f32.vlgmr.msra.gmra.mxu1 %vm247_vm0, %v2122_v25 }
0x1042   :  { %2510 = vmatpush1.msra.mxu0 %v5851_v8  ;;  %2620 = vmatpush1.msra.mxu1 %v5466_v5  ;;  %v5869_v5 = vld [vmem:[#allocation8 + $0x40] sm:$0xff] }
0x1043   :  { %2667 = vmatprep.mubr.f32.mxu1 %v6645_v46  ;;  %2621 = vmatprep.subr.mxu1 %v5470_v43  ;;  %v5873_v43 = vld [vmem:[#allocation8 + $0x38] sm:$0xff] }
0x1044   :  { %2511 = vmatprep.subr.mxu0 %v5857_v51  ;;  %2622 = vmatpush1.msra.mxu1 %v5474_v33  ;;  %v5877_v33 = vld [vmem:[#allocation8 + $0x30] sm:$0xff] }
0x1045   :  { %2512 = vmatpush1.msra.mxu0 %v5861_v59  ;;  %2623 = vmatprep.subr.mxu1 %v5478_v45  ;;  %v5881_v45 = vld [vmem:[#allocation8 + $0x28] sm:$0xff] }
0x1046   :  { %2513 = vmatprep.subr.mxu0 %v5865_v34  ;;  %2624 = vmatpush1.msra.mxu1 %v5482_v1  ;;  %v5885_v1 = vld [vmem:[#allocation8 + $0x20] sm:$0xff] }
0x1047   :  { %2514 = vmatpush1.msra.mxu0 %v5869_v5  ;;  %2625 = vmatprep.subr.mxu1 %v5486_v10  ;;  %v5889_v10 = vld [vmem:[#allocation8 + $0x18] sm:$0xff] }
0x1048   :  { %2515 = vmatprep.subr.mxu0 %v5873_v43  ;;  %2626 = vmatpush1.msra.mxu1 %v5490_v12  ;;  %v5893_v12 = vld [vmem:[#allocation8 + $0x10] sm:$0xff] }
0x1049   :  { %2516 = vmatpush1.msra.mxu0 %v5877_v33  ;;  %2627 = vmatprep.subr.mxu1 %v5494_v3  ;;  %v5897_v3 = vld [vmem:[#allocation8 + $0x8] sm:$0xff] }
0x104a   :  { %2517 = vmatprep.subr.mxu0 %v5881_v45  ;;  %2628 = vmatpush1.msra.mxu1 %v5498_v22  ;;  %v5901_v22 = vld [vmem:[#allocation8] sm:$0xff] }
0x104b   :  { %2518 = vmatpush1.msra.mxu0 %v5885_v1  ;;  %2629 = vmatprep.subr.mxu1 %v5502_v19  ;;  %v6775_v19 = vld [vmem:[#allocation44_spill] sm:$0xff] }
0x104c   :  { %2519 = vmatprep.subr.mxu0 %v5889_v10  ;;  %2630 = vmatpush1.msra.mxu1 %v5506_v36  ;;  %v2303_v36 = vpop.f32.mrf.mxu1 }
0x104d   :  { %2520 = vmatpush1.msra.mxu0 %v5893_v12  ;;  %2631 = vmatprep.subr.mxu1 %v5510_v17 }
0x104e   :  { %2521 = vmatprep.subr.mxu0 %v5897_v3  ;;  %2632 = vmatpush1.msra.mxu1 %v5514_v4  ;;  %v2305_v4 = vpop.f32.mrf.mxu1 }
0x104f   :  { %2522 = vmatpush1.msra.mxu0 %v5901_v22  ;;  %2633 = vmatprep.subr.mxu1 %v5518_v27 }
0x1050   :  { %2724 = vmatprep.subr.mxu0 %v6775_v19  ;;  %2634 = vmatpush1.msra.mxu1 %v5524_v58 }
0x1051   :  { %4161 = vmatmul.mubr.msk.f32.vlgmr.msra.gmra.mxu1 %vm247_vm0, %v2236_v63  ;;  %2798 = vmatprep.subr.mxu1 %v6752_v16  ;;  %v6776_v16 = vld [vmem:[#allocation56_spill] sm:$0xff] }
0x1052   :  { %2799 = vmatpush1.msra.mxu1 %v6753_v0  ;;  %2846 = vmatprep.mubr.f32.mxu1 %v6645_v46 }
0x1053   :  { %2800 = vmatprep.subr.mxu1 %v6754_v61 }
0x1054   :  { %2801 = vmatpush1.msra.mxu1 %v6755_v39  ;;  %v2599_v39 = vpop.permute.xlu0 %2598 }
0x1055   :  { %2802 = vmatprep.subr.mxu1 %v6756_v18  ;;  %v2601_v55 = vmul.f32 %v2599_v39, %v6772_v28 }
0x1056   :  { %2803 = vmatpush1.msra.mxu1 %v6757_v44 }
0x1057   :  { %2804 = vmatprep.subr.mxu1 %v6758_v49  ;;  %v2602_v49 = vmul.f32 %v2599_v39, %v6769_v26 }
0x1058   :  { %2805 = vmatpush1.msra.mxu1 %v6759_v47 }
0x1059   :  { %2806 = vmatprep.subr.mxu1 %v6760_v57 }
0x105a   :  { %2807 = vmatpush1.msra.mxu1 %v6761_v21 }
0x105b   :  { %2808 = vmatprep.subr.mxu1 %v5772_v13 }
0x105c   :  { %2809 = vmatpush1.msra.mxu1 %v5776_v2 }
0x105d   :  { %2810 = vmatprep.subr.mxu1 %v5780_v30 }
0x105e   :  { %2811 = vmatpush1.msra.mxu1 %v5784_v48 }
0x105f   :  { %2812 = vmatprep.subr.mxu1 %v5788_v50 }
0x1060   :  { %2813 = vmatpush1.msra.mxu1 %v5792_v40 }
0x1061   :  { %2978 = vmatprep.subr.mxu1 %v5796_v35 }
0x10ff   :  { %v2377_v17 = vpop.f32.mrf.mxu0 }
0x1100   :  { %v2378_v38 = vadd.f32 %v2377_v17, %v2303_v36 }
0x1101   :  { %v2379_v27 = vpop.f32.mrf.mxu0  ;;  %v5927_v61 = vpop.f32.mrf.mxu1 }
0x1102   :  { %v2380_v58 = vadd.f32 %v2379_v27, %v2305_v4  ;;  %v2382_v24 = vadd.f32 %v2378_v38, %v5207_v14 }
0x1103   :  { %v5929_v18 = vpop.f32.mrf.mxu1 }
0x1104   :  { %v2383_v0 = vadd.f32 %v2380_v58, %v6776_v16  ;;  %v4154_v15 = vmul.f32 -1.442695, %v2382_v24 }
0x1106   :  { %4395 = vtanh.f32 %v2383_v0 }
0x1111   :  { %v2669_v44 = vpop.f32.mrf.mxu1 }
0x1112   :  { %v2674_v37 = vadd.f32 %v2669_v44, %v2601_v55 }
0x1113   :  { %v4396_v47 = vpop.eup %4395  ;;  %v2671_v57 = vpop.f32.mrf.mxu1 }
0x1114   :  { %v2675_v21 = vadd.f32 %v2671_v57, %v2602_v49  ;;  %2399 = vrot.lane.b32.xlu1 %v4396_v47, %s4802_s1  ;;  %v2676_v6 = vadd.f32 %v2674_v37, %v6773_v20 }
0x1116   :  { %v2677_v29 = vadd.f32 %v2675_v21, %v6770_v52  ;;  %v4162_v60 = vmul.f32 -1.442695, %v2676_v6 }
0x1118   :  { %4397 = vtanh.f32 %v2677_v29  ;;  %v4163_v55 = vmul.f32 -1.442695, %v2677_v29  ;;  %v6778_v29 = vld [vmem:[#allocation22_spill] sm:$0xff] }
0x1119   :  { %4399 = vpow2.f32 %v4154_v15  ;;  %v4155_v15 = vmul.f32 -1.442695, %v2383_v0  ;;  %v6777_v0 = vld [vmem:[#allocation21_spill] sm:$0xff] }
0x111a   :  { %4401 = vpow2.f32 %v4162_v60 }
0x1125   :  { %v4398_v7 = vpop.eup %4397 }
0x1126   :  { %2693 = vrot.lane.b32.xlu0 %v4398_v7, %s4802_s1  ;;  %v4400_v63 = vpop.eup %4399 }
0x1127   :  { %v2390_v11 = vadd.f32 1.0, %v4400_v63  ;;  %v4402_v25 = vpop.eup %4401 }
0x1128   :  { %v2684_v58 = vadd.f32 1.0, %v4402_v25  ;;  %v6779_v25 = vld [vmem:[#allocation23_spill] sm:$0xff] }
0x1129   :  { %4403 = vrcp.f32 %v2390_v11 }
0x112a   :  { %4405 = vrcp.f32 %v2684_v58  ;;  %v6785_v58 = vld [vmem:[#allocation33_spill] sm:$0xff] }
0x1136   :  { %v4404_v19 = vpop.eup %4403 }
0x1137   :  { %v4406_v36 = vpop.eup %4405  ;;  %v2397_v39 = vmul.f32 %v4404_v19, %v5728_v42 }
0x1138   :  { %v2691_v21 = vmul.f32 %v4406_v36, %v5830_v54 }
0x1186   :  { %v2400_v4 = vpop.permute.xlu1 %2399 }
0x1187   :  { %v2402_v27 = vmul.f32 %v4404_v19, %v2400_v4  ;;  %v6780_v19 = vld [vmem:[#allocation24_spill] sm:$0xff]  ;;  %v6781_v4 = vld [vmem:[#allocation25_spill] sm:$0xff] }
0x1189   :  { %2404 = vrot.lane.b32.xlu1 %v2402_v27, %s4802_s1  ;;  %v6783_v27 = vld [vmem:[#allocation27_spill] sm:$0xff] }
0x1198   :  { %v2694_v17 = vpop.permute.xlu0 %2693 }
0x1199   :  { %v2696_v49 = vmul.f32 %v4406_v36, %v2694_v17 }
0x119b   :  { %2698 = vrot.lane.b32.xlu0 %v2696_v49, %s4802_s1  ;;  %v6788_v49 = vld [vmem:[#allocation36_spill] sm:$0xff] }
0x11fb   :  { %v2405_v44 = vpop.permute.xlu1 %2404 }
0x11fc   :  { %v5941_v47 = vadd.f32 %v2405_v44, %v2397_v39  ;;  %v6789_v44 = vld [vmem:[#allocation37_spill] sm:$0xff] }
0x11fe   :  { %4407 = vtanh.f32 %v5941_v47 }
0x120b   :  { %v4408_v57 = vpop.eup %4407 }
0x120c   :  { %2410 = vrot.lane.b32.xlu1 %v4408_v57, %s4802_s1  ;;  %v6790_v57 = vld [vmem:[#allocation38_spill] sm:$0xff] }
0x120d   :  { %v2699_v7 = vpop.permute.xlu0 %2698 }
0x120e   :  { %v5946_v38 = vadd.f32 %v2699_v7, %v2691_v21  ;;  %v6791_v21 = vld [vmem:[#allocation39_spill] sm:$0xff]  ;;  %v6792_v7 = vld [vmem:[#allocation41_spill] sm:$0xff] }
0x1210   :  { %4409 = vtanh.f32 %v5946_v38 }
0x1211   :  { %4411 = vpow2.f32 %v4155_v15  ;;  %v6794_v15 = vld [vmem:[#allocation45_spill] sm:$0xff] }
0x1212   :  { %4413 = vpow2.f32 %v4163_v55  ;;  %v6796_v55 = vld [vmem:[#allocation49_spill] sm:$0xff] }
0x121d   :  { %v4410_v24 = vpop.eup %4409 }
0x121e   :  { %2704 = vrot.lane.b32.xlu0 %v4410_v24, %s4802_s1  ;;  %v4412_v42 = vpop.eup %4411  ;;  %v6793_v24 = vld [vmem:[#allocation43_spill] sm:$0xff] }
0x121f   :  { %v2391_v37 = vadd.f32 1.0, %v4412_v42  ;;  %v4414_v6 = vpop.eup %4413  ;;  %v6795_v42 = vld [vmem:[#allocation47_spill] sm:$0xff] }
0x1220   :  { %v2685_v54 = vadd.f32 1.0, %v4414_v6  ;;  %v6798_v6 = vld [vmem:[#allocation53_spill] sm:$0xff] }
0x1221   :  { %4415 = vrcp.f32 %v2391_v37  ;;  %v6797_v37 = vld [vmem:[#allocation51_spill] sm:$0xff] }
0x1222   :  { %4417 = vrcp.f32 %v2685_v54  ;;  %v6802_v54 = vld [vmem:[#allocation64_spill] sm:$0xff] }
0x122e   :  { %v4416_v63 = vpop.eup %4415 }
0x122f   :  { %v4418_v36 = vpop.eup %4417 }
0x127e   :  { %v2411_v60 = vpop.permute.xlu1 %2410 }
0x127f   :  { %v2413_v11 = vmul.f32 %v4416_v63, %v2411_v60  ;;  %v6799_v63 = vld [vmem:[#allocation54_spill] sm:$0xff]  ;;  %v6800_v60 = vld [vmem:[#allocation55_spill] sm:$0xff] }
0x1281   :  { %4157 = vmatmul.mubr.msk.f32.vlgmr.msra.gmra.mxu0 %vm247_vm0, %v2413_v11 }
0x1282   :  { %2725 = vmatpush1.msra.mxu0 %v5591_v41  ;;  %2772 = vmatprep.mubr.f32.mxu0 %v6645_v46  ;;  %v6782_v41 = vld [vmem:[#allocation26_spill] sm:$0xff] }
0x1283   :  { %2726 = vmatprep.subr.mxu0 %v5595_v31  ;;  %v6784_v31 = vld [vmem:[#allocation28_spill] sm:$0xff] }
0x1284   :  { %2727 = vmatpush1.msra.mxu0 %v5598_v56  ;;  %v6786_v56 = vld [vmem:[#allocation34_spill] sm:$0xff] }
0x1285   :  { %2728 = vmatprep.subr.mxu0 %v5601_v23  ;;  %v6787_v23 = vld [vmem:[#allocation35_spill] sm:$0xff] }
0x1286   :  { %2729 = vmatpush1.msra.mxu0 %v6777_v0  ;;  %v6803_v0 = vld [vmem:[#allocation59_spill] sm:$0xff] }
0x1287   :  { %2730 = vmatprep.subr.mxu0 %v6778_v29  ;;  %v6001_v29 = vld [vmem:[#allocation3 + $0x78] sm:$0xff] }
0x1288   :  { %2731 = vmatpush1.msra.mxu0 %v6779_v25  ;;  %v6008_v25 = vld [vmem:[#allocation7 + $0x78] sm:$0xff] }
0x1289   :  { %2732 = vmatprep.subr.mxu0 %v6780_v19 }
0x128a   :  { %2733 = vmatpush1.msra.mxu0 %v6781_v4 }
0x128b   :  { %2734 = vmatprep.subr.mxu0 %v6782_v41 }
0x128c   :  { %2735 = vmatpush1.msra.mxu0 %v6783_v27  ;;  %v6804_v27 = vld [vmem:[#allocation40_spill] sm:$0xff] }
0x128d   :  { %2736 = vmatprep.subr.mxu0 %v6784_v31 }
0x128e   :  { %2737 = vmatpush1.msra.mxu0 %v6785_v58 }
0x128f   :  { %2738 = vmatprep.subr.mxu0 %v6786_v56 }
0x1290   :  { %2739 = vmatpush1.msra.mxu0 %v6787_v23  ;;  %v2705_v17 = vpop.permute.xlu0 %2704 }
0x1291   :  { %4164 = vmatmul.mubr.msk.f32.vlgmr.msra.gmra.mxu0 %vm247_vm0, %v2413_v11  ;;  %2904 = vmatprep.subr.mxu0 %v6788_v49  ;;  %v5969_v39 = vmul.f32 %v4418_v36, %v2705_v17  ;;  %v6801_v11 = vld [vmem:[#allocation58_spill] sm:$0xff] }
0x1292   :  { %2905 = vmatpush1.msra.mxu0 %v6789_v44  ;;  %2952 = vmatprep.mubr.f32.mxu0 %v6645_v46 }
0x1293   :  { %2906 = vmatprep.subr.mxu0 %v6790_v57  ;;  %4165 = vmatmul.mubr.msk.f32.vlgmr.msra.gmra.mxu1 %vm247_vm0, %v5969_v39 }
0x1294   :  { %2907 = vmatpush1.msra.mxu0 %v6791_v21  ;;  %2979 = vmatpush1.msra.mxu1 %v5843_v9 }
0x1295   :  { %2908 = vmatprep.subr.mxu0 %v6792_v7  ;;  %2980 = vmatprep.subr.mxu1 %v5847_v53 }
0x1296   :  { %2909 = vmatpush1.msra.mxu0 %v6793_v24  ;;  %2981 = vmatpush1.msra.mxu1 %v5851_v8 }
0x1297   :  { %2910 = vmatprep.subr.mxu0 %v6794_v15  ;;  %2982 = vmatprep.subr.mxu1 %v5857_v51 }
0x1298   :  { %2911 = vmatpush1.msra.mxu0 %v6795_v42  ;;  %2983 = vmatpush1.msra.mxu1 %v5861_v59 }
0x1299   :  { %2912 = vmatprep.subr.mxu0 %v6796_v55  ;;  %2984 = vmatprep.subr.mxu1 %v5865_v34 }
0x129a   :  { %2913 = vmatpush1.msra.mxu0 %v6797_v37  ;;  %2985 = vmatpush1.msra.mxu1 %v5869_v5 }
0x129b   :  { %2914 = vmatprep.subr.mxu0 %v6798_v6  ;;  %2986 = vmatprep.subr.mxu1 %v5873_v43 }
0x129c   :  { %2915 = vmatpush1.msra.mxu0 %v6799_v63  ;;  %2987 = vmatpush1.msra.mxu1 %v5877_v33 }
0x129d   :  { %2916 = vmatprep.subr.mxu0 %v6800_v60  ;;  %2988 = vmatprep.subr.mxu1 %v5881_v45 }
0x129e   :  { %2917 = vmatpush1.msra.mxu0 %v6801_v11  ;;  %2989 = vmatpush1.msra.mxu1 %v5885_v1 }
0x129f   :  { %2918 = vmatprep.subr.mxu0 %v6802_v54  ;;  %2990 = vmatprep.subr.mxu1 %v5889_v10 }
0x12a0   :  { %2919 = vmatpush1.msra.mxu0 %v6803_v0  ;;  %2991 = vmatpush1.msra.mxu1 %v5893_v12 }
0x12a1   :  { %3090 = vmatprep.subr.mxu0 %v6001_v29  ;;  %2992 = vmatprep.subr.mxu1 %v5897_v3 }
0x12a2   :  { %3026 = vmatprep.mubr.f32.mxu1 %v6645_v46  ;;  %2993 = vmatpush1.msra.mxu1 %v5901_v22 }
0x12a3   :  { %3195 = vmatprep.subr.mxu1 %v6008_v25 }
0x1341   :  { %v2557_v19 = vpop.f32.mrf.mxu0 }
0x1343   :  { %v2559_v4 = vpop.f32.mrf.mxu0 }
0x1344   :  { %v2560_v41 = vadd.f32 %v2559_v4, %v5929_v18  ;;  %v2558_v18 = vadd.f32 %v2557_v19, %v5927_v61 }
0x1346   :  { %v2563_v31 = vadd.f32 %v2560_v41, %v6804_v27  ;;  %v2562_v7 = vadd.f32 %v2558_v18, %v5343_v32 }
0x1348   :  { %4419 = vtanh.f32 %v2563_v31  ;;  %v4158_v24 = vmul.f32 -1.442695, %v2562_v7 }
0x1351   :  { %v2774_v58 = vpop.f32.mrf.mxu0 }
0x1353   :  { %v2848_v56 = vpop.f32.mrf.mxu1  ;;  %v2776_v23 = vpop.f32.mrf.mxu0 }
0x1354   :  { %v2849_v36 = vadd.f32 %v2848_v56, %v2774_v58 }
0x1355   :  { %v4420_v17 = vpop.eup %4419  ;;  %v2850_v49 = vpop.f32.mrf.mxu1 }
0x1356   :  { %v2851_v44 = vadd.f32 %v2850_v49, %v2776_v23  ;;  %2579 = vrot.lane.b32.xlu1 %v4420_v17, %s4802_s1  ;;  %v2853_v15 = vadd.f32 %v2849_v36, %v5207_v14  ;;  %v4172_v36 = vld [vmem:[%s6409_s0 + $0xc] sm:$0x3]  ;;  %v6141_v14 = vld [vmem:[#allocation7 + $0x30] sm:$0xff] }
0x1357   :  { %6816 = vst [vmem:[#allocation15_spill] sm:$0xff] %v6141_v14 }
0x1358   :  { %v2854_v57 = vadd.f32 %v2851_v44, %v6776_v16  ;;  %v4166_v55 = vmul.f32 -1.442695, %v2853_v15  ;;  %v4159_v44 = vmul.f32 -1.442695, %v2563_v31  ;;  %v6039_v31 = vld [vmem:[#allocation3 + $0x68] sm:$0xff] }
0x135a   :  { %4421 = vtanh.f32 %v2854_v57  ;;  %v4167_v18 = vmul.f32 -1.442695, %v2854_v57  ;;  %v6042_v57 = vld [vmem:[#allocation3 + $0x60] sm:$0xff] }
0x135b   :  { %4423 = vpow2.f32 %v4158_v24 }
0x135c   :  { %4425 = vpow2.f32 %v4166_v55 }
0x1367   :  { %v4422_v21 = vpop.eup %4421 }
0x1368   :  { %2870 = vrot.lane.b32.xlu0 %v4422_v21, %s4802_s1  ;;  %v4424_v42 = vpop.eup %4423 }
0x1369   :  { %v2570_v37 = vadd.f32 1.0, %v4424_v42  ;;  %v4426_v6 = vpop.eup %4425 }
0x136a   :  { %v2861_v54 = vadd.f32 1.0, %v4426_v6  ;;  %v6045_v6 = vld [vmem:[#allocation3 + $0x58] sm:$0xff] }
0x136b   :  { %4427 = vrcp.f32 %v2570_v37  ;;  %v6035_v37 = vld [vmem:[#allocation3 + $0x70] sm:$0xff] }
0x136c   :  { %4429 = vrcp.f32 %v2861_v54  ;;  %v6057_v54 = vld [vmem:[#allocation3 + $0x38] sm:$0xff] }
0x1378   :  { %v4428_v63 = vpop.eup %4427 }
0x1379   :  { %v4430_v61 = vpop.eup %4429  ;;  %v2577_v4 = vmul.f32 %v4428_v63, %v5834_v62 }
0x137a   :  { %v2868_v23 = vmul.f32 %v4430_v61, %v5941_v47 }
0x13c8   :  { %v2580_v60 = vpop.permute.xlu1 %2579 }
0x13c9   :  { %v2582_v11 = vmul.f32 %v4428_v63, %v2580_v60  ;;  %v6048_v63 = vld [vmem:[#allocation3 + $0x50] sm:$0xff]  ;;  %v6051_v60 = vld [vmem:[#allocation3 + $0x48] sm:$0xff] }
0x13cb   :  { %2584 = vrot.lane.b32.xlu1 %v2582_v11, %s4802_s1  ;;  %v6054_v11 = vld [vmem:[#allocation3 + $0x40] sm:$0xff] }
0x13da   :  { %v2871_v0 = vpop.permute.xlu0 %2870 }
0x13db   :  { %v2873_v19 = vmul.f32 %v4430_v61, %v2871_v0  ;;  %v6060_v61 = vld [vmem:[#allocation3 + $0x30] sm:$0xff]  ;;  %v6063_v0 = vld [vmem:[#allocation3 + $0x28] sm:$0xff] }
0x13dd   :  { %2875 = vrot.lane.b32.xlu0 %v2873_v19, %s4802_s1  ;;  %v6066_v19 = vld [vmem:[#allocation3 + $0x20] sm:$0xff] }
0x143d   :  { %v2585_v41 = vpop.permute.xlu1 %2584 }
0x143e   :  { %v6022_v58 = vadd.f32 %v2585_v41, %v2577_v4  ;;  %v6069_v4 = vld [vmem:[#allocation3 + $0x18] sm:$0xff]  ;;  %v6072_v41 = vld [vmem:[#allocation3 + $0x10] sm:$0xff] }
0x1440   :  { %4431 = vtanh.f32 %v6022_v58 }
0x144d   :  { %v4432_v56 = vpop.eup %4431 }
0x144e   :  { %2590 = vrot.lane.b32.xlu1 %v4432_v56, %s4802_s1  ;;  %v6075_v56 = vld [vmem:[#allocation3 + $0x8] sm:$0xff] }
0x144f   :  { %v2876_v17 = vpop.permute.xlu0 %2875 }
0x1450   :  { %v6030_v49 = vadd.f32 %v2876_v17, %v2868_v23  ;;  %v6078_v23 = vld [vmem:[#allocation3] sm:$0xff] }
0x1452   :  { %6805 = vst [vmem:[#allocation60_spill] sm:$0xff] %v6030_v49  ;;  %3069 = vperm.xlu1 %4238, %v4172_v36   ;;  %4433 = vtanh.f32 %v6030_v49  ;;  %v6134_v49 = vld [vmem:[#allocation5 + $0x30] sm:$0xff] }
0x1453   :  { %4435 = vpow2.f32 %v4159_v44  ;;  %6814 = vst [vmem:[#allocation52_spill] sm:$0xff] %v6134_v49 }
0x1454   :  { %4437 = vpow2.f32 %v4167_v18  ;;  %v6090_v18 = vld [vmem:[#allocation5 + $0x68] sm:$0xff] }
0x145f   :  { %v4434_v62 = vpop.eup %4433 }
0x1460   :  { %2881 = vrot.lane.b32.xlu0 %v4434_v62, %s4802_s1  ;;  %v4436_v21 = vpop.eup %4435  ;;  %v6083_v62 = vld [vmem:[#allocation5 + $0x78] sm:$0xff] }
0x1461   :  { %v2571_v7 = vadd.f32 1.0, %v4436_v21  ;;  %v4438_v47 = vpop.eup %4437  ;;  %v6086_v21 = vld [vmem:[#allocation5 + $0x70] sm:$0xff] }
0x1462   :  { %v2862_v55 = vadd.f32 1.0, %v4438_v47  ;;  %v6101_v47 = vld [vmem:[#allocation7 + $0x68] sm:$0xff] }
0x1463   :  { %4439 = vrcp.f32 %v2571_v7  ;;  %v6094_v7 = vld [vmem:[#allocation5 + $0x60] sm:$0xff]  ;;  %6807 = vst [vmem:[#allocation62_spill] sm:$0xff] %v6101_v47 }
0x1464   :  { %4441 = vrcp.f32 %v2862_v55  ;;  %v6113_v55 = vld [vmem:[#allocation7 + $0x58] sm:$0xff] }
0x1465   :  { %6809 = vst [vmem:[#allocation65_spill] sm:$0xff] %v6113_v55 }
0x1470   :  { %v4440_v24 = vpop.eup %4439 }
0x1471   :  { %v4442_v36 = vpop.eup %4441 }
0x14c0   :  { %v2591_v15 = vpop.permute.xlu1 %2590 }
0x14c1   :  { %v2593_v42 = vmul.f32 %v4440_v24, %v2591_v15  ;;  %v6104_v24 = vld [vmem:[#allocation5 + $0x58] sm:$0xff]  ;;  %v6107_v15 = vld [vmem:[#allocation7 + $0x60] sm:$0xff] }
0x14c2   :  { %6808 = vst [vmem:[#allocation63_spill] sm:$0xff] %v6107_v15 }
0x14c3   :  { %4168 = vmatmul.mubr.msk.f32.vlgmr.msra.gmra.mxu0 %vm247_vm0, %v2593_v42  ;;  %v6110_v42 = vld [vmem:[#allocation5 + $0x50] sm:$0xff] }
0x14c4   :  { %3091 = vmatpush1.msra.mxu0 %v6035_v37  ;;  %3138 = vmatprep.mubr.f32.mxu0 %v6645_v46 }
0x14c5   :  { %3092 = vmatprep.subr.mxu0 %v6039_v31 }
0x14c6   :  { %3093 = vmatpush1.msra.mxu0 %v6042_v57 }
0x14c7   :  { %3094 = vmatprep.subr.mxu0 %v6045_v6 }
0x14c8   :  { %3095 = vmatpush1.msra.mxu0 %v6048_v63 }
0x14c9   :  { %3096 = vmatprep.subr.mxu0 %v6051_v60 }
0x14ca   :  { %3097 = vmatpush1.msra.mxu0 %v6054_v11 }
0x14cb   :  { %3098 = vmatprep.subr.mxu0 %v6057_v54 }
0x14cc   :  { %3099 = vmatpush1.msra.mxu0 %v6060_v61 }
0x14cd   :  { %3100 = vmatprep.subr.mxu0 %v6063_v0 }
0x14ce   :  { %3101 = vmatpush1.msra.mxu0 %v6066_v19 }
0x14cf   :  { %3102 = vmatprep.subr.mxu0 %v6069_v4 }
0x14d0   :  { %3103 = vmatpush1.msra.mxu0 %v6072_v41 }
0x14d1   :  { %3104 = vmatprep.subr.mxu0 %v6075_v56 }
0x14d2   :  { %3105 = vmatpush1.msra.mxu0 %v6078_v23  ;;  %v2882_v17 = vpop.permute.xlu0 %2881 }
0x14d3   :  { %4173 = vmatmul.mubr.msk.f32.vlgmr.msra.gmra.mxu0 %vm247_vm0, %v5969_v39  ;;  %3269 = vmatprep.subr.mxu0 %v6083_v62  ;;  %v2884_v44 = vmul.f32 %v4442_v36, %v2882_v17  ;;  %v6097_v39 = vld [vmem:[#allocation7 + $0x70] sm:$0xff]  ;;  %v6116_v36 = vld [vmem:[#allocation5 + $0x48] sm:$0xff] }
0x14d4   :  { %3270 = vmatpush1.msra.mxu0 %v6086_v21  ;;  %3317 = vmatprep.mubr.f32.mxu0 %v6645_v46  ;;  %6806 = vst [vmem:[#allocation61_spill] sm:$0xff] %v6097_v39  ;;  %v6119_v17 = vld [vmem:[#allocation7 + $0x50] sm:$0xff] }
0x14d5   :  { %3271 = vmatprep.subr.mxu0 %v6090_v18  ;;  %4169 = vmatmul.mubr.msk.f32.vlgmr.msra.gmra.mxu1 %vm247_vm0, %v2884_v44  ;;  %6810 = vst [vmem:[#allocation66_spill] sm:$0xff] %v6119_v17 }
0x14d6   :  { %3272 = vmatpush1.msra.mxu0 %v6094_v7  ;;  %3196 = vmatpush1.msra.mxu1 %v6097_v39  ;;  %v6128_v39 = vld [vmem:[#allocation5 + $0x38] sm:$0xff] }
0x14d7   :  { %3243 = vmatprep.mubr.f32.mxu1 %v6645_v46  ;;  %3197 = vmatprep.subr.mxu1 %v6101_v47  ;;  %v6122_v47 = vld [vmem:[#allocation5 + $0x40] sm:$0xff]  ;;  %6812 = vst [vmem:[#allocation48_spill] sm:$0xff] %v6128_v39 }
0x14d8   :  { %3273 = vmatprep.subr.mxu0 %v6104_v24  ;;  %3198 = vmatpush1.msra.mxu1 %v6107_v15  ;;  %v6125_v15 = vld [vmem:[#allocation7 + $0x48] sm:$0xff] }
0x14d9   :  { %3274 = vmatpush1.msra.mxu0 %v6110_v42  ;;  %3199 = vmatprep.subr.mxu1 %v6113_v55  ;;  %6811 = vst [vmem:[#allocation46_spill] sm:$0xff] %v6125_v15  ;;  %v6131_v55 = vld [vmem:[#allocation7 + $0x40] sm:$0xff] }
0x14da   :  { %3275 = vmatprep.subr.mxu0 %v6116_v36  ;;  %3200 = vmatpush1.msra.mxu1 %v6119_v17  ;;  %6813 = vst [vmem:[#allocation50_spill] sm:$0xff] %v6131_v55  ;;  %v6137_v17 = vld [vmem:[#allocation7 + $0x38] sm:$0xff] }
0x14db   :  { %3276 = vmatpush1.msra.mxu0 %v6122_v47  ;;  %3201 = vmatprep.subr.mxu1 %v6125_v15  ;;  %6815 = vst [vmem:[#allocation14_spill] sm:$0xff] %v6137_v17  ;;  %v6145_v15 = vld [vmem:[#allocation7 + $0x28] sm:$0xff] }
0x14dc   :  { %3277 = vmatprep.subr.mxu0 %v6128_v39  ;;  %3202 = vmatpush1.msra.mxu1 %v6131_v55  ;;  %6817 = vst [vmem:[#allocation16_spill] sm:$0xff] %v6145_v15  ;;  %v6149_v55 = vld [vmem:[#allocation7 + $0x20] sm:$0xff] }
0x14dd   :  { %3278 = vmatpush1.msra.mxu0 %v6134_v49  ;;  %3203 = vmatprep.subr.mxu1 %v6137_v17  ;;  %6818 = vst [vmem:[#allocation17_spill] sm:$0xff] %v6149_v55  ;;  %v6153_v17 = vld [vmem:[#allocation7 + $0x18] sm:$0xff] }
0x14de   :  { %3279 = vmatprep.subr.mxu0 %v5772_v13  ;;  %3204 = vmatpush1.msra.mxu1 %v6141_v14  ;;  %6819 = vst [vmem:[#allocation18_spill] sm:$0xff] %v6153_v17  ;;  %v6157_v13 = vld [vmem:[#allocation7 + $0x10] sm:$0xff] }
0x14df   :  { %3280 = vmatpush1.msra.mxu0 %v5776_v2  ;;  %3205 = vmatprep.subr.mxu1 %v6145_v15  ;;  %6820 = vst [vmem:[#allocation19_spill] sm:$0xff] %v6157_v13  ;;  %v6161_v2 = vld [vmem:[#allocation7 + $0x8] sm:$0xff] }
0x14e0   :  { %3281 = vmatprep.subr.mxu0 %v5780_v30  ;;  %3206 = vmatpush1.msra.mxu1 %v6149_v55  ;;  %6821 = vst [vmem:[#allocation42_spill] sm:$0xff] %v6161_v2  ;;  %v6165_v30 = vld [vmem:[#allocation7] sm:$0xff] }
0x14e1   :  { %3282 = vmatpush1.msra.mxu0 %v5784_v48  ;;  %3207 = vmatprep.subr.mxu1 %v6153_v17  ;;  %6822 = vst [vmem:[#allocation31_spill] sm:$0xff] %v6165_v30  ;;  %v6169_v48 = vld [vmem:[#allocation10 + $0x78] sm:$0xff] }
0x14e2   :  { %3283 = vmatprep.subr.mxu0 %v5788_v50  ;;  %3208 = vmatpush1.msra.mxu1 %v6157_v13  ;;  %6823 = vst [vmem:[#allocation32_spill] sm:$0xff] %v6169_v48  ;;  %v6172_v50 = vld [vmem:[#allocation10 + $0x70] sm:$0xff] }
0x14e3   :  { %3284 = vmatpush1.msra.mxu0 %v5792_v40  ;;  %3209 = vmatprep.subr.mxu1 %v6161_v2  ;;  %6824 = vst [vmem:[#allocation20_spill] sm:$0xff] %v6172_v50  ;;  %v6176_v40 = vld [vmem:[#allocation10 + $0x68] sm:$0xff] }
0x14e4   :  { %3449 = vmatprep.subr.mxu0 %v5796_v35  ;;  %3210 = vmatpush1.msra.mxu1 %v6165_v30  ;;  %6825 = vst [vmem:[#allocation44_spill] sm:$0xff] %v6176_v40  ;;  %v6179_v35 = vld [vmem:[#allocation10 + $0x60] sm:$0xff]  ;;  %v6182_v30 = vld [vmem:[#allocation10 + $0x58] sm:$0xff] }
0x14e5   :  { %4176 = vmatmul.mubr.msk.f32.vlgmr.msra.gmra.mxu1 %vm247_vm0, %v2884_v44  ;;  %3375 = vmatprep.subr.mxu1 %v6169_v48  ;;  %6826 = vst [vmem:[#allocation21_spill] sm:$0xff] %v6179_v35  ;;  %6827 = vst [vmem:[#allocation22_spill] sm:$0xff] %v6182_v30  ;;  %v6185_v44 = vld [vmem:[#allocation10 + $0x50] sm:$0xff]  ;;  %v6188_v48 = vld [vmem:[#allocation10 + $0x48] sm:$0xff] }
0x14e6   :  { %3376 = vmatpush1.msra.mxu1 %v6172_v50  ;;  %3423 = vmatprep.mubr.f32.mxu1 %v6645_v46  ;;  %6828 = vst [vmem:[#allocation23_spill] sm:$0xff] %v6185_v44  ;;  %6829 = vst [vmem:[#allocation24_spill] sm:$0xff] %v6188_v48  ;;  %v6191_v50 = vld [vmem:[#allocation10 + $0x40] sm:$0xff] }
0x14e7   :  { %3377 = vmatprep.subr.mxu1 %v6176_v40  ;;  %6830 = vst [vmem:[#allocation25_spill] sm:$0xff] %v6191_v50  ;;  %v6194_v40 = vld [vmem:[#allocation10 + $0x38] sm:$0xff] }
0x14e8   :  { %3378 = vmatpush1.msra.mxu1 %v6179_v35  ;;  %6831 = vst [vmem:[#allocation26_spill] sm:$0xff] %v6194_v40  ;;  %v6197_v35 = vld [vmem:[#allocation10 + $0x30] sm:$0xff] }
0x14e9   :  { %3379 = vmatprep.subr.mxu1 %v6182_v30  ;;  %6832 = vst [vmem:[#allocation27_spill] sm:$0xff] %v6197_v35  ;;  %v6200_v30 = vld [vmem:[#allocation10 + $0x28] sm:$0xff] }
0x14ea   :  { %3380 = vmatpush1.msra.mxu1 %v6185_v44  ;;  %6833 = vst [vmem:[#allocation28_spill] sm:$0xff] %v6200_v30  ;;  %v6203_v44 = vld [vmem:[#allocation10 + $0x20] sm:$0xff] }
0x14eb   :  { %3381 = vmatprep.subr.mxu1 %v6188_v48  ;;  %6834 = vst [vmem:[#allocation33_spill] sm:$0xff] %v6203_v44  ;;  %v6206_v48 = vld [vmem:[#allocation10 + $0x18] sm:$0xff] }
0x14ec   :  { %3382 = vmatpush1.msra.mxu1 %v6191_v50  ;;  %6835 = vst [vmem:[#allocation34_spill] sm:$0xff] %v6206_v48  ;;  %v6209_v50 = vld [vmem:[#allocation10 + $0x10] sm:$0xff] }
0x14ed   :  { %3383 = vmatprep.subr.mxu1 %v6194_v40  ;;  %6836 = vst [vmem:[#allocation35_spill] sm:$0xff] %v6209_v50  ;;  %v6212_v40 = vld [vmem:[#allocation10 + $0x8] sm:$0xff] }
0x14ee   :  { %3384 = vmatpush1.msra.mxu1 %v6197_v35  ;;  %6837 = vst [vmem:[#allocation36_spill] sm:$0xff] %v6212_v40  ;;  %v6215_v35 = vld [vmem:[#allocation10] sm:$0xff] }
0x14ef   :  { %3385 = vmatprep.subr.mxu1 %v6200_v30  ;;  %6838 = vst [vmem:[#allocation37_spill] sm:$0xff] %v6215_v35 }
0x14f0   :  { %3386 = vmatpush1.msra.mxu1 %v6203_v44  ;;  %v3070_v44 = vpop.permute.xlu1 %3069 }
0x14f1   :  { %3387 = vmatprep.subr.mxu1 %v6206_v48  ;;  %v3073_v48 = vmul.f32 %v3070_v44, %v6769_v26  ;;  %v3072_v26 = vmul.f32 %v3070_v44, %v6772_v28 }
0x14f2   :  { %3388 = vmatpush1.msra.mxu1 %v6209_v50 }
0x14f3   :  { %3389 = vmatprep.subr.mxu1 %v6212_v40 }
0x14f4   :  { %3390 = vmatpush1.msra.mxu1 %v6215_v35 }
0x14f5   :  { %3561 = vmatprep.subr.mxu1 %v6001_v29 }
0x1583   :  { %v2954_v30 = vpop.f32.mrf.mxu0 }
0x1585   :  { %v2956_v2 = vpop.f32.mrf.mxu0 }
0x1593   :  { %v3140_v13 = vpop.f32.mrf.mxu0 }
0x1594   :  { %v3145_v39 = vadd.f32 %v3140_v13, %v3072_v26 }
0x1595   :  { %v3142_v17 = vpop.f32.mrf.mxu0  ;;  %v3028_v55 = vpop.f32.mrf.mxu1 }
0x1596   :  { %v3146_v15 = vadd.f32 %v3142_v17, %v3073_v48  ;;  %v3029_v50 = vadd.f32 %v3028_v55, %v2954_v30  ;;  %v3147_v17 = vadd.f32 %v3145_v39, %v6773_v20 }
0x1597   :  { %v3030_v14 = vpop.f32.mrf.mxu1 }
0x1598   :  { %v3148_v16 = vadd.f32 %v3146_v15, %v6770_v52  ;;  %v3031_v40 = vadd.f32 %v3030_v14, %v2956_v2  ;;  %v3033_v55 = vadd.f32 %v3029_v50, %v5343_v32  ;;  %v4174_v30 = vmul.f32 -1.442695, %v3147_v17 }
0x159a   :  { %v3034_v49 = vadd.f32 %v3031_v40, %v6804_v27  ;;  %4443 = vtanh.f32 %v3148_v16  ;;  %v4170_v15 = vmul.f32 -1.442695, %v3033_v55 }
0x159c   :  { %4445 = vtanh.f32 %v3034_v49 }
0x159d   :  { %4447 = vpow2.f32 %v4174_v30 }
0x159e   :  { %4449 = vpow2.f32 %v4170_v15 }
0x15a7   :  { %v4444_v35 = vpop.eup %4443 }
0x15a8   :  { %3164 = vrot.lane.b32.xlu1 %v4444_v35, %s4802_s1 }
0x15a9   :  { %v4446_v29 = vpop.eup %4445 }
0x15aa   :  { %3050 = vrot.lane.b32.xlu0 %v4446_v29, %s4802_s1  ;;  %v4448_v14 = vpop.eup %4447 }
0x15ab   :  { %v4450_v2 = vpop.eup %4449  ;;  %v3155_v48 = vadd.f32 1.0, %v4448_v14  ;;  %v4175_v14 = vmul.f32 -1.442695, %v3148_v16 }
0x15ac   :  { %v3041_v40 = vadd.f32 1.0, %v4450_v2 }
0x15ad   :  { %4451 = vrcp.f32 %v3155_v48 }
0x15ae   :  { %4453 = vrcp.f32 %v3041_v40 }
0x15ba   :  { %v4452_v35 = vpop.eup %4451 }
0x15bb   :  { %v4454_v52 = vpop.eup %4453  ;;  %v3162_v39 = vmul.f32 %v4452_v35, %v5946_v38  ;;  %v4184_v38 = vld [vmem:[%s6409_s0 + $0xe] sm:$0x3] }
0x15bc   :  { %v3048_v17 = vmul.f32 %v4454_v52, %v6022_v58 }
0x161a   :  { %v3165_v27 = vpop.permute.xlu1 %3164 }
0x161b   :  { %v3167_v29 = vmul.f32 %v4452_v35, %v3165_v27 }
0x161c   :  { %v3051_v44 = vpop.permute.xlu0 %3050 }
0x161d   :  { %3169 = vrot.lane.b32.xlu1 %v3167_v29, %s4802_s1  ;;  %v3053_v26 = vmul.f32 %v4454_v52, %v3051_v44  ;;  %v4171_v52 = vmul.f32 -1.442695, %v3034_v49 }
0x161f   :  { %3055 = vrot.lane.b32.xlu0 %v3053_v26, %s4802_s1 }
0x168f   :  { %v3170_v13 = vpop.permute.xlu1 %3169 }
0x1690   :  { %v6230_v50 = vadd.f32 %v3170_v13, %v3162_v39 }
0x1691   :  { %v3056_v55 = vpop.permute.xlu0 %3055 }
0x1692   :  { %4455 = vtanh.f32 %v6230_v50  ;;  %v6234_v30 = vadd.f32 %v3056_v55, %v3048_v17 }
0x1694   :  { %4457 = vtanh.f32 %v6234_v30 }
0x1695   :  { %4459 = vpow2.f32 %v4175_v14 }
0x1696   :  { %4461 = vpow2.f32 %v4171_v52 }
0x169f   :  { %v4456_v27 = vpop.eup %4455 }
0x16a0   :  { %3175 = vrot.lane.b32.xlu1 %v4456_v27, %s4802_s1 }
0x16a1   :  { %v4458_v15 = vpop.eup %4457 }
0x16a2   :  { %3061 = vrot.lane.b32.xlu0 %v4458_v15, %s4802_s1  ;;  %v4460_v58 = vpop.eup %4459 }
0x16a3   :  { %v4462_v2 = vpop.eup %4461  ;;  %v3156_v48 = vadd.f32 1.0, %v4460_v58 }
0x16a4   :  { %v3042_v40 = vadd.f32 1.0, %v4462_v2 }
0x16a5   :  { %4463 = vrcp.f32 %v3156_v48 }
0x16a6   :  { %3540 = vperm.xlu0 %4237, %v4184_v38   ;;  %4465 = vrcp.f32 %v3042_v40 }
0x16b2   :  { %v4464_v35 = vpop.eup %4463 }
0x16b3   :  { %v4466_v26 = vpop.eup %4465 }
0x1712   :  { %v3176_v29 = vpop.permute.xlu1 %3175 }
0x1713   :  { %v3178_v44 = vmul.f32 %v4464_v35, %v3176_v29 }
0x1714   :  { %v3062_v39 = vpop.permute.xlu0 %3061 }
0x1715   :  { %4177 = vmatmul.mubr.msk.f32.vlgmr.msra.gmra.mxu0 %vm247_vm0, %v3178_v44  ;;  %v3064_v13 = vmul.f32 %v4466_v26, %v3062_v39 }
0x1716   :  { %3450 = vmatpush1.msra.mxu0 %v5843_v9  ;;  %3497 = vmatprep.mubr.f32.mxu0 %v6645_v46  ;;  %v6839_v9 = vld [vmem:[#allocation48_spill] sm:$0xff] }
0x1717   :  { %3451 = vmatprep.subr.mxu0 %v5847_v53  ;;  %4180 = vmatmul.mubr.msk.f32.vlgmr.msra.gmra.mxu1 %vm247_vm0, %v3064_v13  ;;  %v6840_v53 = vld [vmem:[#allocation52_spill] sm:$0xff] }
0x1718   :  { %3452 = vmatpush1.msra.mxu0 %v5851_v8  ;;  %3562 = vmatpush1.msra.mxu1 %v6035_v37  ;;  %v4665_v8 = vld [vmem:[#allocation5 + $0x28] sm:$0xff] }
0x1719   :  { %3609 = vmatprep.mubr.f32.mxu1 %v6645_v46  ;;  %3563 = vmatprep.subr.mxu1 %v6039_v31 }
0x171a   :  { %3453 = vmatprep.subr.mxu0 %v5857_v51  ;;  %3564 = vmatpush1.msra.mxu1 %v6042_v57  ;;  %v4666_v51 = vld [vmem:[#allocation5 + $0x20] sm:$0xff]  ;;  %v6842_v57 = vld [vmem:[#allocation29_spill] sm:$0xff] }
0x171b   :  { %3454 = vmatpush1.msra.mxu0 %v5861_v59  ;;  %3565 = vmatprep.subr.mxu1 %v6045_v6  ;;  %v4667_v59 = vld [vmem:[#allocation5 + $0x18] sm:$0xff] }
0x171c   :  { %3455 = vmatprep.subr.mxu0 %v5865_v34  ;;  %3566 = vmatpush1.msra.mxu1 %v6048_v63  ;;  %v4668_v34 = vld [vmem:[#allocation5 + $0x10] sm:$0xff] }
0x171d   :  { %3456 = vmatpush1.msra.mxu0 %v5869_v5  ;;  %3567 = vmatprep.subr.mxu1 %v6051_v60  ;;  %v4669_v5 = vld [vmem:[#allocation5 + $0x8] sm:$0xff] }
0x171e   :  { %3457 = vmatprep.subr.mxu0 %v5873_v43  ;;  %3568 = vmatpush1.msra.mxu1 %v6054_v11  ;;  %v4670_v43 = vld [vmem:[#allocation5] sm:$0xff] }
0x171f   :  { %3458 = vmatpush1.msra.mxu0 %v5877_v33  ;;  %3569 = vmatprep.subr.mxu1 %v6057_v54  ;;  %v4671_v33 = vld [vmem:[#allocation8 + $0x78] sm:$0xff]  ;;  %v6843_v54 = vld [vmem:[#allocation30_spill] sm:$0xff] }
0x1720   :  { %3459 = vmatprep.subr.mxu0 %v5881_v45  ;;  %3570 = vmatpush1.msra.mxu1 %v6060_v61  ;;  %v3245_v45 = vpop.f32.mrf.mxu1 }
0x1721   :  { %3460 = vmatpush1.msra.mxu0 %v5885_v1  ;;  %3571 = vmatprep.subr.mxu1 %v6063_v0  ;;  %v3541_v49 = vpop.permute.xlu0 %3540 }
0x1722   :  { %3461 = vmatprep.subr.mxu0 %v5889_v10  ;;  %3572 = vmatpush1.msra.mxu1 %v6066_v19  ;;  %v3247_v10 = vpop.f32.mrf.mxu1  ;;  %v3544_v6 = vmul.f32 %v3541_v49, %v6842_v57  ;;  %v6860_v57 = vld [vmem:[#allocation31_spill] sm:$0xff] }
0x1723   :  { %3462 = vmatpush1.msra.mxu0 %v5893_v12  ;;  %3573 = vmatprep.subr.mxu1 %v6069_v4  ;;  %v6844_v4 = vld [vmem:[#allocation57_spill] sm:$0xff] }
0x1724   :  { %3463 = vmatprep.subr.mxu0 %v5897_v3  ;;  %3574 = vmatpush1.msra.mxu1 %v6072_v41 }
0x1725   :  { %3464 = vmatpush1.msra.mxu0 %v5901_v22  ;;  %3575 = vmatprep.subr.mxu1 %v6075_v56  ;;  %v6841_v22 = vld [vmem:[#allocation56_spill] sm:$0xff] }
0x1726   :  { %3666 = vmatprep.subr.mxu0 %v6008_v25  ;;  %3576 = vmatpush1.msra.mxu1 %v6078_v23  ;;  %v3543_v23 = vmul.f32 %v3541_v49, %v6772_v28  ;;  %v6845_v28 = vld [vmem:[#allocation60_spill] sm:$0xff]  ;;  %v6858_v49 = vld [vmem:[#allocation19_spill] sm:$0xff] }
0x1727   :  { %4185 = vmatmul.mubr.msk.f32.vlgmr.msra.gmra.mxu1 %vm247_vm0, %v3178_v44  ;;  %3740 = vmatprep.subr.mxu1 %v6083_v62 }
0x1728   :  { %3741 = vmatpush1.msra.mxu1 %v6086_v21  ;;  %3788 = vmatprep.mubr.f32.mxu1 %v6645_v46 }
0x1729   :  { %3742 = vmatprep.subr.mxu1 %v6090_v18 }
0x172a   :  { %3743 = vmatpush1.msra.mxu1 %v6094_v7 }
0x172b   :  { %3744 = vmatprep.subr.mxu1 %v6104_v24 }
0x172c   :  { %3745 = vmatpush1.msra.mxu1 %v6110_v42 }
0x172d   :  { %3746 = vmatprep.subr.mxu1 %v6116_v36 }
0x172e   :  { %3747 = vmatpush1.msra.mxu1 %v6122_v47 }
0x172f   :  { %3748 = vmatprep.subr.mxu1 %v6839_v9 }
0x1730   :  { %3749 = vmatpush1.msra.mxu1 %v6840_v53 }
0x1731   :  { %3750 = vmatprep.subr.mxu1 %v4665_v8 }
0x1732   :  { %3751 = vmatpush1.msra.mxu1 %v4666_v51 }
0x1733   :  { %3752 = vmatprep.subr.mxu1 %v4667_v59  ;;  %v6847_v59 = vld [vmem:[#allocation62_spill] sm:$0xff] }
0x1734   :  { %3753 = vmatpush1.msra.mxu1 %v4668_v34  ;;  %v6848_v34 = vld [vmem:[#allocation63_spill] sm:$0xff] }
0x1735   :  { %3754 = vmatprep.subr.mxu1 %v4669_v5  ;;  %v6849_v5 = vld [vmem:[#allocation65_spill] sm:$0xff] }
0x1736   :  { %3755 = vmatpush1.msra.mxu1 %v4670_v43  ;;  %v6850_v43 = vld [vmem:[#allocation66_spill] sm:$0xff] }
0x1737   :  { %3920 = vmatprep.subr.mxu1 %v4671_v33  ;;  %v6851_v33 = vld [vmem:[#allocation46_spill] sm:$0xff] }
0x17d5   :  { %v3319_v1 = vpop.f32.mrf.mxu0 }
0x17d6   :  { %v3320_v19 = vadd.f32 %v3319_v1, %v3245_v45  ;;  %v6852_v45 = vld [vmem:[#allocation50_spill] sm:$0xff] }
0x17d7   :  { %v3321_v12 = vpop.f32.mrf.mxu0  ;;  %v6290_v25 = vpop.f32.mrf.mxu1  ;;  %v6853_v1 = vld [vmem:[#allocation14_spill] sm:$0xff] }
0x17d8   :  { %v3322_v3 = vadd.f32 %v3321_v12, %v3247_v10  ;;  %v3324_v41 = vadd.f32 %v3320_v19, %v6844_v4  ;;  %v6854_v10 = vld [vmem:[#allocation15_spill] sm:$0xff]  ;;  %v6855_v12 = vld [vmem:[#allocation16_spill] sm:$0xff]  ;;  %v6865_v19 = vld [vmem:[#allocation22_spill] sm:$0xff] }
0x17d9   :  { %v6292_v37 = vpop.f32.mrf.mxu1 }
0x17da   :  { %v3325_v16 = vadd.f32 %v3322_v3, %v6841_v22  ;;  %v4178_v56 = vmul.f32 -1.442695, %v3324_v41  ;;  %v6856_v3 = vld [vmem:[#allocation17_spill] sm:$0xff]  ;;  %v4672_v41 = vld [vmem:[#allocation8 + $0x70] sm:$0xff] }
0x17dc   :  { %4467 = vtanh.f32 %v3325_v16  ;;  %v4179_v29 = vmul.f32 -1.442695, %v3325_v16  ;;  %v6857_v16 = vld [vmem:[#allocation18_spill] sm:$0xff] }
0x17e7   :  { %v3611_v31 = vpop.f32.mrf.mxu1 }
0x17e8   :  { %v3616_v62 = vadd.f32 %v3611_v31, %v3543_v23  ;;  %v6859_v31 = vld [vmem:[#allocation42_spill] sm:$0xff]  ;;  %v4673_v23 = vld [vmem:[#allocation8 + $0x68] sm:$0xff] }
0x17e9   :  { %v4468_v63 = vpop.eup %4467  ;;  %v3613_v60 = vpop.f32.mrf.mxu1 }
0x17ea   :  { %v3617_v11 = vadd.f32 %v3613_v60, %v3544_v6  ;;  %3341 = vrot.lane.b32.xlu1 %v4468_v63, %s4802_s1  ;;  %v3618_v21 = vadd.f32 %v3616_v62, %v6773_v20  ;;  %v6861_v60 = vld [vmem:[#allocation32_spill] sm:$0xff] }
0x17eb   :  { %v6867_v62 = vld [vmem:[#allocation24_spill] sm:$0xff] }
0x17ec   :  { %v3619_v61 = vadd.f32 %v3617_v11, %v6843_v54  ;;  %v4186_v7 = vmul.f32 -1.442695, %v3618_v21  ;;  %v6862_v54 = vld [vmem:[#allocation20_spill] sm:$0xff]  ;;  %v4674_v21 = vld [vmem:[#allocation8 + $0x60] sm:$0xff] }
0x17ee   :  { %4469 = vtanh.f32 %v3619_v61  ;;  %v4187_v26 = vmul.f32 -1.442695, %v3619_v61  ;;  %v6863_v61 = vld [vmem:[#allocation44_spill] sm:$0xff] }
0x17ef   :  { %4471 = vpow2.f32 %v4178_v56  ;;  %v6866_v56 = vld [vmem:[#allocation23_spill] sm:$0xff] }
0x17f0   :  { %4473 = vpow2.f32 %v4186_v7  ;;  %v4675_v7 = vld [vmem:[#allocation8 + $0x58] sm:$0xff] }
0x17fb   :  { %v4470_v0 = vpop.eup %4469 }
0x17fc   :  { %3635 = vrot.lane.b32.xlu0 %v4470_v0, %s4802_s1  ;;  %v4472_v18 = vpop.eup %4471  ;;  %v6864_v0 = vld [vmem:[#allocation21_spill] sm:$0xff] }
0x17fd   :  { %v3332_v47 = vadd.f32 1.0, %v4472_v18  ;;  %v4474_v24 = vpop.eup %4473  ;;  %v6868_v18 = vld [vmem:[#allocation25_spill] sm:$0xff] }
0x17fe   :  { %v3626_v55 = vadd.f32 1.0, %v4474_v24  ;;  %v4676_v24 = vld [vmem:[#allocation8 + $0x50] sm:$0xff] }
0x17ff   :  { %4475 = vrcp.f32 %v3332_v47  ;;  %v6869_v47 = vld [vmem:[#allocation26_spill] sm:$0xff] }
0x1800   :  { %4477 = vrcp.f32 %v3626_v55  ;;  %v4678_v55 = vld [vmem:[#allocation8 + $0x40] sm:$0xff] }
0x180c   :  { %v4476_v42 = vpop.eup %4475 }
0x180d   :  { %v4478_v27 = vpop.eup %4477  ;;  %v3339_v20 = vmul.f32 %v4476_v42, %v6845_v28  ;;  %v4680_v28 = vld [vmem:[#allocation8 + $0x30] sm:$0xff] }
0x180e   :  { %v3633_v2 = vmul.f32 %v4478_v27, %v6230_v50  ;;  %v6846_v50 = vld [vmem:[#allocation61_spill] sm:$0xff] }
0x185c   :  { %v3342_v36 = vpop.permute.xlu1 %3341 }
0x185d   :  { %v3344_v17 = vmul.f32 %v4476_v42, %v3342_v36  ;;  %v6870_v42 = vld [vmem:[#allocation27_spill] sm:$0xff] }
0x185e   :  { %v4677_v36 = vld [vmem:[#allocation8 + $0x48] sm:$0xff] }
0x185f   :  { %3346 = vrot.lane.b32.xlu1 %v3344_v17, %s4802_s1  ;;  %v6871_v17 = vld [vmem:[#allocation28_spill] sm:$0xff] }
0x186e   :  { %v3636_v15 = vpop.permute.xlu0 %3635 }
0x186f   :  { %v3638_v38 = vmul.f32 %v4478_v27, %v3636_v15  ;;  %v6872_v27 = vld [vmem:[#allocation33_spill] sm:$0xff] }
0x1870   :  { %v4679_v15 = vld [vmem:[#allocation8 + $0x38] sm:$0xff] }
0x1871   :  { %3640 = vrot.lane.b32.xlu0 %v3638_v38, %s4802_s1  ;;  %v6873_v38 = vld [vmem:[#allocation34_spill] sm:$0xff] }
0x18d1   :  { %v3347_v14 = vpop.permute.xlu1 %3346 }
0x18d2   :  { %v6304_v52 = vadd.f32 %v3347_v14, %v3339_v20  ;;  %v6874_v20 = vld [vmem:[#allocation35_spill] sm:$0xff] }
0x18d3   :  { %v4681_v14 = vld [vmem:[#allocation8 + $0x28] sm:$0xff] }
0x18d4   :  { %4479 = vtanh.f32 %v6304_v52 }
0x18e1   :  { %v4480_v58 = vpop.eup %4479 }
0x18e2   :  { %3352 = vrot.lane.b32.xlu1 %v4480_v58, %s4802_s1  ;;  %v6875_v58 = vld [vmem:[#allocation36_spill] sm:$0xff] }
0x18e3   :  { %v3641_v48 = vpop.permute.xlu0 %3640 }
0x18e4   :  { %v3643_v40 = vadd.f32 %v3641_v48, %v3633_v2  ;;  %v4682_v2 = vld [vmem:[#allocation8 + $0x20] sm:$0xff]  ;;  %v6876_v48 = vld [vmem:[#allocation37_spill] sm:$0xff] }
0x18e6   :  { %4481 = vtanh.f32 %v3643_v40  ;;  %v4683_v40 = vld [vmem:[#allocation8 + $0x18] sm:$0xff] }
0x18e7   :  { %4483 = vpow2.f32 %v4179_v29  ;;  %v4685_v29 = vld [vmem:[#allocation8 + $0x8] sm:$0xff] }
0x18e8   :  { %4485 = vpow2.f32 %v4187_v26 }
0x18f3   :  { %v4482_v35 = vpop.eup %4481 }
0x18f4   :  { %3646 = vrot.lane.b32.xlu0 %v4482_v35, %s4802_s1  ;;  %v4484_v44 = vpop.eup %4483  ;;  %v4684_v35 = vld [vmem:[#allocation8 + $0x10] sm:$0xff] }
0x18f5   :  { %v3333_v39 = vadd.f32 1.0, %v4484_v44  ;;  %v4486_v13 = vpop.eup %4485  ;;  %v4686_v44 = vld [vmem:[#allocation8] sm:$0xff] }
0x18f6   :  { %v3627_v51 = vadd.f32 1.0, %v4486_v13 }
0x18f7   :  { %4487 = vrcp.f32 %v3333_v39 }
0x18f8   :  { %4489 = vrcp.f32 %v3627_v51 }
0x1904   :  { %v4488_v9 = vpop.eup %4487 }
0x1905   :  { %v4490_v6 = vpop.eup %4489 }
0x1954   :  { %v3353_v53 = vpop.permute.xlu1 %3352 }
0x1955   :  { %v3355_v8 = vmul.f32 %v4488_v9, %v3353_v53  ;;  %v6877_v9 = vld [vmem:[#allocation40_spill] sm:$0xff] }
0x1957   :  { %4181 = vmatmul.mubr.msk.f32.vlgmr.msra.gmra.mxu0 %vm247_vm0, %v3355_v8 }
0x1958   :  { %3667 = vmatpush1.msra.mxu0 %v6846_v50  ;;  %3714 = vmatprep.mubr.f32.mxu0 %v6645_v46 }
0x1959   :  { %3668 = vmatprep.subr.mxu0 %v6847_v59 }
0x195a   :  { %3669 = vmatpush1.msra.mxu0 %v6848_v34 }
0x195b   :  { %3670 = vmatprep.subr.mxu0 %v6849_v5 }
0x195c   :  { %3671 = vmatpush1.msra.mxu0 %v6850_v43 }
0x195d   :  { %3672 = vmatprep.subr.mxu0 %v6851_v33 }
0x195e   :  { %3673 = vmatpush1.msra.mxu0 %v6852_v45 }
0x195f   :  { %3674 = vmatprep.subr.mxu0 %v6853_v1 }
0x1960   :  { %3675 = vmatpush1.msra.mxu0 %v6854_v10 }
0x1961   :  { %3676 = vmatprep.subr.mxu0 %v6855_v12 }
0x1962   :  { %3677 = vmatpush1.msra.mxu0 %v6856_v3 }
0x1963   :  { %3678 = vmatprep.subr.mxu0 %v6857_v16 }
0x1964   :  { %3679 = vmatpush1.msra.mxu0 %v6858_v49 }
0x1965   :  { %3680 = vmatprep.subr.mxu0 %v6859_v31 }
0x1966   :  { %3681 = vmatpush1.msra.mxu0 %v6860_v57  ;;  %v3647_v63 = vpop.permute.xlu0 %3646 }
0x1967   :  { %4188 = vmatmul.mubr.msk.f32.vlgmr.msra.gmra.mxu0 %vm247_vm0, %v3355_v8  ;;  %3846 = vmatprep.subr.mxu0 %v6861_v60  ;;  %v3649_v11 = vmul.f32 %v4490_v6, %v3647_v63 }
0x1968   :  { %3847 = vmatpush1.msra.mxu0 %v6862_v54  ;;  %3894 = vmatprep.mubr.f32.mxu0 %v6645_v46 }
0x1969   :  { %3848 = vmatprep.subr.mxu0 %v6863_v61  ;;  %4189 = vmatmul.mubr.msk.f32.vlgmr.msra.gmra.mxu1 %vm247_vm0, %v3649_v11 }
0x196a   :  { %3849 = vmatpush1.msra.mxu0 %v6864_v0  ;;  %3921 = vmatpush1.msra.mxu1 %v4672_v41 }
0x196b   :  { %3850 = vmatprep.subr.mxu0 %v6865_v19  ;;  %3922 = vmatprep.subr.mxu1 %v4673_v23 }
0x196c   :  { %3851 = vmatpush1.msra.mxu0 %v6866_v56  ;;  %3923 = vmatpush1.msra.mxu1 %v4674_v21 }
0x196d   :  { %3852 = vmatprep.subr.mxu0 %v6867_v62  ;;  %3924 = vmatprep.subr.mxu1 %v4675_v7 }
0x196e   :  { %3853 = vmatpush1.msra.mxu0 %v6868_v18  ;;  %3925 = vmatpush1.msra.mxu1 %v4676_v24 }
0x196f   :  { %3854 = vmatprep.subr.mxu0 %v6869_v47  ;;  %3926 = vmatprep.subr.mxu1 %v4677_v36 }
0x1970   :  { %3855 = vmatpush1.msra.mxu0 %v6870_v42  ;;  %3927 = vmatpush1.msra.mxu1 %v4678_v55 }
0x1971   :  { %3856 = vmatprep.subr.mxu0 %v6871_v17  ;;  %3928 = vmatprep.subr.mxu1 %v4679_v15 }
0x1972   :  { %3857 = vmatpush1.msra.mxu0 %v6872_v27  ;;  %3929 = vmatpush1.msra.mxu1 %v4680_v28 }
0x1973   :  { %3858 = vmatprep.subr.mxu0 %v6873_v38  ;;  %3930 = vmatprep.subr.mxu1 %v4681_v14 }
0x1974   :  { %3859 = vmatpush1.msra.mxu0 %v6874_v20  ;;  %3931 = vmatpush1.msra.mxu1 %v4682_v2 }
0x1975   :  { %3860 = vmatprep.subr.mxu0 %v6875_v58  ;;  %3932 = vmatprep.subr.mxu1 %v4683_v40 }
0x1976   :  { %3861 = vmatpush1.msra.mxu0 %v6876_v48  ;;  %3933 = vmatpush1.msra.mxu1 %v4684_v35 }
0x1977   :  { %3968 = vmatprep.mubr.f32.mxu1 %v6645_v46  ;;  %3934 = vmatprep.subr.mxu1 %v4685_v29 }
0x1978   :  { %4207 = vmatprep.subr.mxu0 %v6645_v46  ;;  %3935 = vmatpush1.msra.mxu1 %v4686_v44 }
0x1a17   :  { %v3499_v26 = vpop.f32.mrf.mxu0 }
0x1a19   :  { %v3501_v39 = vpop.f32.mrf.mxu0 }
0x1a1a   :  { %v3502_v13 = vadd.f32 %v3501_v39, %v6292_v37  ;;  %v3500_v37 = vadd.f32 %v3499_v26, %v6290_v25 }
0x1a1c   :  { %v3505_v53 = vadd.f32 %v3502_v13, %v6877_v9  ;;  %v3504_v1 = vadd.f32 %v3500_v37, %v5343_v32  ;;  %v4014_v13 = vld [vmem:[%s6419_s10 + $0x38] sm:$0xff] }
0x1a1e   :  { %4491 = vtanh.f32 %v3505_v53  ;;  %v4182_v10 = vmul.f32 -1.442695, %v3504_v1  ;;  %v4183_v62 = vmul.f32 -1.442695, %v3505_v53  ;;  %v4011_v53 = vld [vmem:[%s6419_s10 + $0x20] sm:$0xff] }
0x1a27   :  { %v3716_v8 = vpop.f32.mrf.mxu0 }
0x1a29   :  { %v3790_v51 = vpop.f32.mrf.mxu1  ;;  %v3718_v50 = vpop.f32.mrf.mxu0 }
0x1a2a   :  { %v3791_v59 = vadd.f32 %v3790_v51, %v3716_v8  ;;  %v4010_v8 = vld [vmem:[%s6419_s10 + $0x18] sm:$0xff]  ;;  %v4009_v51 = vld [vmem:[%s6419_s10 + $0x10] sm:$0xff] }
0x1a2b   :  { %v4492_v34 = vpop.eup %4491  ;;  %v3792_v5 = vpop.f32.mrf.mxu1 }
0x1a2c   :  { %v3793_v43 = vadd.f32 %v3792_v5, %v3718_v50  ;;  %3521 = vrot.lane.b32.xlu1 %v4492_v34, %s4802_s1  ;;  %v3795_v12 = vadd.f32 %v3791_v59, %v6844_v4  ;;  %v4008_v50 = vld [vmem:[%s6419_s10 + $0x8] sm:$0xff] }
0x1a2e   :  { %v3796_v33 = vadd.f32 %v3793_v43, %v6841_v22  ;;  %v4190_v16 = vmul.f32 -1.442695, %v3795_v12  ;;  %v4007_v43 = vld [vmem:[%s6419_s10] sm:$0xff] }
0x1a30   :  { %4493 = vtanh.f32 %v3796_v33 }
0x1a31   :  { %4495 = vpow2.f32 %v4182_v10 }
0x1a32   :  { %4497 = vpow2.f32 %v4190_v16  ;;  %v4196_v16 = vld [vmem:[#allocation2] ss:$0 sm:$0xff] }
0x1a3d   :  { %v4494_v45 = vpop.eup %4493 }
0x1a3e   :  { %3812 = vrot.lane.b32.xlu0 %v4494_v45, %s4802_s1  ;;  %v4496_v3 = vpop.eup %4495 }
0x1a3f   :  { %v3512_v49 = vadd.f32 1.0, %v4496_v3  ;;  %v4498_v31 = vpop.eup %4497 }
0x1a40   :  { %v3803_v63 = vadd.f32 1.0, %v4498_v31 }
0x1a41   :  { %4499 = vrcp.f32 %v3512_v49 }
0x1a42   :  { %4501 = vrcp.f32 %v3803_v63 }
0x1a4e   :  { %v4500_v57 = vpop.eup %4499 }
0x1a4f   :  { %v4502_v25 = vpop.eup %4501  ;;  %v3519_v4 = vmul.f32 %v4500_v57, %v6234_v30  ;;  %v4191_v30 = vmul.f32 -1.442695, %v3796_v33 }
0x1a50   :  { %v3810_v19 = vmul.f32 %v4502_v25, %v6304_v52 }
0x1a9e   :  { %v3522_v22 = vpop.permute.xlu1 %3521 }
0x1a9f   :  { %v3524_v6 = vmul.f32 %v4500_v57, %v3522_v22 }
0x1aa1   :  { %3526 = vrot.lane.b32.xlu1 %v3524_v6, %s4802_s1 }
0x1ab0   :  { %v3813_v60 = vpop.permute.xlu0 %3812 }
0x1ab1   :  { %v3815_v11 = vmul.f32 %v4502_v25, %v3813_v60 }
0x1ab3   :  { %3817 = vrot.lane.b32.xlu0 %v3815_v11, %s4802_s1 }
0x1b13   :  { %v3527_v54 = vpop.permute.xlu1 %3526 }
0x1b14   :  { %v6359_v61 = vadd.f32 %v3527_v54, %v3519_v4 }
0x1b16   :  { %4503 = vtanh.f32 %v6359_v61 }
0x1b23   :  { %v4504_v0 = vpop.eup %4503 }
0x1b24   :  { %3532 = vrot.lane.b32.xlu1 %v4504_v0, %s4802_s1 }
0x1b25   :  { %v3818_v41 = vpop.permute.xlu0 %3817 }
0x1b26   :  { %v3820_v56 = vadd.f32 %v3818_v41, %v3810_v19 }
0x1b28   :  { %4505 = vtanh.f32 %v3820_v56 }
0x1b29   :  { %4507 = vpow2.f32 %v4183_v62 }
0x1b2a   :  { %4509 = vpow2.f32 %v4191_v30 }
0x1b35   :  { %v4506_v23 = vpop.eup %4505 }
0x1b36   :  { %3823 = vrot.lane.b32.xlu0 %v4506_v23, %s4802_s1  ;;  %v4508_v21 = vpop.eup %4507 }
0x1b37   :  { %v3513_v18 = vadd.f32 1.0, %v4508_v21  ;;  %v4510_v7 = vpop.eup %4509 }
0x1b38   :  { %v3804_v36 = vadd.f32 1.0, %v4510_v7 }
0x1b39   :  { %4511 = vrcp.f32 %v3513_v18 }
0x1b3a   :  { %4513 = vrcp.f32 %v3804_v36 }
0x1b46   :  { %v4512_v47 = vpop.eup %4511 }
0x1b47   :  { %v4514_v52 = vpop.eup %4513 }
0x1b96   :  { %v3533_v24 = vpop.permute.xlu1 %3532 }
0x1b97   :  { %v3535_v42 = vmul.f32 %v4512_v47, %v3533_v24 }
0x1b99   :  { %4192 = vmatmul.mubr.msk.f32.vlgmr.msra.gmra.mxu0 %vm247_vm0, %v3535_v42 }
0x1b9a   :  { %4208 = vmatpush3.msra.mxu0 %v4014_v13  ;;  %4223 = vmatprep.mubr.msk.f32.mxu0 %vm4803_vm1, %v6645_v46 }
0x1b9b   :  { %4209 = vmatprep.subr.mxu0 %v6645_v46 }
0x1ba8   :  { %v3824_v17 = vpop.permute.xlu0 %3823 }
0x1ba9   :  { %v3826_v55 = vmul.f32 %v4514_v52, %v3824_v17 }
0x1bab   :  { %4193 = vmatmul.mubr.msk.f32.vlgmr.msra.gmra.mxu1 %vm247_vm0, %v3826_v55 }
0x1c59   :  { %v3896_v27 = vpop.f32.mrf.mxu0 }
0x1c5b   :  { %v3898_v28 = vpop.f32.mrf.mxu0 }
0x1c6b   :  { %v3970_v15 = vpop.f32.mrf.mxu1 }
0x1c6c   :  { %v3971_v38 = vadd.f32 %v3970_v15, %v3896_v27 }
0x1c6d   :  { %v3972_v20 = vpop.f32.mrf.mxu1 }
0x1c6e   :  { %v3973_v14 = vadd.f32 %v3972_v20, %v3898_v28  ;;  %v3975_v48 = vadd.f32 %v3971_v38, %v5343_v32  ;;  %v4012_v32 = vld [vmem:[%s6419_s10 + $0x28] sm:$0xff] }
0x1c70   :  { %v3976_v58 = vadd.f32 %v3973_v14, %v6877_v9  ;;  %v4194_v40 = vmul.f32 -1.442695, %v3975_v48  ;;  %v4013_v9 = vld [vmem:[%s6419_s10 + $0x30] sm:$0xff] }
0x1c71   :  { %4210 = vmatpush3.msra.mxu0 %v4013_v9 }
0x1c72   :  { %4515 = vtanh.f32 %v3976_v58  ;;  %4211 = vmatprep.subr.mxu0 %v6645_v46  ;;  %v4195_v45 = vmul.f32 -1.442695, %v3976_v58 }
0x1c73   :  { %4517 = vpow2.f32 %v4194_v40  ;;  %4212 = vmatpush3.msra.mxu0 %v4012_v32 }
0x1c74   :  { %4213 = vmatprep.subr.mxu0 %v6645_v46 }
0x1c75   :  { %4214 = vmatpush3.msra.mxu0 %v4011_v53 }
0x1c76   :  { %4215 = vmatprep.subr.mxu0 %v6645_v46 }
0x1c77   :  { %4216 = vmatpush3.msra.mxu0 %v4010_v8 }
0x1c78   :  { %4217 = vmatprep.subr.mxu0 %v6645_v46 }
0x1c79   :  { %4218 = vmatpush3.msra.mxu0 %v4009_v51 }
0x1c7a   :  { %4219 = vmatprep.subr.mxu0 %v6645_v46 }
0x1c7b   :  { %4220 = vmatpush3.msra.mxu0 %v4008_v50 }
0x1c7c   :  { %4221 = vmatprep.subr.mxu0 %v6645_v46 }
0x1c7d   :  { %4222 = vmatpush3.msra.mxu0 %v4007_v43 }
0x1c7f   :  { %v4516_v2 = vpop.eup %4515 }
0x1c80   :  { %3992 = vrot.lane.b32.xlu1 %v4516_v2, %s4802_s1  ;;  %v4518_v35 = vpop.eup %4517 }
0x1c81   :  { %v3983_v29 = vadd.f32 1.0, %v4518_v35 }
0x1c83   :  { %4519 = vrcp.f32 %v3983_v29 }
0x1c90   :  { %v4520_v44 = vpop.eup %4519 }
0x1c91   :  { %v3990_v59 = vmul.f32 %v4520_v44, %v6359_v61 }
0x1cf2   :  { %v3993_v26 = vpop.permute.xlu1 %3992 }
0x1cf3   :  { %v3995_v39 = vmul.f32 %v4520_v44, %v3993_v26 }
0x1cf5   :  { %3997 = vrot.lane.b32.xlu0 %v3995_v39, %s4802_s1 }
0x1d67   :  { %v3998_v34 = vpop.permute.xlu0 %3997 }
0x1d68   :  { %v4000_v5 = vadd.f32 %v3998_v34, %v3990_v59 }
0x1d6a   :  { %4521 = vtanh.f32 %v4000_v5 }
0x1d6b   :  { %4523 = vpow2.f32 %v4195_v45 }
0x1d77   :  { %v4522_v33 = vpop.eup %4521 }
0x1d78   :  { %4003 = vrot.lane.b32.xlu1 %v4522_v33, %s4802_s1  ;;  %v4524_v37 = vpop.eup %4523 }
0x1d79   :  { %v3984_v1 = vadd.f32 1.0, %v4524_v37 }
0x1d7b   :  { %4525 = vrcp.f32 %v3984_v1 }
0x1d88   :  { %v4526_v10 = vpop.eup %4525 }
0x1dea   :  { %v4004_v12 = vpop.permute.xlu1 %4003 }
0x1deb   :  { %v4006_v3 = vmul.f32 %v4526_v10, %v4004_v12 }
0x1ded   :  { %4224 = vmatmul.mubr.msk.f32.vlgmr.msra.gmra.mxu0 %vm247_vm0, %v4006_v3 }
0x1ead   :  { %v4091_v49 = vpop.f32.mrf.mxu0 }
0x1eae   :  { %v4092_v31 = vadd.f32 %v4196_v16, %v4091_v49 }
0x1eaf   :  { %v4225_v57 = vpop.f32.mrf.mxu0 }
0x1eb0   :  { %4096 = vst.msk [vmem:[%s6421_s12] sm:$0x3] %vm4095_vm2, %v4092_v31 }
0x1eb1   :  { %4101 = vsyncpa [#allocation4], 1 }
0x1eb2   :  { %4102 = vsyncpa [#allocation6], 1 }
0x1eb3   :  { %4103 = vsyncpa [#allocation9], 1 }

</bundles_post_ra>
